<compile_context>
chip_gen: v5e
topology: v5e:2x2
jax: 0.10.0
libtpu: 0.0.40
codegen_flags: <defaults>
</compile_context>

<pallas_src>
import jax
import jax.numpy as jnp
from jax.experimental import pallas as pl
from jax.experimental.pallas import tpu as pltpu


# ----------------------------------------------------------------------------
# Fused kernel. Grid = (batch tiles, attention chunks); chunk axis is "arbitrary".
# ----------------------------------------------------------------------------
def adaatt_core_kernel(
    # batch-tiled activations
    xt_ref, fc_ref, h_ref, c_ref, conv_ref, cemb_ref,
    # fused LSTM weights (bf16) + summed biases (f32)
    w0_ref, b0_ref, w1r_ref, b1r_ref,
    # attention weights (bf16) + biases (f32)
    frl_w_ref, frl_b_ref, fre_w_ref, fre_b_ref,
    hol_w_ref, hol_b_ref, hoe_w_ref, hoe_b_ref,
    alpha_ref, a2h_w_ref, a2h_b_ref,
    # outputs
    out_ref, nh_ref, nc_ref,
    # VMEM scratch persisting across the attention-chunk axis
    ho_lin_s, ho_emb_s, m_s, d_s, v_s,
):
    f32, bf16 = jnp.float32, jnp.bfloat16
    R = nc_ref.shape[-1]
    a_idx = pl.program_id(1)
    last_a = pl.num_programs(1) - 1

    def mm(x, w_ref):
        # bf16 operands, f32 accumulation on the MXU.
        return jnp.dot(x.astype(bf16), w_ref[...], preferred_element_type=f32)

    # NOTE: gate slices below are lane-aligned (free static views) when R % 128 == 0
    # (production R=512); for small test R they are still correct, just relayouted.

    # -------- chunk 0: LSTM + sentinel + query embeddings + online-softmax init --------
    @pl.when(a_idx == 0)
    def _init():
        h0 = h_ref[0, :, :].astype(bf16)
        h1 = h_ref[1, :, :].astype(bf16)
        c0 = c_ref[0, :, :]
        c1 = c_ref[1, :, :]

        # LSTM layer 0: single fused matmul over [xt | fc | h0]
        z0 = jnp.concatenate([xt_ref[...], fc_ref[...], h0], axis=1)
        s0 = jnp.dot(z0, w0_ref[...], preferred_element_type=f32) + b0_ref[...]
        sig0 = jax.nn.sigmoid(s0[:, : 3 * R])
        nc0 = sig0[:, R:2 * R] * c0 + sig0[:, :R] * jnp.tanh(s0[:, 3 * R:4 * R])
        nh0 = sig0[:, 2 * R:3 * R] * jnp.tanh(nc0)

        # LSTM layer 1 + sentinel gate: single fused matmul over [nh0 | h1]
        # (dropout between layers is identity in eval mode)
        z1 = jnp.concatenate([nh0.astype(bf16), h1], axis=1)
        s1 = jnp.dot(z1, w1r_ref[...], preferred_element_type=f32) + b1r_ref[...]
        sig1 = jax.nn.sigmoid(s1[:, : 3 * R])
        nc1 = sig1[:, R:2 * R] * c1 + sig1[:, :R] * jnp.tanh(s1[:, 3 * R:4 * R])
        tanh_nc1 = jnp.tanh(nc1)
        nh1 = sig1[:, 2 * R:3 * R] * tanh_nc1
        fake = jax.nn.sigmoid(s1[:, 4 * R:5 * R]) * tanh_nc1    # sentinel (fake region)

        nh_ref[0, :, :] = nh0
        nh_ref[1, :, :] = nh1
        nc_ref[0, :, :] = nc0
        nc_ref[1, :, :] = nc1

        # attention query path (dropouts are identity in eval mode)
        fr = jax.nn.relu(mm(fake, frl_w_ref) + frl_b_ref[...])          # (TB, E)
        fr_emb = mm(fr, fre_w_ref) + fre_b_ref[...]                     # (TB, H)
        ho_lin = jnp.tanh(mm(nh1, hol_w_ref) + hol_b_ref[...])          # (TB, E)
        ho_emb = mm(ho_lin, hoe_w_ref) + hoe_b_ref[...]                 # (TB, H)
        ho_lin_s[...] = ho_lin
        ho_emb_s[...] = ho_emb

        # Online-softmax init with the sentinel column.  alpha_net bias cancels inside
        # the softmax and is dropped (identical semantics).
        hA_fake = jnp.tanh(fr_emb + ho_emb)                             # (TB, H)
        s_fake = jnp.dot(hA_fake.astype(bf16), alpha_ref[...],
                         preferred_element_type=f32)                    # (TB, 1)
        m_s[...] = s_fake
        d_s[...] = jnp.ones_like(s_fake)        # exp(s_fake - m) == 1
        v_s[...] = fr                           # fake-region feature weighted by 1

    # -------- every chunk: scores + online-softmax update + weighted feature sum -------
    tb, ta, hh = cemb_ref.shape
    ho_emb = ho_emb_s[...]
    hA = jnp.tanh(cemb_ref[...].astype(f32) + ho_emb[:, None, :])       # (TB, TA, H) f32
    # Score reduce over H on the MXU (replaces the XLU lane reduce).
    s_c = jnp.dot(hA.reshape(tb * ta, hh).astype(bf16), alpha_ref[...],
                  preferred_element_type=f32).reshape(tb, ta)           # (TB, TA)

    m_prev, d_prev, v_prev = m_s[...], d_s[...], v_s[...]
    m_new = jnp.maximum(m_prev, jnp.max(s_c, axis=1, keepdims=True))    # (TB, 1)
    scale = jnp.exp(m_prev - m_new)
    p_c = jnp.exp(s_c - m_new)                                          # (TB, TA)
    d_s[...] = d_prev * scale + jnp.sum(p_c, axis=1, keepdims=True)
    # Weighted feature sum: broadcast-multiply + A-axis (sublane) reduce, fused into the
    # chunk loop (replaces the per-row M=1 MXU einsum of the previous version).
    wsum = jnp.sum(p_c[:, :, None] * conv_ref[...].astype(f32), axis=1)  # (TB, R)
    v_s[...] = v_prev * scale + wsum
    m_s[...] = m_new

    # -------- last chunk: normalize, combine with query, output projection -------------
    @pl.when(a_idx == last_a)
    def _finish():
        vis = v_s[...] / d_s[...]               # exact normalize (no approx reciprocal)
        atten = vis + ho_lin_s[...]
        out_ref[...] = jnp.tanh(mm(atten, a2h_w_ref) + a2h_b_ref[...])  # dropout=identity


# ----------------------------------------------------------------------------
# Offline weight fusion (do once per model, not per timestep).
# ----------------------------------------------------------------------------
def fuse_params(p, matmul_dtype=jnp.bfloat16):
    w0 = jnp.concatenate([p["w2h_w"], p["v2h_w"], p["h2h0_w"]], axis=0)          # (E+2R, 4R)
    b0 = (p["w2h_b"] + p["v2h_b"] + p["h2h0_b"]).astype(jnp.float32)             # (1, 4R)
    w1 = jnp.concatenate([p["i2h1_w"], p["h2h1_w"]], axis=0)                     # (2R, 4R)
    wr = jnp.concatenate([p["r_i2h_w"], p["r_h2h_w"]], axis=0)                   # (2R, R)
    w1r = jnp.concatenate([w1, wr], axis=1)                                      # (2R, 5R)
    b1r = jnp.concatenate([p["i2h1_b"] + p["h2h1_b"],
                           p["r_i2h_b"] + p["r_h2h_b"]], axis=1).astype(jnp.float32)
    c = lambda w: w.astype(matmul_dtype)
    return {
        "w0": c(w0), "b0": b0, "w1r": c(w1r), "b1r": b1r,
        "frl_w": c(p["frl_w"]), "frl_b": p["frl_b"],
        "fre_w": c(p["fre_w"]), "fre_b": p["fre_b"],
        "hol_w": c(p["hol_w"]), "hol_b": p["hol_b"],
        "hoe_w": c(p["hoe_w"]), "hoe_b": p["hoe_b"],
        # alpha stored as an (H, 1) column so the score reduce runs on the MXU.
        # alpha_net bias cancels inside the softmax and is not needed in-kernel.
        "alpha_col": c(p["alpha_w"].T),
        "a2h_w": c(p["a2h_w"]), "a2h_b": p["a2h_b"],
    }


# ----------------------------------------------------------------------------
# Wrapper: grid over (batch tiles, attention chunks); weights VMEM-resident.
# ----------------------------------------------------------------------------
def adaatt_core(xt, fc_feats, att_feats, p_att_feats, state, fp, *,
                batch_tile=None, att_tile=None, vmem_limit_bytes=None,
                alias_state=True):
    h_in, c_in = state                       # each (2, B, R) f32
    _, B, R = h_in.shape
    E = xt.shape[1]
    A = att_feats.shape[1]
    H = p_att_feats.shape[2]
    assert E == R, "AdaAtt requires input_encoding_size == rnn_size (img_all concat)"

    tb = B if batch_tile is None else batch_tile
    ta = A if att_tile is None else att_tile
    assert B % tb == 0 and (tb == B or tb % 8 == 0), "bad batch_tile (prefer mult of 16)"
    assert A % ta == 0 and (ta == A or ta % 8 == 0), "bad att_tile (prefer mult of 16)"
    grid = (B // tb, A // ta)

    bf16 = jnp.bfloat16
    # Features and matmul-only activations live in HBM as bf16 (half the DMA bytes).
    # In an autoregressive loop, cast att_feats / p_att_feats ONCE outside the loop.
    xt_b = xt.astype(bf16)
    fc_b = fc_feats.astype(bf16)
    att_b = att_feats.astype(bf16)
    pat_b = p_att_feats.astype(bf16)

    batch2 = lambda b, a: (b, 0)
    state3 = lambda b, a: (0, b, 0)
    chunk3 = lambda b, a: (b, a, 0)

    def resident(arr):
        # Constant index_map => DMA'd once; single-buffer to avoid wasting VMEM on a
        # useless second weight buffer.
        idx = lambda b, a: (0,) * arr.ndim
        try:
            return pl.BlockSpec(arr.shape, idx, pipeline_mode=pl.Buffered(buffer_count=1))
        except TypeError:  # older jax without pipeline_mode on BlockSpec
            return pl.BlockSpec(arr.shape, idx)

    weights = [fp["w0"], fp["b0"], fp["w1r"], fp["b1r"],
               fp["frl_w"], fp["frl_b"], fp["fre_w"], fp["fre_b"],
               fp["hol_w"], fp["hol_b"], fp["hoe_w"], fp["hoe_b"],
               fp["alpha_col"], fp["a2h_w"], fp["a2h_b"]]

    in_specs = [
        pl.BlockSpec((tb, E), batch2),                   # xt (bf16)
        pl.BlockSpec((tb, R), batch2),                   # fc_feats (bf16)
        pl.BlockSpec((2, tb, R), state3),                # h state (f32)
        pl.BlockSpec((2, tb, R), state3),                # c state (f32)
        pl.BlockSpec((tb, ta, R), chunk3),               # att_feats chunk (bf16)
        pl.BlockSpec((tb, ta, H), chunk3),               # p_att_feats chunk (bf16)
    ] + [resident(w) for w in weights]

    out_specs = (
        pl.BlockSpec((tb, R), batch2),                   # attention output
        pl.BlockSpec((2, tb, R), state3),                # new h (stacked)
        pl.BlockSpec((2, tb, R), state3),                # new c
    )
    out_shapes = (
        jax.ShapeDtypeStruct((B, R), jnp.float32),
        jax.ShapeDtypeStruct((2, B, R), jnp.float32),
        jax.ShapeDtypeStruct((2, B, R), jnp.float32),
    )
    scratch_shapes = [
        pltpu.VMEM((tb, E), jnp.float32),   # ho_lin
        pltpu.VMEM((tb, H), jnp.float32),   # ho_emb
        pltpu.VMEM((tb, 1), jnp.float32),   # running max
        pltpu.VMEM((tb, 1), jnp.float32),   # running denom
        pltpu.VMEM((tb, E), jnp.float32),   # running weighted feature sum (E == R)
    ]

    if vmem_limit_bytes is None:
        w_bytes = sum(int(w.size) * w.dtype.itemsize for w in weights)       # single-buffered
        tile_bytes = 2 * (tb * E * 2 + tb * R * 2 + 2 * 2 * tb * R * 4       # double-buffered
                          + tb * ta * R * 2 + tb * ta * H * 2)
        out_bytes = 2 * (tb * R + 2 * 2 * tb * R) * 4
        scr_bytes = (2 * tb * E + tb * H + 2 * tb) * 4
        est = w_bytes + tile_bytes + out_bytes + scr_bytes
        # 64 MiB cap keeps the request valid on v7x (64 MiB / TC).  On v5e / v6e raise
        # toward ~100 MiB and grow batch_tile / att_tile until tiles approach the limit.
        vmem_limit_bytes = min(max(2 * est, 32 * 1024 * 1024), 64 * 1024 * 1024)

    # Alias h/c state in -> new state out (decode-loop HBM/alloc saving).
    io_aliases = {2: 1, 3: 2} if alias_state else {}

    atten_out, new_h, new_c = pl.pallas_call(
        adaatt_core_kernel,
        out_shape=out_shapes,
        grid=grid,
        in_specs=in_specs,
        out_specs=out_specs,
        scratch_shapes=scratch_shapes,
        input_output_aliases=io_aliases,
        compiler_params=pltpu.CompilerParams(
            # batch tiles independent (megacore / v7x dual-TC); att chunks sequential
            # (online-softmax accumulator).  On v7x keep B // tb >= 2 so both TCs work.
            dimension_semantics=("parallel", "arbitrary"),
            vmem_limit_bytes=int(vmem_limit_bytes),
        ),
    )(xt_b, fc_b, h_in, c_in, att_b, pat_b, *weights)
    return atten_out, (new_h, new_c)


# ----------------------------------------------------------------------------
# Pure-JAX f32 reference (direct translation of the PyTorch forward, eval mode).
# ----------------------------------------------------------------------------
def reference(xt, fc_feats, att_feats, p_att_feats, state, p):
    def lin(x, w, b):
        return jnp.dot(x, w, preferred_element_type=jnp.float32) + b

    R = att_feats.shape[-1]
    # LSTM layer 0
    i2h = lin(xt, p["w2h_w"], p["w2h_b"]) + lin(fc_feats, p["v2h_w"], p["v2h_b"])
    s = i2h + lin(state[0][0], p["h2h0_w"], p["h2h0_b"])
    sig = jax.nn.sigmoid(s[:, :3 * R])
    nc0 = sig[:, R:2 * R] * state[1][0] + sig[:, :R] * jnp.tanh(s[:, 3 * R:4 * R])
    nh0 = sig[:, 2 * R:3 * R] * jnp.tanh(nc0)
    # LSTM layer 1
    i2h = lin(nh0, p["i2h1_w"], p["i2h1_b"])
    s = i2h + lin(state[0][1], p["h2h1_w"], p["h2h1_b"])
    sig = jax.nn.sigmoid(s[:, :3 * R])
    nc1 = sig[:, R:2 * R] * state[1][1] + sig[:, :R] * jnp.tanh(s[:, 3 * R:4 * R])
    tanh_nc1 = jnp.tanh(nc1)
    nh1 = sig[:, 2 * R:3 * R] * tanh_nc1
    n5 = lin(nh0, p["r_i2h_w"], p["r_i2h_b"]) + lin(state[0][1], p["r_h2h_w"], p["r_h2h_b"])
    fake = jax.nn.sigmoid(n5) * tanh_nc1
    top_h = nh1
    # Attention
    fr = jax.nn.relu(lin(fake, p["frl_w"], p["frl_b"]))
    fr_emb = lin(fr, p["fre_w"], p["fre_b"])
    ho_lin = jnp.tanh(lin(top_h, p["hol_w"], p["hol_b"]))
    ho_emb = lin(ho_lin, p["hoe_w"], p["hoe_b"])
    img_all = jnp.concatenate([fr[:, None, :], att_feats], axis=1)
    img_all_emb = jnp.concatenate([fr_emb[:, None, :], p_att_feats], axis=1)
    hA = jnp.tanh(img_all_emb + ho_emb[:, None, :])
    scores = jnp.sum(hA * p["alpha_w"], axis=2) + p["alpha_b"][0, 0]
    PI = jax.nn.softmax(scores, axis=1)
    vis = jnp.sum(PI[:, :, None] * img_all, axis=1)
    h = jnp.tanh(lin(vis + ho_lin, p["a2h_w"], p["a2h_b"]))
    new_state = (jnp.stack([nh0, nh1], 0), jnp.stack([nc0, nc1], 0))
    return h, new_state


# ----------------------------------------------------------------------------
# Deterministic parameter init (PyTorch Linear-style uniform).
# ----------------------------------------------------------------------------
def init_params(key, E, R, H):
    def linear(k, fin, fout):
        k1, k2 = jax.random.split(k)
        bound = 1.0 / (fin ** 0.5)
        w = jax.random.uniform(k1, (fin, fout), jnp.float32, -bound, bound)
        b = jax.random.uniform(k2, (1, fout), jnp.float32, -bound, bound)
        return w, b

    ks = jax.random.split(key, 14)
    p = {}
    p["w2h_w"], p["w2h_b"] = linear(ks[0], E, 4 * R)
    p["v2h_w"], p["v2h_b"] = linear(ks[1], R, 4 * R)
    p["h2h0_w"], p["h2h0_b"] = linear(ks[2], R, 4 * R)
    p["i2h1_w"], p["i2h1_b"] = linear(ks[3], R, 4 * R)
    p["h2h1_w"], p["h2h1_b"] = linear(ks[4], R, 4 * R)
    p["r_i2h_w"], p["r_i2h_b"] = linear(ks[5], R, R)
    p["r_h2h_w"], p["r_h2h_b"] = linear(ks[6], R, R)
    p["frl_w"], p["frl_b"] = linear(ks[7], R, E)
    p["fre_w"], p["fre_b"] = linear(ks[8], E, H)
    p["hol_w"], p["hol_b"] = linear(ks[9], R, E)
    p["hoe_w"], p["hoe_b"] = linear(ks[10], E, H)
    aw, ab = linear(ks[11], H, 1)
    p["alpha_w"] = aw.T          # stored as (1, H)
    p["alpha_b"] = ab            # (1, 1) — cancels in softmax, kept only for the reference
    p["a2h_w"], p["a2h_b"] = linear(ks[12], R, R)
    return p


if __name__ == "__main__":
    # batch, input_encoding==rnn_size, att_hid, att_size; tiles exercise BOTH grid axes.
    B, E, R, H, A = 32, 32, 32, 32, 32
    TB, TA = 16, 16
    key = jax.random.PRNGKey(0)
    ks = jax.random.split(key, 7)
    xt = jax.random.normal(ks[0], (B, E), jnp.float32)
    fc_feats = jax.random.normal(ks[1], (B, R), jnp.float32)
    att_feats = jax.random.normal(ks[2], (B, A, R), jnp.float32)
    p_att_feats = jax.random.normal(ks[3], (B, A, H), jnp.float32)
    state = (0.1 * jax.random.normal(ks[4], (2, B, R), jnp.float32),
             0.1 * jax.random.normal(ks[5], (2, B, R), jnp.float32))
    params = init_params(ks[6], E, R, H)
    fused = fuse_params(params)   # offline weight concat + bf16 cast (once per model)

    # Pure-f32 reference FIRST (the kernel may donate the state buffers via io-aliasing).
    ref_out, ref_state = reference(xt, fc_feats, att_feats, p_att_feats, state, params)
    jax.block_until_ready((ref_out, ref_state))

    # TODO(synk): dropout layers are treated as identity (eval mode); no stochastic path.
    out, new_state = adaatt_core(xt, fc_feats, att_feats, p_att_feats, state, fused,
                                 batch_tile=TB, att_tile=TA)
    jax.block_until_ready((out, new_state))

    # Tolerance reflects bf16 matmul operands / bf16 feature storage vs the f32 reference.
    assert jnp.allclose(out, ref_out, atol=2e-2, rtol=2e-2), "attention output mismatch"
    assert jnp.allclose(new_state[0], ref_state[0], atol=2e-2, rtol=2e-2), "h state mismatch"
    assert jnp.allclose(new_state[1], ref_state[1], atol=2e-2, rtol=2e-2), "c state mismatch"

    print("KERNEL_OK")
</pallas_src>

<mosaic_0001>
module attributes {stable_mosaic.version = 11 : i64} {
  func.func @adaatt_core_kernel(%arg0: i32, %arg1: i32, %arg2: memref<16x32xbf16, #tpu.memory_space<vmem>>, %arg3: memref<16x32xbf16, #tpu.memory_space<vmem>>, %arg4: memref<2x16x32xf32, #tpu.memory_space<vmem>>, %arg5: memref<2x16x32xf32, #tpu.memory_space<vmem>>, %arg6: memref<16x16x32xbf16, #tpu.memory_space<vmem>>, %arg7: memref<16x16x32xbf16, #tpu.memory_space<vmem>>, %arg8: memref<96x128xbf16, #tpu.memory_space<vmem>>, %arg9: memref<1x128xf32, #tpu.memory_space<vmem>>, %arg10: memref<64x160xbf16, #tpu.memory_space<vmem>>, %arg11: memref<1x160xf32, #tpu.memory_space<vmem>>, %arg12: memref<32x32xbf16, #tpu.memory_space<vmem>>, %arg13: memref<1x32xf32, #tpu.memory_space<vmem>>, %arg14: memref<32x32xbf16, #tpu.memory_space<vmem>>, %arg15: memref<1x32xf32, #tpu.memory_space<vmem>>, %arg16: memref<32x32xbf16, #tpu.memory_space<vmem>>, %arg17: memref<1x32xf32, #tpu.memory_space<vmem>>, %arg18: memref<32x32xbf16, #tpu.memory_space<vmem>>, %arg19: memref<1x32xf32, #tpu.memory_space<vmem>>, %arg20: memref<32x1xbf16, #tpu.memory_space<vmem>>, %arg21: memref<32x32xbf16, #tpu.memory_space<vmem>>, %arg22: memref<1x32xf32, #tpu.memory_space<vmem>>, %arg23: memref<16x32xf32, #tpu.memory_space<vmem>>, %arg24: memref<2x16x32xf32, #tpu.memory_space<vmem>>, %arg25: memref<2x16x32xf32, #tpu.memory_space<vmem>>, %arg26: memref<16x32xf32, #tpu.memory_space<vmem>>, %arg27: memref<16x32xf32, #tpu.memory_space<vmem>>, %arg28: memref<16x1xf32, #tpu.memory_space<vmem>>, %arg29: memref<16x1xf32, #tpu.memory_space<vmem>>, %arg30: memref<16x32xf32, #tpu.memory_space<vmem>>) attributes {dimension_semantics = [#tpu.dimension_semantics<parallel>, #tpu.dimension_semantics<arbitrary>], iteration_bounds = array<i64: 2, 2>, scalar_prefetch = 0 : i64, scratch_operands = 5 : i64, tpu.core_type = #tpu.core_type<tc>, window_params = [{transform_indices = @transform_0, window_bounds = array<i64: 16, 32>}, {transform_indices = @transform_1, window_bounds = array<i64: 16, 32>}, {transform_indices = @transform_2, window_bounds = array<i64: 2, 16, 32>}, {transform_indices = @transform_3, window_bounds = array<i64: 2, 16, 32>}, {transform_indices = @transform_4, window_bounds = array<i64: 16, 16, 32>}, {transform_indices = @transform_5, window_bounds = array<i64: 16, 16, 32>}, {pipeline_mode = #tpu.pipeline_mode<synchronous>, transform_indices = @transform_6, window_bounds = array<i64: 96, 128>}, {pipeline_mode = #tpu.pipeline_mode<synchronous>, transform_indices = @transform_7, window_bounds = array<i64: 1, 128>}, {pipeline_mode = #tpu.pipeline_mode<synchronous>, transform_indices = @transform_8, window_bounds = array<i64: 64, 160>}, {pipeline_mode = #tpu.pipeline_mode<synchronous>, transform_indices = @transform_9, window_bounds = array<i64: 1, 160>}, {pipeline_mode = #tpu.pipeline_mode<synchronous>, transform_indices = @transform_10, window_bounds = array<i64: 32, 32>}, {pipeline_mode = #tpu.pipeline_mode<synchronous>, transform_indices = @transform_11, window_bounds = array<i64: 1, 32>}, {pipeline_mode = #tpu.pipeline_mode<synchronous>, transform_indices = @transform_12, window_bounds = array<i64: 32, 32>}, {pipeline_mode = #tpu.pipeline_mode<synchronous>, transform_indices = @transform_13, window_bounds = array<i64: 1, 32>}, {pipeline_mode = #tpu.pipeline_mode<synchronous>, transform_indices = @transform_14, window_bounds = array<i64: 32, 32>}, {pipeline_mode = #tpu.pipeline_mode<synchronous>, transform_indices = @transform_15, window_bounds = array<i64: 1, 32>}, {pipeline_mode = #tpu.pipeline_mode<synchronous>, transform_indices = @transform_16, window_bounds = array<i64: 32, 32>}, {pipeline_mode = #tpu.pipeline_mode<synchronous>, transform_indices = @transform_17, window_bounds = array<i64: 1, 32>}, {pipeline_mode = #tpu.pipeline_mode<synchronous>, transform_indices = @transform_18, window_bounds = array<i64: 32, 1>}, {pipeline_mode = #tpu.pipeline_mode<synchronous>, transform_indices = @transform_19, window_bounds = array<i64: 32, 32>}, {pipeline_mode = #tpu.pipeline_mode<synchronous>, transform_indices = @transform_20, window_bounds = array<i64: 1, 32>}, {transform_indices = @transform_21, window_bounds = array<i64: 16, 32>}, {transform_indices = @transform_22, window_bounds = array<i64: 2, 16, 32>}, {transform_indices = @transform_23, window_bounds = array<i64: 2, 16, 32>}]} {
    %c0_i32 = arith.constant 0 : i32
    %0 = arith.cmpi eq, %arg1, %c0_i32 : i32
    %1 = arith.extui %0 : i1 to i32
    %c0_i32_0 = arith.constant 0 : i32
    %2 = arith.cmpi ne, %1, %c0_i32_0 : i32
    scf.if %2 {
      %c0_26 = arith.constant 0 : index
      %c0_27 = arith.constant 0 : index
      %c0_28 = arith.constant 0 : index
      %45 = vector.load %arg4[%c0_26, %c0_27, %c0_28] : memref<2x16x32xf32, #tpu.memory_space<vmem>>, vector<1x16x32xf32>
      %46 = vector.shape_cast %45 : vector<1x16x32xf32> to vector<16x32xf32>
      %47 = arith.truncf %46 : vector<16x32xf32> to vector<16x32xbf16>
      %c1 = arith.constant 1 : index
      %c0_29 = arith.constant 0 : index
      %c0_30 = arith.constant 0 : index
      %48 = vector.load %arg4[%c1, %c0_29, %c0_30] : memref<2x16x32xf32, #tpu.memory_space<vmem>>, vector<1x16x32xf32>
      %49 = vector.shape_cast %48 : vector<1x16x32xf32> to vector<16x32xf32>
      %50 = arith.truncf %49 : vector<16x32xf32> to vector<16x32xbf16>
      %c0_31 = arith.constant 0 : index
      %c0_32 = arith.constant 0 : index
      %c0_33 = arith.constant 0 : index
      %51 = vector.load %arg5[%c0_31, %c0_32, %c0_33] : memref<2x16x32xf32, #tpu.memory_space<vmem>>, vector<1x16x32xf32>
      %52 = vector.shape_cast %51 : vector<1x16x32xf32> to vector<16x32xf32>
      %c1_34 = arith.constant 1 : index
      %c0_35 = arith.constant 0 : index
      %c0_36 = arith.constant 0 : index
      %53 = vector.load %arg5[%c1_34, %c0_35, %c0_36] : memref<2x16x32xf32, #tpu.memory_space<vmem>>, vector<1x16x32xf32>
      %54 = vector.shape_cast %53 : vector<1x16x32xf32> to vector<16x32xf32>
      %c0_37 = arith.constant 0 : index
      %c0_38 = arith.constant 0 : index
      %55 = vector.load %arg2[%c0_37, %c0_38] : memref<16x32xbf16, #tpu.memory_space<vmem>>, vector<16x32xbf16>
      %c0_39 = arith.constant 0 : index
      %c0_40 = arith.constant 0 : index
      %56 = vector.load %arg3[%c0_39, %c0_40] : memref<16x32xbf16, #tpu.memory_space<vmem>>, vector<16x32xbf16>
      %57 = tpu.concatenate %55, %56, %47 in 1 : vector<16x32xbf16>, vector<16x32xbf16>, vector<16x32xbf16> -> vector<16x96xbf16>
      %c0_41 = arith.constant 0 : index
      %c0_42 = arith.constant 0 : index
      %58 = vector.load %arg8[%c0_41, %c0_42] : memref<96x128xbf16, #tpu.memory_space<vmem>>, vector<96x128xbf16>
      %cst_43 = arith.constant dense<0.000000e+00> : vector<16x128xf32>
      %59 = tpu.matmul %57, %58, %cst_43 {dimension_numbers = #tpu.dot_dimension_numbers<[1], [0], [0], [1], [0, 0, 1, 1], [], []>} : vector<16x96xbf16>, vector<96x128xbf16>, vector<16x128xf32> -> vector<16x128xf32>
      %c0_44 = arith.constant 0 : index
      %c0_45 = arith.constant 0 : index
      %60 = vector.load %arg9[%c0_44, %c0_45] : memref<1x128xf32, #tpu.memory_space<vmem>>, vector<1x128xf32>
      %61 = vector.broadcast %60 : vector<1x128xf32> to vector<16x128xf32>
      %62 = arith.addf %59, %61 : vector<16x128xf32>
      %63 = vector.extract_strided_slice %62 {offsets = [0, 0], sizes = [16, 96], strides = [1, 1]} : vector<16x128xf32> to vector<16x96xf32>
      %64 = arith.negf %63 : vector<16x96xf32>
      %65 = math.exp %64 : vector<16x96xf32>
      %cst_46 = arith.constant 1.000000e+00 : f32
      %66 = vector.broadcast %cst_46 : f32 to vector<16x96xf32>
      %67 = arith.addf %66, %65 : vector<16x96xf32>
      %68 = arith.divf %66, %67 : vector<16x96xf32>
      %69 = vector.extract_strided_slice %68 {offsets = [0, 32], sizes = [16, 32], strides = [1, 1]} : vector<16x96xf32> to vector<16x32xf32>
      %70 = arith.mulf %69, %52 : vector<16x32xf32>
      %71 = vector.extract_strided_slice %68 {offsets = [0, 0], sizes = [16, 32], strides = [1, 1]} : vector<16x96xf32> to vector<16x32xf32>
      %72 = vector.extract_strided_slice %62 {offsets = [0, 96], sizes = [16, 32], strides = [1, 1]} : vector<16x128xf32> to vector<16x32xf32>
      %73 = math.tanh %72 : vector<16x32xf32>
      %74 = arith.mulf %71, %73 : vector<16x32xf32>
      %75 = arith.addf %70, %74 : vector<16x32xf32>
      %76 = vector.extract_strided_slice %68 {offsets = [0, 64], sizes = [16, 32], strides = [1, 1]} : vector<16x96xf32> to vector<16x32xf32>
      %77 = math.tanh %75 : vector<16x32xf32>
      %78 = arith.mulf %76, %77 : vector<16x32xf32>
      %79 = arith.truncf %78 : vector<16x32xf32> to vector<16x32xbf16>
      %80 = tpu.concatenate %79, %50 in 1 : vector<16x32xbf16>, vector<16x32xbf16> -> vector<16x64xbf16>
      %c0_47 = arith.constant 0 : index
      %c0_48 = arith.constant 0 : index
      %81 = vector.load %arg10[%c0_47, %c0_48] : memref<64x160xbf16, #tpu.memory_space<vmem>>, vector<64x160xbf16>
      %cst_49 = arith.constant dense<0.000000e+00> : vector<16x160xf32>
      %82 = tpu.matmul %80, %81, %cst_49 {dimension_numbers = #tpu.dot_dimension_numbers<[1], [0], [0], [1], [0, 0, 1, 1], [], []>} : vector<16x64xbf16>, vector<64x160xbf16>, vector<16x160xf32> -> vector<16x160xf32>
      %c0_50 = arith.constant 0 : index
      %c0_51 = arith.constant 0 : index
      %83 = vector.load %arg11[%c0_50, %c0_51] : memref<1x160xf32, #tpu.memory_space<vmem>>, vector<1x160xf32>
      %84 = vector.broadcast %83 : vector<1x160xf32> to vector<16x160xf32>
      %85 = arith.addf %82, %84 : vector<16x160xf32>
      %86 = vector.extract_strided_slice %85 {offsets = [0, 0], sizes = [16, 96], strides = [1, 1]} : vector<16x160xf32> to vector<16x96xf32>
      %87 = arith.negf %86 : vector<16x96xf32>
      %88 = math.exp %87 : vector<16x96xf32>
      %cst_52 = arith.constant 1.000000e+00 : f32
      %89 = vector.broadcast %cst_52 : f32 to vector<16x96xf32>
      %90 = arith.addf %89, %88 : vector<16x96xf32>
      %91 = arith.divf %89, %90 : vector<16x96xf32>
      %92 = vector.extract_strided_slice %91 {offsets = [0, 32], sizes = [16, 32], strides = [1, 1]} : vector<16x96xf32> to vector<16x32xf32>
      %93 = arith.mulf %92, %54 : vector<16x32xf32>
      %94 = vector.extract_strided_slice %91 {offsets = [0, 0], sizes = [16, 32], strides = [1, 1]} : vector<16x96xf32> to vector<16x32xf32>
      %95 = vector.extract_strided_slice %85 {offsets = [0, 96], sizes = [16, 32], strides = [1, 1]} : vector<16x160xf32> to vector<16x32xf32>
      %96 = math.tanh %95 : vector<16x32xf32>
      %97 = arith.mulf %94, %96 : vector<16x32xf32>
      %98 = arith.addf %93, %97 : vector<16x32xf32>
      %99 = math.tanh %98 : vector<16x32xf32>
      %100 = vector.extract_strided_slice %91 {offsets = [0, 64], sizes = [16, 32], strides = [1, 1]} : vector<16x96xf32> to vector<16x32xf32>
      %101 = arith.mulf %100, %99 : vector<16x32xf32>
      %102 = vector.extract_strided_slice %85 {offsets = [0, 128], sizes = [16, 32], strides = [1, 1]} : vector<16x160xf32> to vector<16x32xf32>
      %103 = arith.negf %102 : vector<16x32xf32>
      %104 = math.exp %103 : vector<16x32xf32>
      %cst_53 = arith.constant 1.000000e+00 : f32
      %105 = vector.broadcast %cst_53 : f32 to vector<16x32xf32>
      %106 = arith.addf %105, %104 : vector<16x32xf32>
      %107 = arith.divf %105, %106 : vector<16x32xf32>
      %108 = arith.mulf %107, %99 : vector<16x32xf32>
      %c0_54 = arith.constant 0 : index
      %c0_55 = arith.constant 0 : index
      %c0_56 = arith.constant 0 : index
      %109 = vector.load %arg24[%c0_54, %c0_55, %c0_56] : memref<2x16x32xf32, #tpu.memory_space<vmem>>, vector<1x16x32xf32>
      %110 = vector.shape_cast %109 : vector<1x16x32xf32> to vector<16x32xf32>
      %111 = vector.shape_cast %78 : vector<16x32xf32> to vector<1x16x32xf32>
      tpu.vector_store %arg24[%c0_54, %c0_55, %c0_56], %111 {strides = array<i32>} : memref<2x16x32xf32, #tpu.memory_space<vmem>>, vector<1x16x32xf32>,
      %c1_57 = arith.constant 1 : index
      %c0_58 = arith.constant 0 : index
      %c0_59 = arith.constant 0 : index
      %112 = vector.load %arg24[%c1_57, %c0_58, %c0_59] : memref<2x16x32xf32, #tpu.memory_space<vmem>>, vector<1x16x32xf32>
      %113 = vector.shape_cast %112 : vector<1x16x32xf32> to vector<16x32xf32>
      %114 = vector.shape_cast %101 : vector<16x32xf32> to vector<1x16x32xf32>
      tpu.vector_store %arg24[%c1_57, %c0_58, %c0_59], %114 {strides = array<i32>} : memref<2x16x32xf32, #tpu.memory_space<vmem>>, vector<1x16x32xf32>,
      %c0_60 = arith.constant 0 : index
      %c0_61 = arith.constant 0 : index
      %c0_62 = arith.constant 0 : index
      %115 = vector.load %arg25[%c0_60, %c0_61, %c0_62] : memref<2x16x32xf32, #tpu.memory_space<vmem>>, vector<1x16x32xf32>
      %116 = vector.shape_cast %115 : vector<1x16x32xf32> to vector<16x32xf32>
      %117 = vector.shape_cast %75 : vector<16x32xf32> to vector<1x16x32xf32>
      tpu.vector_store %arg25[%c0_60, %c0_61, %c0_62], %117 {strides = array<i32>} : memref<2x16x32xf32, #tpu.memory_space<vmem>>, vector<1x16x32xf32>,
      %c1_63 = arith.constant 1 : index
      %c0_64 = arith.constant 0 : index
      %c0_65 = arith.constant 0 : index
      %118 = vector.load %arg25[%c1_63, %c0_64, %c0_65] : memref<2x16x32xf32, #tpu.memory_space<vmem>>, vector<1x16x32xf32>
      %119 = vector.shape_cast %118 : vector<1x16x32xf32> to vector<16x32xf32>
      %120 = vector.shape_cast %98 : vector<16x32xf32> to vector<1x16x32xf32>
      tpu.vector_store %arg25[%c1_63, %c0_64, %c0_65], %120 {strides = array<i32>} : memref<2x16x32xf32, #tpu.memory_space<vmem>>, vector<1x16x32xf32>,
      %121 = arith.truncf %108 : vector<16x32xf32> to vector<16x32xbf16>
      %c0_66 = arith.constant 0 : index
      %c0_67 = arith.constant 0 : index
      %122 = vector.load %arg12[%c0_66, %c0_67] : memref<32x32xbf16, #tpu.memory_space<vmem>>, vector<32x32xbf16>
      %cst_68 = arith.constant dense<0.000000e+00> : vector<16x32xf32>
      %123 = tpu.matmul %121, %122, %cst_68 {dimension_numbers = #tpu.dot_dimension_numbers<[1], [0], [0], [1], [0, 0, 1, 1], [], []>} : vector<16x32xbf16>, vector<32x32xbf16>, vector<16x32xf32> -> vector<16x32xf32>
      %c0_69 = arith.constant 0 : index
      %c0_70 = arith.constant 0 : index
      %124 = vector.load %arg13[%c0_69, %c0_70] : memref<1x32xf32, #tpu.memory_space<vmem>>, vector<1x32xf32>
      %125 = vector.broadcast %124 : vector<1x32xf32> to vector<16x32xf32>
      %126 = arith.addf %123, %125 : vector<16x32xf32>
      %cst_71 = arith.constant 0.000000e+00 : f32
      %127 = vector.broadcast %cst_71 : f32 to vector<16x32xf32>
      %128 = arith.maximumf %126, %127 : vector<16x32xf32>
      %129 = arith.truncf %128 : vector<16x32xf32> to vector<16x32xbf16>
      %c0_72 = arith.constant 0 : index
      %c0_73 = arith.constant 0 : index
      %130 = vector.load %arg14[%c0_72, %c0_73] : memref<32x32xbf16, #tpu.memory_space<vmem>>, vector<32x32xbf16>
      %cst_74 = arith.constant dense<0.000000e+00> : vector<16x32xf32>
      %131 = tpu.matmul %129, %130, %cst_74 {dimension_numbers = #tpu.dot_dimension_numbers<[1], [0], [0], [1], [0, 0, 1, 1], [], []>} : vector<16x32xbf16>, vector<32x32xbf16>, vector<16x32xf32> -> vector<16x32xf32>
      %c0_75 = arith.constant 0 : index
      %c0_76 = arith.constant 0 : index
      %132 = vector.load %arg15[%c0_75, %c0_76] : memref<1x32xf32, #tpu.memory_space<vmem>>, vector<1x32xf32>
      %133 = vector.broadcast %132 : vector<1x32xf32> to vector<16x32xf32>
      %134 = arith.addf %131, %133 : vector<16x32xf32>
      %135 = arith.truncf %101 : vector<16x32xf32> to vector<16x32xbf16>
      %c0_77 = arith.constant 0 : index
      %c0_78 = arith.constant 0 : index
      %136 = vector.load %arg16[%c0_77, %c0_78] : memref<32x32xbf16, #tpu.memory_space<vmem>>, vector<32x32xbf16>
      %cst_79 = arith.constant dense<0.000000e+00> : vector<16x32xf32>
      %137 = tpu.matmul %135, %136, %cst_79 {dimension_numbers = #tpu.dot_dimension_numbers<[1], [0], [0], [1], [0, 0, 1, 1], [], []>} : vector<16x32xbf16>, vector<32x32xbf16>, vector<16x32xf32> -> vector<16x32xf32>
      %c0_80 = arith.constant 0 : index
      %c0_81 = arith.constant 0 : index
      %138 = vector.load %arg17[%c0_80, %c0_81] : memref<1x32xf32, #tpu.memory_space<vmem>>, vector<1x32xf32>
      %139 = vector.broadcast %138 : vector<1x32xf32> to vector<16x32xf32>
      %140 = arith.addf %137, %139 : vector<16x32xf32>
      %141 = math.tanh %140 : vector<16x32xf32>
      %142 = arith.truncf %141 : vector<16x32xf32> to vector<16x32xbf16>
      %c0_82 = arith.constant 0 : index
      %c0_83 = arith.constant 0 : index
      %143 = vector.load %arg18[%c0_82, %c0_83] : memref<32x32xbf16, #tpu.memory_space<vmem>>, vector<32x32xbf16>
      %cst_84 = arith.constant dense<0.000000e+00> : vector<16x32xf32>
      %144 = tpu.matmul %142, %143, %cst_84 {dimension_numbers = #tpu.dot_dimension_numbers<[1], [0], [0], [1], [0, 0, 1, 1], [], []>} : vector<16x32xbf16>, vector<32x32xbf16>, vector<16x32xf32> -> vector<16x32xf32>
      %c0_85 = arith.constant 0 : index
      %c0_86 = arith.constant 0 : index
      %145 = vector.load %arg19[%c0_85, %c0_86] : memref<1x32xf32, #tpu.memory_space<vmem>>, vector<1x32xf32>
      %146 = vector.broadcast %145 : vector<1x32xf32> to vector<16x32xf32>
      %147 = arith.addf %144, %146 : vector<16x32xf32>
      %c0_87 = arith.constant 0 : index
      %c0_88 = arith.constant 0 : index
      %148 = vector.load %arg26[%c0_87, %c0_88] : memref<16x32xf32, #tpu.memory_space<vmem>>, vector<16x32xf32>
      tpu.vector_store %arg26[%c0_87, %c0_88], %141 {strides = array<i32>} : memref<16x32xf32, #tpu.memory_space<vmem>>, vector<16x32xf32>,
      %c0_89 = arith.constant 0 : index
      %c0_90 = arith.constant 0 : index
      %149 = vector.load %arg27[%c0_89, %c0_90] : memref<16x32xf32, #tpu.memory_space<vmem>>, vector<16x32xf32>
      tpu.vector_store %arg27[%c0_89, %c0_90], %147 {strides = array<i32>} : memref<16x32xf32, #tpu.memory_space<vmem>>, vector<16x32xf32>,
      %150 = arith.addf %134, %147 : vector<16x32xf32>
      %151 = math.tanh %150 : vector<16x32xf32>
      %152 = arith.truncf %151 : vector<16x32xf32> to vector<16x32xbf16>
      %c0_91 = arith.constant 0 : index
      %c0_92 = arith.constant 0 : index
      %153 = vector.load %arg20[%c0_91, %c0_92] : memref<32x1xbf16, #tpu.memory_space<vmem>>, vector<32x1xbf16>
      %cst_93 = arith.constant dense<0.000000e+00> : vector<16x1xf32>
      %154 = tpu.matmul %152, %153, %cst_93 {dimension_numbers = #tpu.dot_dimension_numbers<[1], [0], [0], [1], [0, 0, 1, 1], [], []>} : vector<16x32xbf16>, vector<32x1xbf16>, vector<16x1xf32> -> vector<16x1xf32>
      %c0_94 = arith.constant 0 : index
      %c0_95 = arith.constant 0 : index
      %155 = vector.load %arg28[%c0_94, %c0_95] : memref<16x1xf32, #tpu.memory_space<vmem>>, vector<16x1xf32>
      tpu.vector_store %arg28[%c0_94, %c0_95], %154 {strides = array<i32>} : memref<16x1xf32, #tpu.memory_space<vmem>>, vector<16x1xf32>,
      %cst_96 = arith.constant 1.000000e+00 : f32
      %156 = vector.broadcast %cst_96 : f32 to vector<16x1xf32>
      %c0_97 = arith.constant 0 : index
      %c0_98 = arith.constant 0 : index
      %157 = vector.load %arg29[%c0_97, %c0_98] : memref<16x1xf32, #tpu.memory_space<vmem>>, vector<16x1xf32>
      tpu.vector_store %arg29[%c0_97, %c0_98], %156 {strides = array<i32>} : memref<16x1xf32, #tpu.memory_space<vmem>>, vector<16x1xf32>,
      %c0_99 = arith.constant 0 : index
      %c0_100 = arith.constant 0 : index
      %158 = vector.load %arg30[%c0_99, %c0_100] : memref<16x32xf32, #tpu.memory_space<vmem>>, vector<16x32xf32>
      tpu.vector_store %arg30[%c0_99, %c0_100], %128 {strides = array<i32>} : memref<16x32xf32, #tpu.memory_space<vmem>>, vector<16x32xf32>,
    } else {
    }
    %c0 = arith.constant 0 : index
    %c0_1 = arith.constant 0 : index
    %3 = vector.load %arg27[%c0, %c0_1] : memref<16x32xf32, #tpu.memory_space<vmem>>, vector<16x32xf32>
    %c0_2 = arith.constant 0 : index
    %c0_3 = arith.constant 0 : index
    %c0_4 = arith.constant 0 : index
    %4 = vector.load %arg7[%c0_2, %c0_3, %c0_4] : memref<16x16x32xbf16, #tpu.memory_space<vmem>>, vector<16x16x32xbf16>
    %5 = arith.extf %4 : vector<16x16x32xbf16> to vector<16x16x32xf32>
    %6 = vector.shape_cast %3 : vector<16x32xf32> to vector<16x1x32xf32>
    %7 = vector.broadcast %6 : vector<16x1x32xf32> to vector<16x16x32xf32>
    %8 = arith.addf %5, %7 : vector<16x16x32xf32>
    %9 = math.tanh %8 : vector<16x16x32xf32>
    %10 = vector.shape_cast %9 : vector<16x16x32xf32> to vector<256x32xf32>
    %11 = arith.truncf %10 : vector<256x32xf32> to vector<256x32xbf16>
    %c0_5 = arith.constant 0 : index
    %c0_6 = arith.constant 0 : index
    %12 = vector.load %arg20[%c0_5, %c0_6] : memref<32x1xbf16, #tpu.memory_space<vmem>>, vector<32x1xbf16>
    %cst = arith.constant dense<0.000000e+00> : vector<256x1xf32>
    %13 = tpu.matmul %11, %12, %cst {dimension_numbers = #tpu.dot_dimension_numbers<[1], [0], [0], [1], [0, 0, 1, 1], [], []>} : vector<256x32xbf16>, vector<32x1xbf16>, vector<256x1xf32> -> vector<256x1xf32>
    %14 = vector.shape_cast %13 : vector<256x1xf32> to vector<16x16xf32>
    %c0_7 = arith.constant 0 : index
    %c0_8 = arith.constant 0 : index
    %15 = vector.load %arg28[%c0_7, %c0_8] : memref<16x1xf32, #tpu.memory_space<vmem>>, vector<16x1xf32>
    %c0_9 = arith.constant 0 : index
    %c0_10 = arith.constant 0 : index
    %16 = vector.load %arg29[%c0_9, %c0_10] : memref<16x1xf32, #tpu.memory_space<vmem>>, vector<16x1xf32>
    %c0_11 = arith.constant 0 : index
    %c0_12 = arith.constant 0 : index
    %17 = vector.load %arg30[%c0_11, %c0_12] : memref<16x32xf32, #tpu.memory_space<vmem>>, vector<16x32xf32>
    %cst_13 = arith.constant dense<0xFF800000> : vector<16xf32>
    %18 = vector.multi_reduction <maximumf>, %14, %cst_13 [1] : vector<16x16xf32> to vector<16xf32>
    %19 = vector.shape_cast %18 : vector<16xf32> to vector<16x1xf32>
    %20 = arith.maximumf %15, %19 : vector<16x1xf32>
    %21 = arith.subf %15, %20 : vector<16x1xf32>
    %22 = math.exp %21 : vector<16x1xf32>
    %23 = vector.broadcast %20 : vector<16x1xf32> to vector<16x16xf32>
    %24 = arith.subf %14, %23 : vector<16x16xf32>
    %25 = math.exp %24 : vector<16x16xf32>
    %26 = arith.mulf %16, %22 : vector<16x1xf32>
    %cst_14 = arith.constant dense<0.000000e+00> : vector<16xf32>
    %27 = vector.multi_reduction <add>, %25, %cst_14 [1] : vector<16x16xf32> to vector<16xf32>
    %28 = vector.shape_cast %27 : vector<16xf32> to vector<16x1xf32>
    %29 = arith.addf %26, %28 : vector<16x1xf32>
    %c0_15 = arith.constant 0 : index
    %c0_16 = arith.constant 0 : index
    %30 = vector.load %arg29[%c0_15, %c0_16] : memref<16x1xf32, #tpu.memory_space<vmem>>, vector<16x1xf32>
    tpu.vector_store %arg29[%c0_15, %c0_16], %29 {strides = array<i32>} : memref<16x1xf32, #tpu.memory_space<vmem>>, vector<16x1xf32>,
    %31 = vector.shape_cast %25 : vector<16x16xf32> to vector<16x16x1xf32>
    %c0_17 = arith.constant 0 : index
    %c0_18 = arith.constant 0 : index
    %c0_19 = arith.constant 0 : index
    %32 = vector.load %arg6[%c0_17, %c0_18, %c0_19] : memref<16x16x32xbf16, #tpu.memory_space<vmem>>, vector<16x16x32xbf16>
    %33 = arith.extf %32 : vector<16x16x32xbf16> to vector<16x16x32xf32>
    %34 = vector.broadcast %31 : vector<16x16x1xf32> to vector<16x16x32xf32>
    %35 = arith.mulf %34, %33 : vector<16x16x32xf32>
    %cst_20 = arith.constant dense<0.000000e+00> : vector<16x32xf32>
    %36 = vector.multi_reduction <add>, %35, %cst_20 [1] : vector<16x16x32xf32> to vector<16x32xf32>
    %37 = vector.broadcast %22 : vector<16x1xf32> to vector<16x32xf32>
    %38 = arith.mulf %17, %37 : vector<16x32xf32>
    %39 = arith.addf %38, %36 : vector<16x32xf32>
    %c0_21 = arith.constant 0 : index
    %c0_22 = arith.constant 0 : index
    %40 = vector.load %arg30[%c0_21, %c0_22] : memref<16x32xf32, #tpu.memory_space<vmem>>, vector<16x32xf32>
    tpu.vector_store %arg30[%c0_21, %c0_22], %39 {strides = array<i32>} : memref<16x32xf32, #tpu.memory_space<vmem>>, vector<16x32xf32>,
    %c0_23 = arith.constant 0 : index
    %c0_24 = arith.constant 0 : index
    %41 = vector.load %arg28[%c0_23, %c0_24] : memref<16x1xf32, #tpu.memory_space<vmem>>, vector<16x1xf32>
    tpu.vector_store %arg28[%c0_23, %c0_24], %20 {strides = array<i32>} : memref<16x1xf32, #tpu.memory_space<vmem>>, vector<16x1xf32>,
    %c1_i32 = arith.constant 1 : i32
    %42 = arith.cmpi eq, %arg1, %c1_i32 : i32
    %43 = arith.extui %42 : i1 to i32
    %c0_i32_25 = arith.constant 0 : i32
    %44 = arith.cmpi ne, %43, %c0_i32_25 : i32
    scf.if %44 {
      %c0_26 = arith.constant 0 : index
      %c0_27 = arith.constant 0 : index
      %45 = vector.load %arg30[%c0_26, %c0_27] : memref<16x32xf32, #tpu.memory_space<vmem>>, vector<16x32xf32>
      %c0_28 = arith.constant 0 : index
      %c0_29 = arith.constant 0 : index
      %46 = vector.load %arg29[%c0_28, %c0_29] : memref<16x1xf32, #tpu.memory_space<vmem>>, vector<16x1xf32>
      %47 = vector.broadcast %46 : vector<16x1xf32> to vector<16x32xf32>
      %48 = arith.divf %45, %47 : vector<16x32xf32>
      %c0_30 = arith.constant 0 : index
      %c0_31 = arith.constant 0 : index
      %49 = vector.load %arg26[%c0_30, %c0_31] : memref<16x32xf32, #tpu.memory_space<vmem>>, vector<16x32xf32>
      %50 = arith.addf %48, %49 : vector<16x32xf32>
      %51 = arith.truncf %50 : vector<16x32xf32> to vector<16x32xbf16>
      %c0_32 = arith.constant 0 : index
      %c0_33 = arith.constant 0 : index
      %52 = vector.load %arg21[%c0_32, %c0_33] : memref<32x32xbf16, #tpu.memory_space<vmem>>, vector<32x32xbf16>
      %cst_34 = arith.constant dense<0.000000e+00> : vector<16x32xf32>
      %53 = tpu.matmul %51, %52, %cst_34 {dimension_numbers = #tpu.dot_dimension_numbers<[1], [0], [0], [1], [0, 0, 1, 1], [], []>} : vector<16x32xbf16>, vector<32x32xbf16>, vector<16x32xf32> -> vector<16x32xf32>
      %c0_35 = arith.constant 0 : index
      %c0_36 = arith.constant 0 : index
      %54 = vector.load %arg22[%c0_35, %c0_36] : memref<1x32xf32, #tpu.memory_space<vmem>>, vector<1x32xf32>
      %55 = vector.broadcast %54 : vector<1x32xf32> to vector<16x32xf32>
      %56 = arith.addf %53, %55 : vector<16x32xf32>
      %57 = math.tanh %56 : vector<16x32xf32>
      %c0_37 = arith.constant 0 : index
      %c0_38 = arith.constant 0 : index
      %58 = vector.load %arg23[%c0_37, %c0_38] : memref<16x32xf32, #tpu.memory_space<vmem>>, vector<16x32xf32>
      tpu.vector_store %arg23[%c0_37, %c0_38], %57 {strides = array<i32>} : memref<16x32xf32, #tpu.memory_space<vmem>>, vector<16x32xf32>,
    } else {
    }
    return
  }
  func.func @transform_0(%arg0: i32, %arg1: i32) -> (i32, i32) {
    %c0_i32 = arith.constant 0 : i32
    %c0_i32_0 = arith.constant 0 : i32
    return %arg0, %c0_i32 : i32, i32
  }
  func.func @transform_1(%arg0: i32, %arg1: i32) -> (i32, i32) {
    %c0_i32 = arith.constant 0 : i32
    %c0_i32_0 = arith.constant 0 : i32
    return %arg0, %c0_i32 : i32, i32
  }
  func.func @transform_2(%arg0: i32, %arg1: i32) -> (i32, i32, i32) {
    %c0_i32 = arith.constant 0 : i32
    %c0_i32_0 = arith.constant 0 : i32
    %c0_i32_1 = arith.constant 0 : i32
    return %c0_i32, %arg0, %c0_i32_0 : i32, i32, i32
  }
  func.func @transform_3(%arg0: i32, %arg1: i32) -> (i32, i32, i32) {
    %c0_i32 = arith.constant 0 : i32
    %c0_i32_0 = arith.constant 0 : i32
    %c0_i32_1 = arith.constant 0 : i32
    return %c0_i32, %arg0, %c0_i32_0 : i32, i32, i32
  }
  func.func @transform_4(%arg0: i32, %arg1: i32) -> (i32, i32, i32) {
    %c0_i32 = arith.constant 0 : i32
    %c0_i32_0 = arith.constant 0 : i32
    return %arg0, %arg1, %c0_i32 : i32, i32, i32
  }
  func.func @transform_5(%arg0: i32, %arg1: i32) -> (i32, i32, i32) {
    %c0_i32 = arith.constant 0 : i32
    %c0_i32_0 = arith.constant 0 : i32
    return %arg0, %arg1, %c0_i32 : i32, i32, i32
  }
  func.func @transform_6(%arg0: i32, %arg1: i32) -> (i32, i32) {
    %c0_i32 = arith.constant 0 : i32
    %c0_i32_0 = arith.constant 0 : i32
    %c0_i32_1 = arith.constant 0 : i32
    return %c0_i32, %c0_i32_0 : i32, i32
  }
  func.func @transform_7(%arg0: i32, %arg1: i32) -> (i32, i32) {
    %c0_i32 = arith.constant 0 : i32
    %c0_i32_0 = arith.constant 0 : i32
    %c0_i32_1 = arith.constant 0 : i32
    return %c0_i32, %c0_i32_0 : i32, i32
  }
  func.func @transform_8(%arg0: i32, %arg1: i32) -> (i32, i32) {
    %c0_i32 = arith.constant 0 : i32
    %c0_i32_0 = arith.constant 0 : i32
    %c0_i32_1 = arith.constant 0 : i32
    return %c0_i32, %c0_i32_0 : i32, i32
  }
  func.func @transform_9(%arg0: i32, %arg1: i32) -> (i32, i32) {
    %c0_i32 = arith.constant 0 : i32
    %c0_i32_0 = arith.constant 0 : i32
    %c0_i32_1 = arith.constant 0 : i32
    return %c0_i32, %c0_i32_0 : i32, i32
  }
  func.func @transform_10(%arg0: i32, %arg1: i32) -> (i32, i32) {
    %c0_i32 = arith.constant 0 : i32
    %c0_i32_0 = arith.constant 0 : i32
    %c0_i32_1 = arith.constant 0 : i32
    return %c0_i32, %c0_i32_0 : i32, i32
  }
  func.func @transform_11(%arg0: i32, %arg1: i32) -> (i32, i32) {
    %c0_i32 = arith.constant 0 : i32
    %c0_i32_0 = arith.constant 0 : i32
    %c0_i32_1 = arith.constant 0 : i32
    return %c0_i32, %c0_i32_0 : i32, i32
  }
  func.func @transform_12(%arg0: i32, %arg1: i32) -> (i32, i32) {
    %c0_i32 = arith.constant 0 : i32
    %c0_i32_0 = arith.constant 0 : i32
    %c0_i32_1 = arith.constant 0 : i32
    return %c0_i32, %c0_i32_0 : i32, i32
  }
  func.func @transform_13(%arg0: i32, %arg1: i32) -> (i32, i32) {
    %c0_i32 = arith.constant 0 : i32
    %c0_i32_0 = arith.constant 0 : i32
    %c0_i32_1 = arith.constant 0 : i32
    return %c0_i32, %c0_i32_0 : i32, i32
  }
  func.func @transform_14(%arg0: i32, %arg1: i32) -> (i32, i32) {
    %c0_i32 = arith.constant 0 : i32
    %c0_i32_0 = arith.constant 0 : i32
    %c0_i32_1 = arith.constant 0 : i32
    return %c0_i32, %c0_i32_0 : i32, i32
  }
  func.func @transform_15(%arg0: i32, %arg1: i32) -> (i32, i32) {
    %c0_i32 = arith.constant 0 : i32
    %c0_i32_0 = arith.constant 0 : i32
    %c0_i32_1 = arith.constant 0 : i32
    return %c0_i32, %c0_i32_0 : i32, i32
  }
  func.func @transform_16(%arg0: i32, %arg1: i32) -> (i32, i32) {
    %c0_i32 = arith.constant 0 : i32
    %c0_i32_0 = arith.constant 0 : i32
    %c0_i32_1 = arith.constant 0 : i32
    return %c0_i32, %c0_i32_0 : i32, i32
  }
  func.func @transform_17(%arg0: i32, %arg1: i32) -> (i32, i32) {
    %c0_i32 = arith.constant 0 : i32
    %c0_i32_0 = arith.constant 0 : i32
    %c0_i32_1 = arith.constant 0 : i32
    return %c0_i32, %c0_i32_0 : i32, i32
  }
  func.func @transform_18(%arg0: i32, %arg1: i32) -> (i32, i32) {
    %c0_i32 = arith.constant 0 : i32
    %c0_i32_0 = arith.constant 0 : i32
    %c0_i32_1 = arith.constant 0 : i32
    return %c0_i32, %c0_i32_0 : i32, i32
  }
  func.func @transform_19(%arg0: i32, %arg1: i32) -> (i32, i32) {
    %c0_i32 = arith.constant 0 : i32
    %c0_i32_0 = arith.constant 0 : i32
    %c0_i32_1 = arith.constant 0 : i32
    return %c0_i32, %c0_i32_0 : i32, i32
  }
  func.func @transform_20(%arg0: i32, %arg1: i32) -> (i32, i32) {
    %c0_i32 = arith.constant 0 : i32
    %c0_i32_0 = arith.constant 0 : i32
    %c0_i32_1 = arith.constant 0 : i32
    return %c0_i32, %c0_i32_0 : i32, i32
  }
  func.func @transform_21(%arg0: i32, %arg1: i32) -> (i32, i32) {
    %c0_i32 = arith.constant 0 : i32
    %c0_i32_0 = arith.constant 0 : i32
    return %arg0, %c0_i32 : i32, i32
  }
  func.func @transform_22(%arg0: i32, %arg1: i32) -> (i32, i32, i32) {
    %c0_i32 = arith.constant 0 : i32
    %c0_i32_0 = arith.constant 0 : i32
    %c0_i32_1 = arith.constant 0 : i32
    return %c0_i32, %arg0, %c0_i32_0 : i32, i32, i32
  }
  func.func @transform_23(%arg0: i32, %arg1: i32) -> (i32, i32, i32) {
    %c0_i32 = arith.constant 0 : i32
    %c0_i32_0 = arith.constant 0 : i32
    %c0_i32_1 = arith.constant 0 : i32
    return %c0_i32, %arg0, %c0_i32_0 : i32, i32, i32
  }
}

</mosaic_0001>

<bundles_post_ra>
// kernel: tpu_custom_call.1
= control target key start
LH: loop header
LB: loop body
LE: loop exit
PB: predicated region body
PF: predicated region fallthrough
CT: control target
= control target key end

     0   :  { %s6061_s0 = inlined_call_operand.vmem [shape: bf16[32,32], index: 0, kind: input, shape index: {}]   ;;  %s6062_s1 = inlined_call_operand.vmem [shape: bf16[32,32], index: 1, kind: input, shape index: {}]   ;;  %s6063_s2 = inlined_call_operand.hbm [shape: f32[2,32,32], index: 2, kind: input, shape index: {}, may-alias: {2,22}]   ;;  %s6064_s3 = inlined_call_operand.hbm [shape: f32[2,32,32], index: 3, kind: input, shape index: {}, may-alias: {3,23}]   ;;  %s6065_s4 = inlined_call_operand.hbm [shape: bf16[32,32,32], index: 4, kind: input, shape index: {}]   ;;  %s6066_s5 = inlined_call_operand.hbm [shape: bf16[32,32,32], index: 5, kind: input, shape index: {}]   ;;  %s6067_s6 = inlined_call_operand.vmem [shape: bf16[96,128], index: 6, kind: input, shape index: {}]   ;;  %s6068_s7 = inlined_call_operand.vmem [shape: f32[1,128], index: 7, kind: input, shape index: {}]   ;;  %s6069_s8 = inlined_call_operand.vmem [shape: bf16[64,160], index: 8, kind: input, shape index: {}]   ;;  %s6070_s9 = inlined_call_operand.vmem [shape: f32[1,160], index: 9, kind: input, shape index: {}]   ;;  %s6071_s10 = inlined_call_operand.vmem [shape: bf16[32,32], index: 10, kind: input, shape index: {}]   ;;  %s6072_s11 = inlined_call_operand.vmem [shape: f32[1,32], index: 11, kind: input, shape index: {}]   ;;  %s6073_s12 = inlined_call_operand.vmem [shape: bf16[32,32], index: 12, kind: input, shape index: {}]   ;;  %s6074_s13 = inlined_call_operand.vmem [shape: f32[1,32], index: 13, kind: input, shape index: {}]   ;;  %s6075_s14 = inlined_call_operand.vmem [shape: bf16[32,32], index: 14, kind: input, shape index: {}]   ;;  %s6076_s15 = inlined_call_operand.hbm [shape: f32[1,32], index: 15, kind: input, shape index: {}]   ;;  %s6077_s16 = inlined_call_operand.vmem [shape: bf16[32,32], index: 16, kind: input, shape index: {}]   ;;  %s6078_s17 = inlined_call_operand.hbm [shape: f32[1,32], index: 17, kind: input, shape index: {}]   ;;  %s6079_s18 = inlined_call_operand.vmem [shape: bf16[32,1], index: 18, kind: input, shape index: {}]   ;;  %s6080_s19 = inlined_call_operand.hbm [shape: bf16[32,32], index: 19, kind: input, shape index: {}]   ;;  %s6081_s20 = inlined_call_operand.hbm [shape: f32[1,32], index: 20, kind: input, shape index: {}]   ;;  %s6082_s21 = inlined_call_operand.hbm [shape: f32[32,32], index: 21, kind: output, shape index: {0}]   ;;  %s6083_s22 = inlined_call_operand.hbm [shape: f32[2,32,32], index: 22, kind: output, shape index: {1}, may-alias: {2,22}]   ;;  %s6084_s23 = inlined_call_operand.hbm [shape: f32[2,32,32], index: 23, kind: output, shape index: {2}, may-alias: {3,23}]  }
   0x1   :  { %6117 = sst [smem:[#allocation64_spill]] %s6061_s0 }
   0x2   :  { %6118 = sst [smem:[#allocation65_spill]] %s6062_s1 }
   0x3   :  { %6119 = sst [smem:[#allocation66_spill]] %s6063_s2 }
   0x4   :  { %6120 = sst [smem:[#allocation67_spill]] %s6064_s3 }
   0x5   :  { %6121 = sst [smem:[#allocation68_spill]] %s6065_s4 }
   0x6   :  { %6122 = sst [smem:[#allocation69_spill]] %s6066_s5 }
   0x7   :  { %6123 = sst [smem:[#allocation70_spill]] %s6067_s6 }
   0x8   :  { %6124 = sst [smem:[#allocation71_spill]] %s6068_s7 }
   0x9   :  { %6125 = sst [smem:[#allocation72_spill]] %s6069_s8 }
   0xa   :  { %6126 = sst [smem:[#allocation73_spill]] %s6070_s9 }
   0xb   :  { %6127 = sst [smem:[#allocation74_spill]] %s6071_s10 }
   0xc   :  { %6128 = sst [smem:[#allocation75_spill]] %s6072_s11 }
   0xd   :  { %6129 = sst [smem:[#allocation76_spill]] %s6073_s12 }
   0xe   :  { %6130 = sst [smem:[#allocation77_spill]] %s6074_s13 }
   0xf   :  { %6131 = sst [smem:[#allocation78_spill]] %s6075_s14 }
  0x10   :  { %6132 = sst [smem:[#allocation79_spill]] %s6076_s15 }
  0x11   :  { %6133 = sst [smem:[#allocation80_spill]] %s6077_s16 }
  0x12   :  { %6134 = sst [smem:[#allocation81_spill]] %s6078_s17 }
  0x13   :  { %6135 = sst [smem:[#allocation82_spill]] %s6079_s18 }
  0x14   :  { %6136 = sst [smem:[#allocation83_spill]] %s6080_s19 }
  0x15   :  { %6137 = sst [smem:[#allocation84_spill]] %s6082_s21 }
  0x16   :  { %6138 = sst [smem:[#allocation85_spill]] %s6083_s22 }
  0x17   :  { %6139 = sst [smem:[#allocation86_spill]] %s6084_s23 }
  0x18   :  { %29 = vsyncpa [#allocation8], 0 }
  0x19   :  { %31 = vsyncpa [#allocation8 + $0x1], 0 }
  0x1a   :  { %32 = vsyncpa [#allocation11], 0 }
  0x1b   :  { %34 = vsyncpa [#allocation11 + $0x1], 0 }
  0x1c   :  { %35 = vsyncpa [#allocation14], 0 }
  0x1d   :  { %37 = vsyncpa [#allocation14 + $0x1], 0 }
  0x1e   :  { %38 = vsyncpa [#allocation17], 0 }
  0x1f   :  { %39 = vsyncpa [#allocation20], 0 }
  0x20   :  { %40 = vsyncpa [#allocation9], 0 }
  0x21   :  { %42 = vsyncpa [#allocation9 + $0x1], 0 }
  0x22   :  { %43 = vsyncpa [#allocation23], 0 }
  0x23   :  { %45 = vsyncpa [#allocation23 + $0x1], 0  ;;  %s4809_s4 = smov 0   ;;  %s4811_s30 = smov 0  }
  0x24   :  { %s4813_s24 = smov 0   ;;  %s4815_s25 = smov 0  }
  0x25   :  { %s4817_s5 = smov 0   ;;  %s4819_s1 = smov 0  }
  0x26   :  { %s4821_s26 = smov 0   ;;  %s4823_s2 = smov 0  }
  0x27   :  { %s4825_s6 = smov 0   ;;  %s4827_s27 = smov 0  }
  0x28   :  { %s4829_s7 = smov 0  }
  0x29 LB: > { %6140 = sst [smem:[#allocation50_spill]] %s4607_s25  ;;  %s4865_s28 = sadd.s32 4294967295, %s4635_s7   ;;  %s4635_s7 = sphi %s4829_s7, %s51_s7   ;;  %s4631_s27 = sphi %s4827_s27, %s6218_s27   ;;  %s4627_s6 = sphi %s4825_s6, %s6217_s6   ;;  %s4623_s2 = sphi %s4823_s2, %s6216_s2   ;;  %s4619_s26 = sphi %s4821_s26, %s6215_s26   ;;  %s4615_s1 = sphi %s4819_s1, %s6214_s1   ;;  %s4611_s5 = sphi %s4817_s5, %s6213_s5   ;;  %s4607_s25 = sphi %s4815_s25, %s6212_s25   ;;  %s4603_s24 = sphi %s4813_s24, %s6211_s24   ;;  %s4599_s30 = sphi %s4811_s30, %s6210_s30   ;;  %s4595_s4 = sphi %s4809_s4, %s6209_s4  }
  0x2a   : > { %s60_s3 = sadd.s32 1, %s4627_s6  ;;  %s63_s0 = sadd.s32 1, %s4631_s27 }
  0x2b   : > { %p61_p0 = scmp.ge.s32.totalorder %s60_s3, 2  ;;  %s122_s23 = sadd.s32 1, %s4615_s1 }
  0x2c   : > { %p129_p1 = scmp.ne.s32.totalorder %s4615_s1, %s4611_s5  ;;  %p130_p2 = scmp.eq.s32.totalorder %s4635_s7, 0 }
  0x2d   : > { %s6220_s3 = smov (%p61_p0, %s60_s3), 0  ;;  %s6222_s0 = smov (!%p61_p0, %s63_s0), %s4631_s27 }
  0x2e   : > { %6141 = sst [smem:[#allocation51_spill]] %s6220_s3  ;;  %p4882_p3 = por %p130_p2, %p129_p1 }
  0x2f   : > { %p6093_p4 = scmp.ne.s32.totalorder %s4611_s5, %s4607_s25  ;;  %p65_p5 = scmp.ge.s32.totalorder %s6222_s0, 2 }
  0x30   : > { %p136_p6 = scmp.eq.s32.totalorder %s4865_s28, 0  ;;  %s172_s22 = ssub.s32 %s4627_s6, %s6220_s3 }
  0x31   : > { %s176_s21 = sadd.s32 1, %s4603_s24  ;;  %s6224_s0 = smov (%p65_p5, %s6222_s0), 0 }
  0x32   : > { %6143 = sst [smem:[#allocation52_spill]] %s6224_s0  ;;  %p4899_p7 = por %p136_p6, %p6093_p4 }
  0x33   : > { %p183_p8 = scmp.ne.s32.totalorder %s4603_s24, %s4599_s30  ;;  %s119_s18 = ssub.s32 %s4631_s27, %s6224_s0 }
  0x34   : > { %s6144_s13 = scalar_select %p4899_p7, 1, 0 }
  0x35   : > { %p189_p9 = scmp.ne.s32.totalorder %s4599_s30, %s4595_s4  ;;  %p120_p10 = scmp.eq.s32.totalorder %s119_s18, 0 }
  0x36   : > { %s173_s3 = sor.u32 %s172_s22, %s119_s18  ;;  %p4911_p12 = por %p183_p8, %p130_p2 }
  0x37   : > { %p174_p11 = scmp.eq.s32.totalorder %s173_s3, 0  ;;  %p4923_p13 = por %p189_p9, %p136_p6 }
  0x38   : > { %s4916_s11 = scalar_select %p120_p10, %s4615_s1, %s122_s23  }
  0x39   : > { %s4919_s12 = scalar_select %p174_p11, %s4603_s24, %s176_s21  }
  0x3a   : > { %6146 = sst [smem:[#allocation53_spill]] %s4916_s11  ;;  %p556_p0 = scmp.eq.s32.totalorder %s4865_s28, 3 }
  0x3b   : > { %6147 = sst [smem:[#allocation54_spill]] %s4919_s12  ;;  %s6149_s4 = sadd.s32 4294967294, %s4635_s7  }
  0x3c   : > { %p562_p5 = scmp.eq.s32.totalorder %s6149_s4, 3  ;;  %p3506_p4 = scmp.ge.s32.totalorder %s4635_s7, 1 }
  0x3d   : > { %p4934_p7 = por %p556_p0, %p129_p1  ;;  %p621_p2 = scmp.lt.s32.totalorder %s4635_s7, 5 }
  0x3e   : > { %p6152_p8 = scmp.ne.s32.totalorder %s4611_s5, %s4607_s25  ;;  %s6156_s17 = sld [smem:[#allocation81_spill]] }
  0x3f   : > { %s6150_s18 = scalar_select %p4934_p7, 1, 0 }
  0x40   : > { %p4942_p10 = por %p562_p5, %p6152_p8  ;;  %p4946_p11 = pnand %p3506_p4, %p621_p2 }
  0x41   : > { %6151 = sst [smem:[#allocation55_spill]] %s6150_s18  ;;  %s4637_s0 = smov [#allocation16]  }
  0x42   : > { %s6153_s22 = scalar_select %p4942_p10, 1, 0 }
  0x43   : > { %p3995_p1 = pneg %p4946_p11  ;;  %s677_s11 = sshll.u32 %s4637_s0, 4  ;;  %s678_s11 = int_to_ptr.vmem [resolvable:$true] %s677_s11 }
  0x44   : > { %6154 = sst [smem:[#allocation56_spill]] %s6153_s22  ;;  %s675_s4 = sshll.u32 %s6156_s17, 4  ;;  %s676_s4 = int_to_ptr.hbm [resolvable:$true] %s675_s4 }
  0x45   : > { %p4957_p9 = pnand %p3995_p1, %p136_p6  ;;  %s6158_s15 = sld [smem:[#allocation79_spill]] }
  0x46   : > { %s4638_s3 = smov [#allocation15]   ;;  %s6159_s19 = sld [smem:[#allocation83_spill]] }
  0x47   : > { %4001 = dma.hbm_to_vmem [thread:$0]  (!%p4957_p9), %s676_s4, 16, %s678_s11, [#allocation17]  }
  0x48   : > { %s662_s17 = sshll.u32 %s4638_s3, 4  ;;  %s4639_s9 = smov [#allocation18]   ;;  %s663_s17 = int_to_ptr.vmem [resolvable:$true] %s662_s17 }
  0x49   : > { %s691_s25 = sshll.u32 %s4639_s9, 4  ;;  %s4640_s11 = smov 64   ;;  %s692_s25 = int_to_ptr.vmem [resolvable:$true] %s691_s25 }
  0x4a   : > { %s4641_s4 = smov 4   ;;  %s4642_s3 = smov [#allocation19]  }
  0x4b   : > { %s660_s23 = sshll.u32 %s6158_s15, 4  ;;  %s704_s15 = sshll.u32 %s6081_s20, 4  ;;  %s661_s23 = int_to_ptr.hbm [resolvable:$true] %s660_s23  ;;  %s705_s15 = int_to_ptr.hbm [resolvable:$true] %s704_s15 }
  0x4c   : > { %s689_s10 = sshll.u32 %s6159_s19, 4  ;;  %s706_s18 = sshll.u32 %s4642_s3, 4  ;;  %s690_s10 = int_to_ptr.hbm [resolvable:$true] %s689_s10  ;;  %s707_s18 = int_to_ptr.vmem [resolvable:$true] %s706_s18 }
  0x4d   : > { %3998 = dma.hbm_to_vmem [thread:$0]  (!%p4957_p9), %s661_s23, 16, %s663_s17, [#allocation14]  }
  0x4e   : > { %4004 = dma.hbm_to_vmem [thread:$0]  (!%p4957_p9), %s690_s10, 256, %s692_s25, [#allocation17], %s4640_s11, %s4640_s11, %s4641_s4  }
  0x4f   : > { %4007 = dma.hbm_to_vmem [thread:$0]  (!%p4957_p9), %s705_s15, 16, %s707_s18, [#allocation20]  }
  0x50   : > { %p3511_p4 = scmp.ge.s32.totalorder %s4635_s7, 4 }
  0x52   : > { %713 = sbr.rel (%p3511_p4) target bundleno = 144 (0x90), region = 76 }
  0x57   : > { %s735_s8 = sand.u32 1, %s4615_s1   ;;  %s6102_s9 = sshll.u32 %s4631_s27, 4 }
  0x58   : > { %s4981_s17 = sshll.u32 %s735_s8, 5  ;;  %s6160_s0 = sld [smem:[#allocation66_spill]] }
  0x59   : > { %s3933_s15 = scalar_select %p4882_p3, [#allocation0], [#allocation37] }
  0x5a   : > { %s739_s22 = scalar_lea.vmem [#allocation7], %s4981_s17  ;;  %s4643_s3 = smov 512  }
  0x5b   : > { %s759_s11 = sshll.u32 %s739_s22, 4  ;;  %s749_s4 = sld [smem:[%s3933_s15]]   ;;  %s760_s11 = int_to_ptr.vmem [resolvable:$true] %s759_s11 }
  0x5c   : > { %3934 = sst [smem:[#allocation26]] (%p4882_p3), %s4643_s3  ;;  %s4644_s18 = smov 256  }
  0x5d   : > { %3935 = sst [smem:[#allocation26 + $0x1]] (%p4882_p3), %s4644_s18  ;;  %s4645_s10 = smov 2  }
  0x5e   : > { %s744_s12 = scalar_lea.hbm %s6160_s0, %s6102_s9  ;;  %3936 = sst [smem:[#allocation26 + $0x2]] (%p4882_p3), %s4645_s10 }
  0x5f   : > { %s757_s25 = sshll.u32 %s744_s12, 4  ;;  %s4646_s23 = smov 128   ;;  %s758_s25 = int_to_ptr.hbm [resolvable:$true] %s757_s25 }
  0x60   : > { %3937 = sst [smem:[#allocation26 + $0x3]] (%p4882_p3), %s4646_s23  ;;  %s4647_s15 = smov 8  }
  0x61   : > { %s3515_s0 = sshll.u32 %s749_s4, 26  ;;  %3938 = sst [smem:[#allocation26 + $0x4]] (%p4882_p3), %s4646_s23 }
  0x62   : > { %s3516_s12 = sadd.s32 134217728, %s3515_s0  ;;  %3939 = sst [smem:[#allocation26 + $0x5]] (%p4882_p3), %s4647_s15 }
  0x63   : > { %s736_s22 = scalar_lea.sflag [#allocation8], %s735_s8  ;;  %s4648_s9 = smov [#allocation25]  }
  0x64   : > { %3940 = dma.general (%p4882_p3), %s758_s25, 512, %s760_s11, %s736_s22, %s4648_s9, [#allocation26], %s3516_s12, 0  }
  0x65   : > { %s6103_s3 = sand.u32 1, %s4635_s7   ;;  %s6161_s18 = sshll.u32 %s4631_s27, 4 }
  0x66   : > { %s6162_s23 = sld [smem:[#allocation67_spill]]  ;;  %s786_s19 = scalar_lea.vmem [#allocation10], %s4981_s17 }
  0x67   : > { %s3941_s15 = scalar_select %p4882_p3, [#allocation0], [#allocation38] }
  0x68   : > { %s806_s9 = sshll.u32 %s786_s19, 4  ;;  %s4649_s11 = smov 512   ;;  %s807_s9 = int_to_ptr.vmem [resolvable:$true] %s806_s9 }
  0x69   : > { %s796_s25 = sld [smem:[%s3941_s15]]   ;;  %s4650_s12 = smov 256  }
  0x6a   : > { %3942 = sst [smem:[#allocation28]] (%p4882_p3), %s4649_s11  ;;  %s4651_s22 = smov 2  }
  0x6b   : > { %3943 = sst [smem:[#allocation28 + $0x1]] (%p4882_p3), %s4650_s12  ;;  %s4653_s4 = smov 8  }
  0x6c   : > { %s791_s0 = scalar_lea.hbm %s6162_s23, %s6161_s18  ;;  %3944 = sst [smem:[#allocation28 + $0x2]] (%p4882_p3), %s4651_s22 }
  0x6d   : > { %s804_s8 = sshll.u32 %s791_s0, 4  ;;  %s4652_s18 = smov 128   ;;  %s805_s8 = int_to_ptr.hbm [resolvable:$true] %s804_s8 }
  0x6e   : > { %3945 = sst [smem:[#allocation28 + $0x3]] (%p4882_p3), %s4652_s18  ;;  %s5028_s10 = scalar_lea.sflag [#allocation11], %s6103_s3 }
  0x6f   : > { %s3520_s17 = sshll.u32 %s796_s25, 26  ;;  %3946 = sst [smem:[#allocation28 + $0x4]] (%p4882_p3), %s4652_s18 }
  0x70   : > { %s3521_s19 = sadd.s32 134217728, %s3520_s17  ;;  %3947 = sst [smem:[#allocation28 + $0x5]] (%p4882_p3), %s4653_s4 }
  0x71   : > { %s4654_s23 = smov [#allocation27]  }
  0x72   : > { %3948 = dma.general (%p4882_p3), %s805_s8, 512, %s807_s9, %s5028_s10, %s4654_s23, [#allocation28], %s3521_s19, 0  }
  0x73   : > { %s831_s0 = sand.u32 1, %s4603_s24   ;;  %s3524_s15 = sshll.u32 %s4627_s6, 1 }
  0x74   : > { %s5035_s25 = sshll.u32 %s831_s0, 7  ;;  %s3726_s11 = sshll.u32 %s4631_s27, 6 }
  0x75   : > { %s839_s12 = sadd.s32 %s3726_s11, %s3524_s15  ;;  %s833_s18 = scalar_lea.vmem [#allocation12], %s5035_s25 }
  0x76   : > { %s3526_s22 = sshll.u32 %s839_s12, 2  ;;  %s856_s29 = sshll.u32 %s833_s18, 4  ;;  %s857_s29 = int_to_ptr.vmem [resolvable:$true] %s856_s29 }
  0x77   : > { %s6163_s17 = sld [smem:[#allocation68_spill]]  ;;  %s4655_s3 = smov 256  }
  0x78   : > { %s3949_s4 = scalar_select %p4911_p12, [#allocation0], [#allocation39] }
  0x79   : > { %3950 = sst [smem:[#allocation30]] (%p4911_p12), %s4655_s3  ;;  %s4656_s15 = smov 128  }
  0x7a   : > { %s846_s0 = sld [smem:[%s3949_s4]]   ;;  %s4657_s11 = smov 2  }
  0x7b   : > { %3951 = sst [smem:[#allocation30 + $0x1]] (%p4911_p12), %s4656_s15  ;;  %s4658_s12 = smov 64  }
  0x7c   : > { %3952 = sst [smem:[#allocation30 + $0x2]] (%p4911_p12), %s4657_s11  ;;  %s4659_s8 = smov 4  }
  0x7d   : > { %s841_s19 = scalar_lea.hbm %s6163_s17, %s3526_s22  ;;  %3953 = sst [smem:[#allocation30 + $0x3]] (%p4911_p12), %s4658_s12 }
  0x7e   : > { %s854_s23 = sshll.u32 %s841_s19, 4  ;;  %3954 = sst [smem:[#allocation30 + $0x4]] (%p4911_p12), %s4658_s12  ;;  %s855_s23 = int_to_ptr.hbm [resolvable:$true] %s854_s23 }
  0x7f   : > { %3955 = sst [smem:[#allocation30 + $0x5]] (%p4911_p12), %s4659_s8  ;;  %s4660_s17 = smov [#allocation29]  }
  0x80   : > { %s3527_s18 = sshll.u32 %s846_s0, 26 }
  0x81   : > { %s3528_s9 = sadd.s32 134217728, %s3527_s18 }
  0x82   : > { %3956 = dma.general (%p4911_p12), %s855_s23, 2048, %s857_s29, %s5028_s10, %s4660_s17, [#allocation30], %s3528_s9, 0  }
  0x83   : > { %s6164_s4 = sld [smem:[#allocation69_spill]]  ;;  %s883_s11 = scalar_lea.vmem [#allocation13], %s5035_s25 }
  0x84   : > { %s906_s0 = sshll.u32 %s883_s11, 4  ;;  %s4661_s29 = smov 256   ;;  %s907_s0 = int_to_ptr.vmem [resolvable:$true] %s906_s0 }
  0x85   : > { %s3957_s12 = scalar_select %p4911_p12, [#allocation0], [#allocation40] }
  0x86   : > { %3958 = sst [smem:[#allocation32]] (%p4911_p12), %s4661_s29  ;;  %s4662_s23 = smov 128  }
  0x87   : > { %s896_s10 = sld [smem:[%s3957_s12]]   ;;  %s4663_s18 = smov 2  }
  0x88   : > { %3959 = sst [smem:[#allocation32 + $0x1]] (%p4911_p12), %s4662_s23  ;;  %s4664_s25 = smov 64  }
  0x89   : > { %s891_s15 = scalar_lea.hbm %s6164_s4, %s3526_s22  ;;  %3960 = sst [smem:[#allocation32 + $0x2]] (%p4911_p12), %s4663_s18 }
  0x8a   : > { %s904_s8 = sshll.u32 %s891_s15, 4  ;;  %3961 = sst [smem:[#allocation32 + $0x3]] (%p4911_p12), %s4664_s25  ;;  %s905_s8 = int_to_ptr.hbm [resolvable:$true] %s904_s8 }
  0x8b   : > { %3962 = sst [smem:[#allocation32 + $0x4]] (%p4911_p12), %s4664_s25  ;;  %s4665_s17 = smov 4  }
  0x8c   : > { %3963 = sst [smem:[#allocation32 + $0x5]] (%p4911_p12), %s4665_s17  ;;  %s6165_s3 = sand.u32 1, %s4635_s7  }
  0x8d   : > { %s3534_s22 = sshll.u32 %s896_s10, 26  ;;  %s880_s19 = scalar_lea.sflag [#allocation14], %s6165_s3 }
  0x8e   : > { %s3535_s9 = sadd.s32 134217728, %s3534_s22  ;;  %s4666_s4 = smov [#allocation31]  }
  0x8f   : > { %3964 = dma.general (%p4911_p12), %s905_s8, 2048, %s907_s0, %s880_s19, %s4666_s4, [#allocation32], %s3535_s9, 0  }
  0x90 PF: > { %931 = sbr.rel (%p4946_p11) target bundleno = 3244 (0xcac), region = 104 }
  0x95   : > { %s5084_s15 = sand.u32 1, %s4611_s5   ;;  %p6166_p3 = scmp.ne.s32.totalorder %s6144_s13, 0 }
  0x96   : > { %s5087_s11 = sshll.u32 %s5084_s15, 5  ;;  %s934_s12 = scalar_lea.sflag [#allocation8], %s5084_s15 }
  0x97   : > { %s5091_s10 = scalar_lea.vmem [#allocation7], %s5087_s11 }
  0x98   : > { %4558 = dma.done.wait (%p6166_p3), %s934_s12, 512  }
  0x99   : > { %4560 = vsyncadd (%p6166_p3), %s934_s12, 4294966784  ;;  %s5098_s16 = sand.u32 1, %s4865_s28   ;;  %s5102_s0 = scalar_lea.vmem [#allocation10], %s5087_s11 }
  0x9a   : > { %s944_s21 = scalar_lea.sflag [#allocation11], %s5098_s16 }
  0x9b   : > { %4562 = dma.done.wait (%p6166_p3), %s944_s21, 512  }
  0x9c   : > { %4564 = vsyncadd (%p6166_p3), %s944_s21, 4294966784  ;;  %s955_s8 = sand.u32 1, %s4599_s30  }
  0x9d   : > { %s3539_s29 = sshll.u32 %s955_s8, 7 }
  0x9e   : > { %s5109_s23 = scalar_lea.vmem [#allocation12], %s3539_s29 }
  0x9f   : > { %4566 = dma.done.wait (%p4923_p13), %s944_s21, 2048  }
  0xa0   : > { %4568 = vsyncadd (%p4923_p13), %s944_s21, 4294965248  ;;  %s964_s18 = scalar_lea.sflag [#allocation14], %s5098_s16  ;;  %s5116_s25 = scalar_lea.vmem [#allocation13], %s3539_s29 }
  0xa1   : > { %4570 = dma.done.wait (%p4923_p13), %s964_s18, 2048  }
  0xa2   : > { %4572 = vsyncadd (%p4923_p13), %s964_s18, 4294965248 }
  0xa3   : > { %4574 = dma.done.wait (%p136_p6), [#allocation14], 16  }
  0xa4   : > { %4576 = vsyncadd (%p136_p6), [#allocation14], 4294967280 }
  0xa5   : > { %4578 = dma.done.wait (%p136_p6), [#allocation17], 272  }
  0xa6   : > { %4580 = vsyncadd (%p136_p6), [#allocation17], 4294967024 }
  0xa7   : > { %4582 = dma.done.wait (%p136_p6), [#allocation20], 16  }
  0xa8   : > { %4584 = vsyncadd (%p136_p6), [#allocation20], 4294967280  ;;  %s3545_s13 = sshll.u32 %s5084_s15, 4  ;;  %s3548_s14 = sshll.u32 %s4623_s2, 1 }
  0xa9   : > { %p1087_p12 = scmp.lt.s32.totalorder %s3548_s14, 3  ;;  %s6167_s3 = sld [smem:[#allocation64_spill]] }
  0xaa   : > { %s6168_s21 = sld [smem:[#allocation65_spill]]  ;;  %s5144_s28 = scalar_lea.vmem [#allocation21], %s3545_s13 }
  0xab   : > { %s6226_s14 = smov (!%p1087_p12, %s3548_s14), 3  ;;  %s5147_s29 = scalar_lea.vmem [#allocation22], %s5087_s11 }
  0xac   : > { %s3549_s22 = sshll.u32 %s6226_s14, 2  ;;  %s5150_s18 = scalar_lea.vmem [#allocation24], %s5087_s11 }
  0xad   : > { %p3552_p6 = scmp.ne.s32.totalorder %s4619_s26, 0 }
  0xae   : > { %s6169_s17 = sld [smem:[#allocation70_spill]] (!%p3552_p6)  ;;  %s4667_s13 = smov (!%p3552_p6), 32  }
  0xaf   : > { %s5139_s19 = scalar_lea.vmem %s6167_s3, %s3549_s22  ;;  %1111 = sbr.rel (%p3552_p6) target bundleno = 1971 (0x7b3), region = 140 }
  0xb0   : > { %s1096_s8 = scalar_lea.vmem %s6168_s21, %s3549_s22  ;;  %s6104_s12 = smov (!%p3552_p6), 64  }
  0xb1   : > { %s6170_s21 = sld [smem:[#allocation71_spill]] (!%p3552_p6)  ;;  %s6172_s9 = smov (!%p3552_p6), 64  }
  0xb2   : > { %s6171_s14 = sld [smem:[#allocation72_spill]] (!%p3552_p6) }
  0xb3   : > { %s6173_s3 = sld [smem:[#allocation73_spill]] (!%p3552_p6) }
  0xb4   : > { %v3729_v0 = vld [vmem:[%s1096_s8] sm:$0xff]  ;;  %v1112_v1 = vld [vmem:[%s5091_s10] sm:$0xff]  ;;  %v1113_v2 = vld [vmem:[%s5091_s10 + $0x8] sm:$0xff]  ;;  %vm1149_vm0 = vcmask 261120   ;;  %vm1153_vm1 = vcmask 523264   ;;  %vm1208_vm2 = vcmask 785408  }
  0xb5   : > { %v1114_v3 = vpack.c.bf16 %v1112_v1, %v1112_v1  ;;  %v1115_v4 = vpack.c.bf16 %v1113_v2, %v1113_v2  ;;  %v3735_v5 = vld [vmem:[%s6169_s17 + $0x28] sm:$0xff]  ;;  %1140 = vrot.lane.b32.xlu0 %v3729_v0, %s4667_s13  ;;  %v3734_v6 = vld [vmem:[%s6169_s17 + $0x20] sm:$0xff]  ;;  %v3733_v10 = vld [vmem:[%s6169_s17 + $0x18] sm:$0xff]  ;;  %s6174_s4 = sld [smem:[#allocation74_spill]] }
  0xb6   : > { %1213 = vmatpush.bf16.msra.mxu0 %v3735_v5  ;;  %v3732_v11 = vld [vmem:[%s6169_s17 + $0x10] sm:$0xff]  ;;  %v3731_v12 = vld [vmem:[%s6169_s17 + $0x8] sm:$0xff]  ;;  %v3730_v13 = vld [vmem:[%s6169_s17] sm:$0xff]  ;;  %s6176_s11 = sld [smem:[#allocation78_spill]] }
  0xb7   : > { %v1144_v7 = vunpack.c.l.b16 %v1114_v3  ;;  %v1145_v8 = vunpack.c.l.b16 %v1115_v4  ;;  %v1121_v14 = vld [vmem:[%s5102_s0] sm:$0xff]  ;;  %v1122_v15 = vld [vmem:[%s5102_s0 + $0x8] sm:$0xff]  ;;  %v3728_v17 = vld [vmem:[%s5139_s19] sm:$0xff]  ;;  %s6178_s22 = sld [smem:[#allocation75_spill]] }
  0xb8   : > { %1265 = vrot.lane.b32.xlu2 %v1121_v14, %s4667_s13  ;;  %v4167_v21 = vld [vmem:[%s6170_s21] ss:$0 sm:$0xff]  ;;  %v3554_v5 = vld [vmem:[%s5091_s10 + $0x18] sm:$0xff]  ;;  %s6180_s8 = sld [smem:[#allocation82_spill]] }
  0xb9   : > { %v1146_v9 = vpack.c.b16 %v1145_v8, %v1144_v7  ;;  %v3553_v4 = vld [vmem:[%s5091_s10 + $0x10] sm:$0xff]  ;;  %v1120_v8 = vpack.c.bf16 %v3554_v5, %v3554_v5 }
  0xba   : > { %1214 = vmatpush.bf16.msra.mxu0 %v3734_v6  ;;  %v3618_v6 = vld [vmem:[%s6171_s14 + $0x30] sm:$0xf]  ;;  %v1119_v7 = vpack.c.bf16 %v3553_v4, %v3553_v4  ;;  %v3610_v14 = vld [vmem:[%s6171_s14 + $0x20] sm:$0xf] }
  0xbb   : > { %s6175_s21 = smov %s6174_s4 }
  0xbd   : > { %1147 = vrot.lane.b32.xlu0 %v1146_v9, %s6104_s12  ;;  %v3743_v9 = vld [vmem:[%s6171_s14 + $0x34] sm:$0xf0]  ;;  %s6177_s12 = sld [smem:[#allocation76_spill]] }
  0xbe   : > { %1215 = vmatpush.bf16.msra.mxu0 %v3733_v10  ;;  %v3742_v10 = vld [vmem:[%s6171_s14 + $0x34] sm:$0xf] }
  0xc0   : > { %1267 = vrot.lane.b32.xlu2 %v1122_v15, %s4667_s13  ;;  %v3741_v15 = vld [vmem:[%s6171_s14 + $0x24] sm:$0xf0] }
  0xc2   : > { %1216 = vmatpush.bf16.msra.mxu0 %v3732_v11  ;;  %v3620_v11 = vld [vmem:[%s6171_s14 + $0x38] sm:$0xf0] }
  0xc6   : > { %1217 = vmatpush.bf16.msra.mxu0 %v3731_v12  ;;  %v3619_v12 = vor.u32 %v3743_v9, %v3618_v6 }
  0xc8   : > { %1386 = vmatpush.bf16.msra.mxu1 %v3619_v12 }
  0xca   : > { %1218 = vmatpush.bf16.msra.mxu0 %v3730_v13  ;;  %v3623_v13 = vor.u32 %v3742_v10, %v3620_v11 }
  0xcc   : > { %1400 = vmatpush.bf16.msra.mxu2 %v3623_v13 }
 0x112   : > { %v1266_v58 = vpop.permute.xlu2 %1265 }
 0x11a   : > { %v1268_v62 = vpop.permute.xlu2 %1267 }
 0x127   : > { %v1141_v16 = vpop.permute.xlu0 %1140 }
 0x128   : > { %v1152_v18 = vsel %vm1149_vm0, %v3728_v17, %v1141_v16  ;;  %v3740_v16 = vld [vmem:[%s6171_s14 + $0x24] sm:$0xf]  ;;  %v1318_v17 = vunpack.c.l.b16 %v1119_v7 }
 0x12f   : > { %v1148_v19 = vpop.permute.xlu0 %1147 }
 0x130   : > { %v1155_v20 = vsel %vm1153_vm1, %v1152_v18, %v1148_v19  ;;  %v1319_v18 = vunpack.c.l.b16 %v1120_v8  ;;  %v3612_v19 = vld [vmem:[%s6171_s14 + $0x28] sm:$0xf0] }
 0x131   : > { %3589 = vmatmul.msk.bf16.vlgmr.msra.gmra.mxu0 %vm1208_vm2, %v1155_v20  ;;  %v3611_v20 = vor.u32 %v3741_v15, %v3610_v14 }
 0x133   : > { %1387 = vmatpush.bf16.msra.mxu1 %v3611_v20 }
 0x1ae   : > { %v1220_v22 = vpop.f32.mrf.mxu0 }
 0x1af   : > { %v1221_v23 = vadd.f32 %v4167_v21, %v1220_v22  ;;  %v3602_v22 = vld [vmem:[%s6171_s14 + $0x10] sm:$0xf] }
 0x1b1   : > { %4172 = vtanh.f32 %v1221_v23  ;;  %v3590_v28 = vmul.f32 -1.442695, %v1221_v23  ;;  %v1320_v23 = vpack.c.b16 %v1319_v18, %v1318_v17 }
 0x1b6   : > { %v1222_v24 = vpop.f32.mrf.mxu0 }
 0x1b7   : > { %v4173_v25 = vpop.eup %4172  ;;  %v1223_v26 = vadd.f32 %v4167_v21, %v1222_v24  ;;  %v3615_v21 = vor.u32 %v3740_v16, %v3612_v19  ;;  %v3739_v24 = vld [vmem:[%s6171_s14 + $0x14] sm:$0xf0] }
 0x1b8   : > { %1277 = vrot.lane.b32.xlu1 %v4173_v25, %s4667_s13  ;;  %v3738_v25 = vld [vmem:[%s6171_s14 + $0x14] sm:$0xf] }
 0x1b9   : > { %4174 = vtanh.f32 %v1223_v26  ;;  %v3591_v29 = vmul.f32 -1.442695, %v1223_v26  ;;  %v3604_v26 = vld [vmem:[%s6171_s14 + $0x18] sm:$0xf0]  ;;  %1401 = vmatpush.bf16.msra.mxu2 %v3615_v21 }
 0x1ba   : > { %4176 = vpow2.f32 %v3590_v28  ;;  %v3607_v28 = vor.u32 %v3738_v25, %v3604_v26 }
 0x1bb   : > { %4178 = vpow2.f32 %v3591_v29  ;;  %v3594_v29 = vld [vmem:[%s6171_s14] sm:$0xf] }
 0x1bd   : > { %1402 = vmatpush.bf16.msra.mxu2 %v3607_v28 }
 0x1bf   : > { %v4175_v27 = vpop.eup %4174 }
 0x1c0   : > { %1279 = vrot.lane.b32.xlu1 %v4175_v27, %s4667_s13  ;;  %v4177_v30 = vpop.eup %4176  ;;  %v3603_v27 = vor.u32 %v3739_v24, %v3602_v22 }
 0x1c1   : > { %v1231_v31 = vadd.f32 1.0, %v4177_v30  ;;  %v4179_v32 = vpop.eup %4178  ;;  %v3737_v30 = vld [vmem:[%s6171_s14 + $0x4] sm:$0xf0] }
 0x1c2   : > { %v1232_v33 = vadd.f32 1.0, %v4179_v32  ;;  %v3596_v32 = vld [vmem:[%s6171_s14 + $0x8] sm:$0xf0]  ;;  %1388 = vmatpush.bf16.msra.mxu1 %v3603_v27 }
 0x1c3   : > { %4180 = vrcp.f32 %v1231_v31  ;;  %v1244_v42 = vand.u32 2147483648, %v1231_v31  ;;  %vm1238_vm4 = vweird.f32 %v1231_v31  ;;  %v1242_v43 = vand.u32 2147483647, %v1231_v31 }
 0x1c4   : > { %4182 = vrcp.f32 %v1232_v33  ;;  %v1259_v51 = vand.u32 2147483648, %v1232_v33  ;;  %vm1253_vm8 = vweird.f32 %v1232_v33  ;;  %v1257_v52 = vand.u32 2147483647, %v1232_v33 }
 0x1c5   : > { %v1245_v46 = vor.u32 1.1754944e-38, %v1244_v42  ;;  %vm1243_vm6 = vcmp.eq.f32.partialorder %v1242_v43, 8.507059e+37 }
 0x1c6   : > { %v1260_v54 = vor.u32 1.1754944e-38, %v1259_v51  ;;  %vm1258_vm10 = vcmp.eq.f32.partialorder %v1257_v52, 8.507059e+37 }
 0x1c9   : > { %v4181_v34 = vpop.eup %4180 }
 0x1ca   : > { %v1234_v35 = vmul.f32 %v4181_v34, %v1231_v31  ;;  %v4183_v37 = vpop.eup %4182  ;;  %vm1239_vm3 = vweird.f32 %v4181_v34  ;;  %v3736_v31 = vld [vmem:[%s6171_s14 + $0x4] sm:$0xf] }
 0x1cb   : > { %v1249_v39 = vmul.f32 %v4183_v37, %v1232_v33  ;;  %vm1240_vm5 = vmor %vm1238_vm4, %vm1239_vm3  ;;  %vm1254_vm7 = vweird.f32 %v4183_v37  ;;  %v3595_v33 = vor.u32 %v3737_v30, %v3594_v29 }
 0x1cc   : > { %v1235_v36 = vsub.f32 1.0, %v1234_v35  ;;  %vm1255_vm9 = vmor %vm1253_vm8, %vm1254_vm7 }
 0x1cd   : > { %v1250_v41 = vsub.f32 1.0, %v1249_v39  ;;  %1389 = vmatpush.bf16.msra.mxu1 %v3595_v33 }
 0x1ce   : > { %v1236_v38 = vmul.f32 %v4181_v34, %v1235_v36 }
 0x1cf   : > { %v1251_v45 = vmul.f32 %v4183_v37, %v1250_v41 }
 0x1d0   : > { %v1237_v40 = vadd.f32 %v4181_v34, %v1236_v38 }
 0x1d1   : > { %v1252_v49 = vadd.f32 %v4183_v37, %v1251_v45 }
 0x1d2   : > { %v1241_v44 = vsel %vm1240_vm5, %v4181_v34, %v1237_v40  ;;  %v3599_v34 = vor.u32 %v3736_v31, %v3596_v32 }
 0x1d3   : > { %v5187_v47 = vsel %vm1243_vm6, %v1245_v46, %v1241_v44  ;;  %v1256_v53 = vsel %vm1255_vm9, %v4183_v37, %v1252_v49  ;;  %v3555_v44 = vld [vmem:[%s5102_s0 + $0x10] sm:$0xff] }
 0x1d4   : > { %v1261_v55 = vsel %vm1258_vm10, %v1260_v54, %v1256_v53  ;;  %v1271_v59 = vmul.f32 %v1266_v58, %v5187_v47  ;;  %1403 = vmatpush.bf16.msra.mxu2 %v3599_v34 }
 0x1d5   : > { %v1272_v63 = vmul.f32 %v1268_v62, %v1261_v55 }
 0x22a   : > { %v1278_v48 = vpop.permute.xlu1 %1277 }
 0x22b   : > { %v1283_v50 = vmul.f32 %v1278_v48, %v5187_v47  ;;  %v5270_v48 = vld [vmem:[%s6173_s3] sm:$0x3] }
 0x22c   : > { %v1336_v49 = vperm.slane %v5270_v48, 0 }
 0x22d   : > { %1287 = vrot.lane.b32.xlu0 %v1283_v50, %s4667_s13 }
 0x232   : > { %v1280_v56 = vpop.permute.xlu1 %1279 }
 0x233   : > { %v1284_v57 = vmul.f32 %v1280_v56, %v1261_v55 }
 0x235   : > { %1289 = vrot.lane.b32.xlu1 %v1284_v57, %s4667_s13 }
 0x29f   : > { %v1288_v60 = vpop.permute.xlu0 %1287 }
 0x2a0   : > { %v5193_v61 = vadd.f32 %v1288_v60, %v1271_v59 }
 0x2a2   : > { %4184 = vtanh.f32 %v5193_v61 }
 0x2a7   : > { %v1290_v0 = vpop.permute.xlu1 %1289 }
 0x2a8   : > { %v4185_v1 = vpop.eup %4184  ;;  %v5196_v2 = vadd.f32 %v1290_v0, %v1272_v63 }
 0x2a9   : > { %1299 = vrot.lane.b32.xlu2 %v4185_v1, %s4667_s13 }
 0x2aa   : > { %4186 = vtanh.f32 %v5196_v2 }
 0x2b0   : > { %v4187_v3 = vpop.eup %4186 }
 0x2b1   : > { %1301 = vrot.lane.b32.xlu0 %v4187_v3, %s4667_s13  ;;  %1321 = vrot.lane.b32.xlu2 %v1320_v23, %s4667_s13 }
 0x2b9   : > { %1450 = vrot.lane.b32.xlu2 %v3555_v44, %s4667_s13 }
 0x303   : > { %v1300_v35 = vpop.permute.xlu2 %1299 }
 0x304   : > { %v5253_v36 = vmul.f32 %v1300_v35, %v5187_v47 }
 0x306   : > { %v1307_v38 = vpack.c.bf16 %v5253_v36, %v5253_v36 }
 0x308   : > { %v1311_v41 = vunpack.c.l.b16 %v1307_v38 }
 0x30b   : > { %v1322_v45 = vpop.permute.xlu2 %1321 }
 0x313   : > { %v1451_v25 = vpop.permute.xlu2 %1450 }
 0x323   : > { %v1302_v37 = vpop.permute.xlu0 %1301 }
 0x324   : > { %v5257_v39 = vmul.f32 %v1302_v37, %v1261_v55  ;;  %v3556_v55 = vld [vmem:[%s5102_s0 + $0x18] sm:$0xff]  ;;  %s4669_s0 = smov 96   ;;  %v1337_v37 = vperm.slane %v5270_v48, 1 }
 0x326   : > { %v1308_v40 = vpack.c.bf16 %v5257_v39, %v5257_v39 }
 0x328   : > { %v1312_v42 = vunpack.c.l.b16 %v1308_v40 }
 0x32a   : > { %v1313_v43 = vpack.c.b16 %v1312_v42, %v1311_v41 }
 0x32c   : > { %1314 = vrot.lane.b32.xlu1 %v1313_v43, %s6172_s9 }
 0x39e   : > { %v1315_v46 = vpop.permute.xlu1 %1314 }
 0x39f   : > { %v1325_v47 = vsel %vm1149_vm0, %v1315_v46, %v1322_v45 }
 0x3a0   : > { %3624 = vmatmul.msk.bf16.vlgmr.msra.gmra.mxu1 %vm1153_vm1, %v1325_v47  ;;  %3625 = vmatmul.msk.bf16.vlgmr.msra.gmra.mxu2 %vm1153_vm1, %v1325_v47  ;;  %v3744_v47 = vld [vmem:[%s6175_s21] sm:$0xff] }
 0x41d   : > { %v1391_v50 = vpop.f32.mrf.mxu1 }
 0x41e   : > { %v1392_v51 = vadd.f32 %v1391_v50, %v1336_v49 }
 0x420   : > { %4188 = vtanh.f32 %v1392_v51  ;;  %v3626_v57 = vmul.f32 -1.442695, %v1392_v51 }
 0x423   : > { %v1405_v35 = vpop.f32.mrf.mxu2 }
 0x424   : > { %v1406_v40 = vadd.f32 %v1405_v35, %v1337_v37 }
 0x425   : > { %v1393_v52 = vpop.f32.mrf.mxu1 }
 0x426   : > { %v4189_v53 = vpop.eup %4188  ;;  %v1394_v54 = vadd.f32 %v1393_v52, %v1336_v49  ;;  %v3628_v42 = vmul.f32 -1.442695, %v1406_v40 }
 0x427   : > { %1462 = vrot.lane.b32.xlu0 %v4189_v53, %s4667_s13 }
 0x428   : > { %4190 = vtanh.f32 %v1394_v54  ;;  %v3627_v58 = vmul.f32 -1.442695, %v1394_v54 }
 0x429   : > { %4192 = vpow2.f32 %v3626_v57 }
 0x42a   : > { %4194 = vpow2.f32 %v3627_v58 }
 0x42b   : > { %v1407_v38 = vpop.f32.mrf.mxu2 }
 0x42c   : > { %v1408_v41 = vadd.f32 %v1407_v38, %v1337_v37  ;;  %v4169_v38 = vld [vmem:[#allocation15] ss:$0 sm:$0xff] }
 0x42e   : > { %v4191_v56 = vpop.eup %4190  ;;  %v3629_v43 = vmul.f32 -1.442695, %v1408_v41 }
 0x42f   : > { %1452 = vrot.lane.b32.xlu0 %v3556_v55, %s4667_s13  ;;  %1464 = vrot.lane.b32.xlu1 %v4191_v56, %s4667_s13  ;;  %v4193_v59 = vpop.eup %4192 }
 0x430   : > { %v1416_v60 = vadd.f32 1.0, %v4193_v59  ;;  %v4195_v62 = vpop.eup %4194 }
 0x431   : > { %v1417_v63 = vadd.f32 1.0, %v4195_v62 }
 0x432   : > { %4196 = vrcp.f32 %v1416_v60  ;;  %v1429_v8 = vand.u32 2147483648, %v1416_v60  ;;  %vm1423_vm12 = vweird.f32 %v1416_v60  ;;  %v1427_v10 = vand.u32 2147483647, %v1416_v60 }
 0x433   : > { %4198 = vrcp.f32 %v1417_v63  ;;  %v1444_v18 = vand.u32 2147483648, %v1417_v63  ;;  %vm1438_vm1 = vweird.f32 %v1417_v63  ;;  %v1442_v19 = vand.u32 2147483647, %v1417_v63 }
 0x434   : > { %v1430_v12 = vor.u32 1.1754944e-38, %v1429_v8  ;;  %vm1428_vm14 = vcmp.eq.f32.partialorder %v1427_v10, 8.507059e+37 }
 0x435   : > { %v1445_v21 = vor.u32 1.1754944e-38, %v1444_v18  ;;  %vm1443_vm3 = vcmp.eq.f32.partialorder %v1442_v19, 8.507059e+37  ;;  %v3749_v19 = vld [vmem:[%s6176_s11 + $0x8] sm:$0xff] }
 0x436   : > { %1691 = vmatpush.bf16.msrb.mxu1 %v3749_v19 }
 0x438   : > { %v4197_v0 = vpop.eup %4196 }
 0x439   : > { %v1419_v1 = vmul.f32 %v4197_v0, %v1416_v60  ;;  %v4199_v4 = vpop.eup %4198  ;;  %vm1424_vm11 = vweird.f32 %v4197_v0 }
 0x43a   : > { %v1434_v6 = vmul.f32 %v4199_v4, %v1417_v63  ;;  %vm1425_vm13 = vmor %vm1423_vm12, %vm1424_vm11  ;;  %vm1439_vm15 = vweird.f32 %v4199_v4  ;;  %vm1781_vm12 = vcmask 7168  }
 0x43b   : > { %v1420_v3 = vsub.f32 1.0, %v1419_v1  ;;  %vm1440_vm2 = vmor %vm1438_vm1, %vm1439_vm15 }
 0x43c   : > { %v1435_v9 = vsub.f32 1.0, %v1434_v6 }
 0x43d   : > { %v1421_v5 = vmul.f32 %v4197_v0, %v1420_v3 }
 0x43e   : > { %v1436_v13 = vmul.f32 %v4199_v4, %v1435_v9 }
 0x43f   : > { %v1422_v7 = vadd.f32 %v4197_v0, %v1421_v5 }
 0x440   : > { %v1437_v17 = vadd.f32 %v4199_v4, %v1436_v13 }
 0x441   : > { %v1426_v11 = vsel %vm1425_vm13, %v4197_v0, %v1422_v7 }
 0x442   : > { %v5277_v14 = vsel %vm1428_vm14, %v1430_v12, %v1426_v11  ;;  %v1441_v20 = vsel %vm1440_vm2, %v4199_v4, %v1437_v17 }
 0x443   : > { %v1446_v23 = vsel %vm1443_vm3, %v1445_v21, %v1441_v20  ;;  %v1456_v31 = vmul.f32 %v1451_v25, %v5277_v14  ;;  %v3748_v20 = vld [vmem:[%s6176_s11] sm:$0xff] }
 0x444   : > { %1692 = vmatpush.bf16.msrb.mxu1 %v3748_v20 }
 0x499   : > { %v1463_v15 = vpop.permute.xlu0 %1462 }
 0x49a   : > { %v1468_v16 = vmul.f32 %v1463_v15, %v5277_v14 }
 0x49c   : > { %1472 = vrot.lane.b32.xlu1 %v1468_v16, %s4667_s13 }
 0x4a1   : > { %v1465_v22 = vpop.permute.xlu1 %1464  ;;  %v1453_v26 = vpop.permute.xlu0 %1452 }
 0x4a2   : > { %v1469_v24 = vmul.f32 %v1465_v22, %v1446_v23  ;;  %v1457_v27 = vmul.f32 %v1453_v26, %v1446_v23 }
 0x4a4   : > { %1474 = vrot.lane.b32.xlu2 %v1469_v24, %s4667_s13  ;;  %v3746_v24 = vld [vmem:[%s6177_s12] sm:$0xff] }
 0x4fe   : > { %v1475_v28 = vpop.permute.xlu2 %1474 }
 0x4ff   : > { %v1479_v29 = vadd.f32 %v1475_v28, %v1457_v27  ;;  %v4168_v27 = vld [vmem:[%s6178_s22] ss:$0 sm:$0xff] }
 0x501   : > { %4200 = vtanh.f32 %v1479_v29 }
 0x507   : > { %v4201_v30 = vpop.eup %4200 }
 0x508   : > { %1486 = vrot.lane.b32.xlu1 %v4201_v30, %s4667_s13 }
 0x50e   : > { %v1473_v32 = vpop.permute.xlu1 %1472 }
 0x50f   : > { %v1478_v33 = vadd.f32 %v1473_v32, %v1456_v31 }
 0x511   : > { %4202 = vtanh.f32 %v1478_v33 }
 0x512   : > { %4204 = vpow2.f32 %v3628_v42 }
 0x513   : > { %4206 = vpow2.f32 %v3629_v43 }
 0x517   : > { %v4203_v34 = vpop.eup %4202 }
 0x518   : > { %1530 = vrot.lane.b32.xlu2 %v4203_v34, %s4669_s0  ;;  %1484 = vrot.lane.b32.xlu0 %v4203_v34, %s4667_s13 }
 0x520   : > { %1540 = vrot.lane.b32.xlu2 %v5253_v36, %s6172_s9  ;;  %1532 = vrot.lane.b32.xlu0 %v4201_v30, %s4669_s0  ;;  %v4205_v36 = vpop.eup %4204 }
 0x521   : > { %v4207_v44 = vpop.eup %4206 }
 0x522   : > { %v1499_v45 = vadd.f32 1.0, %v4207_v44 }
 0x524   : > { %v1526_v1 = vand.u32 2147483648, %v1499_v45  ;;  %vm1520_vm8 = vweird.f32 %v1499_v45  ;;  %v1524_v5 = vand.u32 2147483647, %v1499_v45 }
 0x526   : > { %v1527_v9 = vor.u32 1.1754944e-38, %v1526_v1  ;;  %vm1525_vm11 = vcmp.eq.f32.partialorder %v1524_v5, 8.507059e+37 }
 0x528   : > { %1542 = vrot.lane.b32.xlu0 %v5257_v39, %s6172_s9  ;;  %v3745_v39 = vld [vmem:[%s6174_s4 + $0x8] sm:$0xff]  ;;  %s6181_s4 = sld [smem:[#allocation77_spill]] }
 0x529   : > { %1610 = vmatpush.bf16.msra.mxu3 %v3745_v39 }
 0x52d   : > { %1611 = vmatpush.bf16.msra.mxu3 %v3744_v47  ;;  %v4171_v47 = vld [vmem:[#allocation16] ss:$0 sm:$0xff] }
 0x530   : > { %1561 = vrot.lane.b32.xlu0 %v5193_v61, %s4669_s0  ;;  %v1498_v61 = vadd.f32 1.0, %v4205_v36 }
 0x532   : > { %4208 = vrcp.f32 %v1498_v61  ;;  %vm1505_vm6 = vweird.f32 %v1498_v61  ;;  %v1511_v0 = vand.u32 2147483648, %v1498_v61  ;;  %v1509_v3 = vand.u32 2147483647, %v1498_v61 }
 0x533   : > { %4210 = vrcp.f32 %v1499_v45 }
 0x534   : > { %v1512_v8 = vor.u32 1.1754944e-38, %v1511_v0  ;;  %vm1510_vm10 = vcmp.eq.f32.partialorder %v1509_v3, 8.507059e+37 }
 0x538   : > { %1573 = vrot.lane.b32.xlu0 %v1479_v29, %s4669_s0  ;;  %v4209_v49 = vpop.eup %4208 }
 0x539   : > { %v4211_v51 = vpop.eup %4210  ;;  %v1501_v53 = vmul.f32 %v4209_v49, %v1498_v61  ;;  %vm1506_vm4 = vweird.f32 %v4209_v49  ;;  %v3753_v61 = vld [vmem:[%s6180_s8 + $0x8] sm:$0xff] }
 0x53a   : > { %v1516_v54 = vmul.f32 %v4211_v51, %v1499_v45  ;;  %vm1521_vm5 = vweird.f32 %v4211_v51  ;;  %vm1507_vm7 = vmor %vm1505_vm6, %vm1506_vm4  ;;  %1773 = vmatpush.bf16.msrb.mxu0 %v3753_v61  ;;  %v3752_v45 = vld [vmem:[%s6180_s8] sm:$0xff] }
 0x53b   : > { %v1502_v55 = vsub.f32 1.0, %v1501_v53  ;;  %vm1522_vm9 = vmor %vm1520_vm8, %vm1521_vm5 }
 0x53c   : > { %v1517_v56 = vsub.f32 1.0, %v1516_v54 }
 0x53d   : > { %v1503_v57 = vmul.f32 %v4209_v49, %v1502_v55 }
 0x53e   : > { %v1518_v58 = vmul.f32 %v4211_v51, %v1517_v56  ;;  %1774 = vmatpush.bf16.msrb.mxu0 %v3752_v45 }
 0x53f   : > { %v1504_v60 = vadd.f32 %v4209_v49, %v1503_v57 }
 0x540   : > { %v1519_v63 = vadd.f32 %v4211_v51, %v1518_v58 }
 0x541   : > { %v1508_v6 = vsel %vm1507_vm7, %v4209_v49, %v1504_v60 }
 0x542   : > { %v1523_v7 = vsel %vm1522_vm9, %v4211_v51, %v1519_v63  ;;  %v1513_v10 = vsel %vm1510_vm10, %v1512_v8, %v1508_v6 }
 0x543   : > { %v1528_v11 = vsel %vm1525_vm11, %v1527_v9, %v1523_v7 }
 0x572   : > { %v1531_v46 = vpop.permute.xlu2 %1530 }
 0x573   : > { %v1536_v13 = vmul.f32 %v1531_v46, %v1513_v10 }
 0x57a   : > { %v1541_v48 = vpop.permute.xlu2 %1540  ;;  %v1487_v50 = vpop.permute.xlu1 %1486 }
 0x57b   : > { %1546 = vst.msk [vmem:[%s5147_s29] sm:$0xff] %vm1149_vm0, %v1541_v48  ;;  %v1491_v52 = vmul.f32 %v1487_v50, %v1446_v23  ;;  %v3747_v23 = vld [vmem:[%s6177_s12 + $0x8] sm:$0xff]  ;;  %v4170_v50 = vld [vmem:[%s6181_s4] ss:$0 sm:$0xff] }
 0x57c   : > { %1650 = vmatpush.bf16.msrb.mxu3 %v3747_v23 }
 0x57d   : > { %1552 = vrot.lane.b32.xlu2 %v1491_v52, %s6172_s9 }
 0x580   : > { %1651 = vmatpush.bf16.msrb.mxu3 %v3746_v24 }
 0x585   : > { %1571 = vrot.lane.b32.xlu2 %v1478_v33, %s4669_s0 }
 0x58a   : > { %v1485_v59 = vpop.permute.xlu0 %1484 }
 0x58b   : > { %v1490_v62 = vmul.f32 %v1485_v59, %v5277_v14 }
 0x58d   : > { %v1658_v4 = vpack.c.bf16 %v1491_v52, %v1490_v62 }
 0x58f   : > { %1668 = vrot.lane.b32.xlu1 %v1658_v4, %s6172_s9 }
 0x592   : > { %v1533_v12 = vpop.permute.xlu0 %1532 }
 0x593   : > { %v1537_v14 = vmul.f32 %v1533_v12, %v1528_v11 }
 0x595   : > { %v1580_v15 = vpack.c.bf16 %v1537_v14, %v1536_v13 }
 0x597   : > { %1550 = vrot.lane.b32.xlu1 %v1490_v62, %s6172_s9  ;;  %3642 = vmatmul.msk.bf16.vlgmr.msra.gmra.mxu3 %vm1149_vm0, %v1580_v15  ;;  %v4670_v62 = vmov 1.0  }
 0x598   : > { %1784 = vst.msk [vmem:[#allocation5] sm:$0xff] %vm1781_vm12, %v4670_v62 }
 0x599   : > { %1785 = vst.msk [vmem:[#allocation5 + $0x8] sm:$0xff] %vm1781_vm12, %v4670_v62 }
 0x59a   : > { %v1543_v16 = vpop.permute.xlu0 %1542 }
 0x59b   : > { %1547 = vst.msk [vmem:[%s5147_s29 + $0x8] sm:$0xff] %vm1149_vm0, %v1543_v16 }
 0x59f   : > { %1563 = vrot.lane.b32.xlu1 %v5196_v2, %s4669_s0  ;;  %s6179_s0 = sld [smem:[#allocation80_spill]] }
 0x5a2   : > { %v1562_v17 = vpop.permute.xlu0 %1561 }
 0x5a3   : > { %1567 = vst.msk [vmem:[%s5150_s18] sm:$0xff] %vm1149_vm0, %v1562_v17 }
 0x5a5   : > { %v3751_v35 = vld [vmem:[%s6179_s0 + $0x8] sm:$0xff]  ;;  %v3750_v37 = vld [vmem:[%s6179_s0] sm:$0xff] }
 0x5a6   : > { %1731 = vmatpush.bf16.msrb.mxu2 %v3751_v35 }
 0x5aa   : > { %v1574_v18 = vpop.permute.xlu0 %1573  ;;  %1732 = vmatpush.bf16.msrb.mxu2 %v3750_v37 }
 0x5ab   : > { %3633 = vst.msk [vmem:[%s5150_s18 + $0x18] sm:$0xff] %vm1149_vm0, %v1574_v18 }
 0x5d7   : > { %v1553_v21 = vpop.permute.xlu2 %1552 }
 0x5d8   : > { %3631 = vst.msk [vmem:[%s5147_s29 + $0x18] sm:$0xff] %vm1149_vm0, %v1553_v21 }
 0x5df   : > { %v1572_v2 = vpop.permute.xlu2 %1571 }
 0x5e0   : > { %3632 = vst.msk [vmem:[%s5150_s18 + $0x10] sm:$0xff] %vm1149_vm0, %v1572_v2 }
 0x601   : > { %v1669_v22 = vpop.permute.xlu1 %1668 }
 0x602   : > { %3660 = vmatmul.msk.bf16.vlgmr.msrb.gmra.mxu1 %vm1149_vm0, %v1669_v22 }
 0x609   : > { %v1551_v25 = vpop.permute.xlu1 %1550 }
 0x60a   : > { %3630 = vst.msk [vmem:[%s5147_s29 + $0x10] sm:$0xff] %vm1149_vm0, %v1551_v25 }
 0x611   : > { %v1564_v26 = vpop.permute.xlu1 %1563 }
 0x612   : > { %1568 = vst.msk [vmem:[%s5150_s18 + $0x8] sm:$0xff] %vm1149_vm0, %v1564_v26 }
 0x61a   : > { %v1613_v28 = vpop.f32.mrf.mxu3 }
 0x61b   : > { %v1614_v29 = vadd.f32 %v4168_v27, %v1613_v28 }
 0x61d   : > { %v1618_v30 = vmax.f32 %v1614_v29, 0.0 }
 0x61f   : > { %1786 = vst.msk [vmem:[#allocation6] sm:$0xff] %vm1149_vm0, %v1618_v30 }
 0x622   : > { %v1615_v31 = vpop.f32.mrf.mxu3 }
 0x623   : > { %v1616_v32 = vadd.f32 %v4168_v27, %v1615_v31 }
 0x625   : > { %v1619_v33 = vmax.f32 %v1616_v32, 0.0 }
 0x627   : > { %v1620_v34 = vpack.c.bf16 %v1619_v33, %v1618_v30  ;;  %1787 = vst.msk [vmem:[#allocation6 + $0x8] sm:$0xff] %vm1149_vm0, %v1619_v33 }
 0x629   : > { %3651 = vmatmul.msk.bf16.vlgmr.msrb.gmra.mxu3 %vm1149_vm0, %v1620_v34 }
 0x67f   : > { %v1694_v40 = vpop.f32.mrf.mxu1 }
 0x680   : > { %v1695_v41 = vadd.f32 %v4169_v38, %v1694_v40 }
 0x682   : > { %4212 = vtanh.f32 %v1695_v41 }
 0x687   : > { %v1696_v42 = vpop.f32.mrf.mxu1 }
 0x688   : > { %v4213_v43 = vpop.eup %4212  ;;  %v1697_v36 = vadd.f32 %v4169_v38, %v1696_v42 }
 0x689   : > { %1739 = vst.msk [vmem:[#allocation2] sm:$0xff] %vm1149_vm0, %v4213_v43 }
 0x68a   : > { %4214 = vtanh.f32 %v1697_v36 }
 0x690   : > { %v4215_v44 = vpop.eup %4214 }
 0x691   : > { %1740 = vst.msk [vmem:[#allocation2 + $0x8] sm:$0xff] %vm1149_vm0, %v4215_v44  ;;  %v1701_v39 = vpack.c.bf16 %v4215_v44, %v4213_v43 }
 0x693   : > { %3669 = vmatmul.msk.bf16.vlgmr.msrb.gmra.mxu2 %vm1149_vm0, %v1701_v39 }
 0x6ac   : > { %v1653_v46 = vpop.f32.mrf.mxu3 }
 0x6ad   : > { %v1654_v51 = vadd.f32 %v4170_v50, %v1653_v46 }
 0x6b4   : > { %v1655_v52 = vpop.f32.mrf.mxu3 }
 0x6b5   : > { %v1656_v55 = vadd.f32 %v4170_v50, %v1655_v52 }
 0x716   : > { %v1734_v48 = vpop.f32.mrf.mxu2 }
 0x717   : > { %v1735_v49 = vadd.f32 %v4171_v47, %v1734_v48 }
 0x719   : > { %1741 = vst.msk [vmem:[#allocation3] sm:$0xff] %vm1149_vm0, %v1735_v49  ;;  %v1743_v53 = vadd.f32 %v1735_v49, %v1654_v51 }
 0x71b   : > { %4216 = vtanh.f32 %v1743_v53 }
 0x71e   : > { %v1736_v54 = vpop.f32.mrf.mxu2 }
 0x71f   : > { %v1737_v56 = vadd.f32 %v4171_v47, %v1736_v54 }
 0x721   : > { %1742 = vst.msk [vmem:[#allocation3 + $0x8] sm:$0xff] %vm1149_vm0, %v1737_v56  ;;  %v1744_v57 = vadd.f32 %v1737_v56, %v1656_v55  ;;  %v4217_v58 = vpop.eup %4216 }
 0x723   : > { %4218 = vtanh.f32 %v1744_v57 }
 0x729   : > { %v4219_v59 = vpop.eup %4218 }
 0x72a   : > { %v1747_v60 = vpack.c.bf16 %v4219_v59, %v4217_v58 }
 0x72c   : > { %3678 = vmatmul.msk.bf16.vlgmr.msrb.gmra.mxu0 %vm1149_vm0, %v1747_v60 }
 0x7a9   : > { %v1776_v63 = vpop.f32.mrf.mxu0 }
 0x7aa   : > { %1782 = vst.msk [vmem:[#allocation4] sm:$0xff] %vm1781_vm12, %v1776_v63 }
 0x7b1   : > { %v1778_v0 = vpop.f32.mrf.mxu0 }
 0x7b2   : > { %1783 = vst.msk [vmem:[#allocation4 + $0x8] sm:$0xff] %vm1781_vm12, %v1778_v0 }
 0x7b3 PF: > { %s6182_s8 = sld [smem:[#allocation82_spill]]  ;;  %v5368_v3 = vld [vmem:[#allocation3] sm:$0xff]  ;;  %v5372_v6 = vld [vmem:[#allocation3 + $0x8] sm:$0xff]  ;;  %vm1998_vm0 = vcmask 261120   ;;  %vm2275_vm13 = vcmask 130112   ;;  %vm2322_vm14 = vcmask 1041409  }
 0x7b4   : > { %v3762_v4 = vld [vmem:[%s5116_s25] sm:$0xff]   ;;  %v1870_v5 = vperm.slane %v5368_v3, 0  ;;  %v1859_v8 = vrot.slane %v5368_v3, 4  ;;  %v1878_v16 = vperm.slane %v5372_v6, 0  ;;  %v1866_v19 = vrot.slane %v5372_v6, 4  ;;  %v3889_v30 = vld [vmem:[%s5116_s25 + $0x8] sm:$0xff]  }
 0x7b5   : > { %v3896_v7 = vld [vmem:[%s5116_s25 + $0x40] sm:$0xff]   ;;  %v3763_v10 = vunpack.c.l.bf16 %v3762_v4  ;;  %v3764_v11 = vunpack.c.h.bf16 %v3762_v4  ;;  %v1856_v27 = vrot.slane %v5368_v3, 1  ;;  %v3767_v33 = vunpack.c.l.bf16 %v3889_v30  ;;  %v3897_v37 = vld [vmem:[%s5116_s25 + $0x48] sm:$0xff]   ;;  %p3703_p13 = scmp.ne.s32.totalorder %s4619_s26, 1 }
 0x7b6   : > { %v3795_v12 = vunpack.c.l.bf16 %v3896_v7  ;;  %v3796_v13 = vunpack.c.h.bf16 %v3896_v7  ;;  %v3900_v14 = vld [vmem:[%s5116_s25 + $0x60] sm:$0xff]   ;;  %v1882_v25 = vperm.slane %v1866_v19, 0  ;;  %v1874_v26 = vperm.slane %v1859_v8, 0  ;;  %v3901_v40 = vld [vmem:[%s5116_s25 + $0x68] sm:$0xff]  }
 0x7b7   : > { %v3892_v15 = vld [vmem:[%s5116_s25 + $0x20] sm:$0xff]   ;;  %v3811_v17 = vunpack.c.l.bf16 %v3900_v14  ;;  %v3812_v18 = vunpack.c.h.bf16 %v3900_v14  ;;  %v1902_v20 = vadd.f32 %v3763_v10, %v1870_v5  ;;  %v1903_v21 = vadd.f32 %v3764_v11, %v1870_v5  ;;  %v3893_v44 = vld [vmem:[%s5116_s25 + $0x28] sm:$0xff]   ;;  %v3890_v11 = vld [vmem:[%s5116_s25 + $0x10] sm:$0xff]  }
 0x7b8   : > { %v3779_v2 = vunpack.c.l.bf16 %v3892_v15  ;;  %v3780_v22 = vunpack.c.h.bf16 %v3892_v15  ;;  %v1918_v23 = vadd.f32 %v3795_v12, %v1878_v16  ;;  %v1919_v24 = vadd.f32 %v3796_v13, %v1878_v16  ;;  %v3898_v15 = vld [vmem:[%s5116_s25 + $0x50] sm:$0xff]  }
 0x7b9   : > { %v3755_v1 = vld [vmem:[%s6182_s8 + $0x8] sm:$0xff]  ;;  %v3754_v9 = vld [vmem:[%s6182_s8] sm:$0xff]  ;;  %4223 = vtanh.f32 %v1902_v20  ;;  %v1926_v28 = vadd.f32 %v3811_v17, %v1882_v25  ;;  %v1927_v29 = vadd.f32 %v3812_v18, %v1882_v25  ;;  %v1871_v34 = vperm.slane %v1856_v27, 0 }
 0x7ba   : > { %2053 = vmatpush.bf16.msra.mxu0 %v3755_v1  ;;  %3920 = vmatpush.bf16.msra.mxu2 %v3755_v1  ;;  %4225 = vtanh.f32 %v1903_v21  ;;  %v1910_v31 = vadd.f32 %v3779_v2, %v1874_v26  ;;  %v1911_v32 = vadd.f32 %v3780_v22, %v1874_v26  ;;  %v1867_v35 = vrot.slane %v5372_v6, 5  ;;  %v3902_v2 = vld [vmem:[%s5116_s25 + $0x70] sm:$0xff]  }
 0x7bb   : > { %3921 = vmatpush.bf16.msra.mxu3 %v3755_v1  ;;  %3919 = vmatpush.bf16.msra.mxu1 %v3755_v1  ;;  %4227 = vtanh.f32 %v1918_v23  ;;  %v3768_v38 = vunpack.c.h.bf16 %v3889_v30  ;;  %v1860_v42 = vrot.slane %v5368_v3, 5  ;;  %v1863_v43 = vrot.slane %v5372_v6, 1 }
 0x7bc   : > { %4229 = vtanh.f32 %v1919_v24  ;;  %v3799_v39 = vunpack.c.l.bf16 %v3897_v37  ;;  %v3800_v61 = vunpack.c.h.bf16 %v3897_v37  ;;  %v1904_v47 = vadd.f32 %v3767_v33, %v1871_v34 }
 0x7bd   : > { %4231 = vtanh.f32 %v1926_v28  ;;  %v3815_v48 = vunpack.c.l.bf16 %v3901_v40  ;;  %v1883_v49 = vperm.slane %v1867_v35, 0  ;;  %v1905_v51 = vadd.f32 %v3768_v38, %v1871_v34 }
 0x7be   : > { %2054 = vmatpush.bf16.msra.mxu0 %v3754_v9  ;;  %3923 = vmatpush.bf16.msra.mxu2 %v3754_v9  ;;  %4233 = vtanh.f32 %v1927_v29  ;;  %v3816_v52 = vunpack.c.h.bf16 %v3901_v40  ;;  %v1879_v53 = vperm.slane %v1863_v43, 0  ;;  %v3783_v56 = vunpack.c.l.bf16 %v3893_v44  ;;  %v3894_v29 = vld [vmem:[%s5116_s25 + $0x30] sm:$0xff]  }
 0x7bf   : > { %3924 = vmatpush.bf16.msra.mxu3 %v3754_v9  ;;  %3922 = vmatpush.bf16.msra.mxu1 %v3754_v9  ;;  %v4224_v41 = vpop.eup %4223  ;;  %4235 = vtanh.f32 %v1910_v31  ;;  %v1875_v57 = vperm.slane %v1860_v42, 0  ;;  %v3784_v59 = vunpack.c.h.bf16 %v3893_v44  ;;  %v1928_v1 = vadd.f32 %v3815_v48, %v1883_v49 }
 0x7c0   : > { %v4226_v36 = vpop.eup %4225  ;;  %4237 = vtanh.f32 %v1911_v32  ;;  %v1920_v60 = vadd.f32 %v3799_v39, %v1879_v53  ;;  %v1921_v62 = vadd.f32 %v3800_v61, %v1879_v53  ;;  %v1929_v5 = vadd.f32 %v3816_v52, %v1883_v49  ;;  %v3891_v49 = vld [vmem:[%s5116_s25 + $0x18] sm:$0xff]  }
 0x7c1   : > { %v4228_v45 = vpop.eup %4227  ;;  %v1966_v46 = vpack.c.bf16 %v4226_v36, %v4224_v41  ;;  %4239 = vtanh.f32 %v1904_v47  ;;  %v1912_v8 = vadd.f32 %v3783_v56, %v1875_v57  ;;  %v1913_v9 = vadd.f32 %v3784_v59, %v1875_v57  ;;  %v3899_v53 = vld [vmem:[%s5116_s25 + $0x58] sm:$0xff]  }
 0x7c2   : > { %v4230_v50 = vpop.eup %4229  ;;  %4241 = vtanh.f32 %v1905_v51  ;;  %v1857_v10 = vrot.slane %v5368_v3, 2  ;;  %v1864_v13 = vrot.slane %v5372_v6, 2  ;;  %v3771_v17 = vunpack.c.l.bf16 %v3890_v11 }
 0x7c3   : > { %v4232_v54 = vpop.eup %4231  ;;  %3687 = vmatmul.msk.bf16.vlgmr.msra.gmra.mxu0 %vm1998_vm0, %v1966_v46  ;;  %v1974_v55 = vpack.c.bf16 %v4230_v50, %v4228_v45  ;;  %4243 = vtanh.f32 %v1920_v60  ;;  %v1868_v19 = vrot.slane %v5372_v6, 6  ;;  %v3772_v21 = vunpack.c.h.bf16 %v3890_v11 }
 0x7c4   : > { %v4234_v58 = vpop.eup %4233  ;;  %4245 = vtanh.f32 %v1921_v62  ;;  %v1872_v18 = vperm.slane %v1857_v10, 0  ;;  %v3803_v24 = vunpack.c.l.bf16 %v3898_v15  ;;  %v1880_v25 = vperm.slane %v1864_v13, 0  ;;  %v3903_v62 = vld [vmem:[%s5116_s25 + $0x78] sm:$0xff]  }
 0x7c5   : > { %v4236_v63 = vpop.eup %4235  ;;  %3695 = vmatmul.msk.bf16.vlgmr.msra.gmra.mxu2 %vm1998_vm0, %v1974_v55  ;;  %v1978_v0 = vpack.c.bf16 %v4234_v58, %v4232_v54  ;;  %4247 = vtanh.f32 %v1928_v1  ;;  %v1861_v26 = vrot.slane %v5368_v3, 6  ;;  %v3804_v28 = vunpack.c.h.bf16 %v3898_v15 }
 0x7c6   : > { %v4238_v4 = vpop.eup %4237  ;;  %4249 = vtanh.f32 %v1929_v5  ;;  %v1906_v32 = vadd.f32 %v3771_v17, %v1872_v18  ;;  %v3819_v33 = vunpack.c.l.bf16 %v3902_v2  ;;  %v1884_v34 = vperm.slane %v1868_v19, 0 }
 0x7c7   : > { %3699 = vmatmul.msk.bf16.vlgmr.msra.gmra.mxu3 %vm1998_vm0, %v1978_v0  ;;  %v1970_v7 = vpack.c.bf16 %v4238_v4, %v4236_v63  ;;  %v4240_v12 = vpop.eup %4239  ;;  %4251 = vtanh.f32 %v1912_v8  ;;  %v1907_v37 = vadd.f32 %v3772_v21, %v1872_v18  ;;  %v3820_v38 = vunpack.c.h.bf16 %v3902_v2 }
 0x7c8   : > { %v4242_v14 = vpop.eup %4241  ;;  %4253 = vtanh.f32 %v1913_v9  ;;  %v1922_v41 = vadd.f32 %v3803_v24, %v1880_v25  ;;  %v3787_v42 = vunpack.c.l.bf16 %v3894_v29  ;;  %v1876_v43 = vperm.slane %v1861_v26, 0  ;;  %v3895_v9 = vld [vmem:[%s5116_s25 + $0x38] sm:$0xff]  }
 0x7c9   : > { %3691 = vmatmul.msk.bf16.vlgmr.msra.gmra.mxu1 %vm1998_vm0, %v1970_v7  ;;  %v4244_v16 = vpop.eup %4243  ;;  %v1967_v23 = vpack.c.bf16 %v4242_v14, %v4240_v12  ;;  %v1923_v36 = vadd.f32 %v3804_v28, %v1880_v25  ;;  %v3788_v44 = vunpack.c.h.bf16 %v3894_v29  ;;  %4255 = vtanh.f32 %v1906_v32 }
 0x7ca   : > { %v4246_v20 = vpop.eup %4245  ;;  %v1930_v61 = vadd.f32 %v3819_v33, %v1884_v34  ;;  %4257 = vtanh.f32 %v1907_v37  ;;  %v1931_v45 = vadd.f32 %v3820_v38, %v1884_v34  ;;  %v1914_v46 = vadd.f32 %v3787_v42, %v1876_v43 }
 0x7cb   : > { %v4248_v22 = vpop.eup %4247  ;;  %v1975_v31 = vpack.c.bf16 %v4246_v20, %v4244_v16  ;;  %4259 = vtanh.f32 %v1922_v41  ;;  %v1915_v47 = vadd.f32 %v3788_v44, %v1876_v43  ;;  %v1858_v48 = vrot.slane %v5368_v3, 3 }
 0x7cc   : > { %v4250_v27 = vpop.eup %4249  ;;  %4261 = vtanh.f32 %v1923_v36  ;;  %v1865_v51 = vrot.slane %v5372_v6, 3  ;;  %v4671_v54 = vmov 0   ;;  %v3775_v56 = vunpack.c.l.bf16 %v3891_v49 }
 0x7cd   : > { %v4252_v30 = vpop.eup %4251  ;;  %v1979_v40 = vpack.c.bf16 %v4250_v27, %v4248_v22  ;;  %4263 = vtanh.f32 %v1930_v61  ;;  %4220 = vset.pattern.permute.xlu0 %v4671_v54  ;;  %4222 = vset.pattern.permute.xlu1 %v4671_v54  ;;  %v1873_v57 = vperm.slane %v1858_v48, 0  ;;  %v1869_v58 = vrot.slane %v5372_v6, 7 }
 0x7ce   : > { %v4254_v35 = vpop.eup %4253  ;;  %4265 = vtanh.f32 %v1931_v45  ;;  %4221 = vset.pattern.permute.xlu2 %v4671_v54  ;;  %v3776_v60 = vunpack.c.h.bf16 %v3891_v49  ;;  %v3807_v1 = vunpack.c.l.bf16 %v3899_v53  ;;  %v1881_v4 = vperm.slane %v1865_v51, 0 }
 0x7cf   : > { %v1971_v39 = vpack.c.bf16 %v4254_v35, %v4252_v30  ;;  %v4256_v50 = vpop.eup %4255  ;;  %4267 = vtanh.f32 %v1914_v46  ;;  %v1862_v5 = vrot.slane %v5368_v3, 7  ;;  %v3808_v8 = vunpack.c.h.bf16 %v3899_v53 }
 0x7d0   : > { %v4258_v52 = vpop.eup %4257  ;;  %4269 = vtanh.f32 %v1915_v47  ;;  %v1908_v12 = vadd.f32 %v3775_v56, %v1873_v57  ;;  %v3823_v13 = vunpack.c.l.bf16 %v3903_v62  ;;  %v1885_v14 = vperm.slane %v1869_v58, 0 }
 0x7d1   : > { %v4260_v55 = vpop.eup %4259  ;;  %v1968_v0 = vpack.c.bf16 %v4258_v52, %v4256_v50  ;;  %v1909_v6 = vadd.f32 %v3776_v60, %v1873_v57  ;;  %v3824_v16 = vunpack.c.h.bf16 %v3903_v62  ;;  %v1924_v18 = vadd.f32 %v3807_v1, %v1881_v4 }
 0x7d2   : > { %v4262_v59 = vpop.eup %4261  ;;  %v3791_v19 = vunpack.c.l.bf16 %v3895_v9  ;;  %v1877_v20 = vperm.slane %v1862_v5, 0  ;;  %v1925_v21 = vadd.f32 %v3808_v8, %v1881_v4  ;;  %v3792_v2 = vunpack.c.h.bf16 %v3895_v9 }
 0x7d3   : > { %3688 = vmatmul.msk.bf16.gmra.mxu0 %vm1998_vm0, %v1967_v23  ;;  %v4264_v63 = vpop.eup %4263  ;;  %v1976_v11 = vpack.c.bf16 %v4262_v59, %v4260_v55  ;;  %4271 = vtanh.f32 %v1908_v12  ;;  %v1932_v22 = vadd.f32 %v3823_v13, %v1885_v14  ;;  %v1933_v23 = vadd.f32 %v3824_v16, %v1885_v14 }
 0x7d4   : > { %v4266_v7 = vpop.eup %4265  ;;  %4273 = vtanh.f32 %v1909_v6  ;;  %v1916_v24 = vadd.f32 %v3791_v19, %v1877_v20  ;;  %v1917_v25 = vadd.f32 %v3792_v2, %v1877_v20  ;;  %vm2324_vm15 = vcmask 1042434  }
 0x7d5   : > { %3696 = vmatmul.msk.bf16.gmra.mxu2 %vm1998_vm0, %v1975_v31  ;;  %v4268_v10 = vpop.eup %4267  ;;  %v1980_v17 = vpack.c.bf16 %v4266_v7, %v4264_v63  ;;  %4275 = vtanh.f32 %v1924_v18  ;;  %vm2326_vm1 = vcmask 1043459   ;;  %vm2328_vm2 = vcmask 1044484  }
 0x7d6   : > { %v4270_v15 = vpop.eup %4269  ;;  %4277 = vtanh.f32 %v1925_v21  ;;  %vm2330_vm3 = vcmask 1045509   ;;  %vm2332_vm4 = vcmask 1046534   ;;  %vm2334_vm5 = vcmask 1047559  }
 0x7d7   : > { %3700 = vmatmul.msk.bf16.gmra.mxu3 %vm1998_vm0, %v1979_v40  ;;  %v1972_v3 = vpack.c.bf16 %v4270_v15, %v4268_v10  ;;  %4279 = vtanh.f32 %v1932_v22  ;;  %vm2345_vm6 = vcmask 130048   ;;  %vm2698_vm7 = vcmask 7168  }
 0x7d8   : > { %4281 = vtanh.f32 %v1933_v23 }
 0x7d9   : > { %3692 = vmatmul.msk.bf16.gmra.mxu1 %vm1998_vm0, %v1971_v39  ;;  %v4272_v26 = vpop.eup %4271  ;;  %4283 = vtanh.f32 %v1916_v24 }
 0x7da   : > { %v4274_v27 = vpop.eup %4273  ;;  %4285 = vtanh.f32 %v1917_v25 }
 0x7db   : > { %v4276_v28 = vpop.eup %4275  ;;  %v1969_v31 = vpack.c.bf16 %v4274_v27, %v4272_v26 }
 0x7dc   : > { %v4278_v29 = vpop.eup %4277 }
 0x7dd   : > { %v4280_v30 = vpop.eup %4279  ;;  %v1977_v34 = vpack.c.bf16 %v4278_v29, %v4276_v28  ;;  %v2270_v28 = vlaneseq }
 0x7de   : > { %v4282_v32 = vpop.eup %4281 }
 0x7df   : > { %v4284_v33 = vpop.eup %4283  ;;  %v1981_v37 = vpack.c.bf16 %v4282_v32, %v4280_v30  ;;  %v5529_v30 = vand.u32 127, %v2270_v28 }
 0x7e0   : > { %v4286_v35 = vpop.eup %4285 }
 0x7e1   : > { %v1973_v38 = vpack.c.bf16 %v4286_v35, %v4284_v33  ;;  %v5534_v33 = vadd.s32 4294967288, %v5529_v30 }
 0x7e3   : > { %3689 = vmatmul.msk.bf16.gmra.mxu0 %vm1998_vm0, %v1968_v0 }
 0x7e5   : > { %3697 = vmatmul.msk.bf16.gmra.mxu2 %vm1998_vm0, %v1976_v11 }
 0x7e7   : > { %3701 = vmatmul.msk.bf16.gmra.mxu3 %vm1998_vm0, %v1980_v17 }
 0x7e9   : > { %3693 = vmatmul.msk.bf16.gmra.mxu1 %vm1998_vm0, %v1972_v3 }
 0x7f3   : > { %3690 = vmatmul.msk.bf16.gmra.mxu0 %vm1998_vm0, %v1969_v31 }
 0x7f5   : > { %3698 = vmatmul.msk.bf16.gmra.mxu2 %vm1998_vm0, %v1977_v34 }
 0x7f7   : > { %3702 = vmatmul.msk.bf16.gmra.mxu3 %vm1998_vm0, %v1981_v37 }
 0x7f9   : > { %3694 = vmatmul.msk.bf16.gmra.mxu1 %vm1998_vm0, %v1973_v38 }
 0x840   : > { %v5423_v40 = vpop.f32.mrf.mxu0 }
 0x841   : > { %2175 = vperm.xlu0 %4220, %v5423_v40  }
 0x846   : > { %v5426_v41 = vpop.f32.mrf.mxu1 }
 0x847   : > { %2199 = vperm.xlu2 %4221, %v5426_v41  }
 0x848   : > { %v5429_v42 = vpop.f32.mrf.mxu2  ;;  %v5431_v43 = vpop.f32.mrf.mxu0 }
 0x849   : > { %6183 = vst [vmem:[#allocation57_spill] sm:$0xff] %v5429_v42  ;;  %2223 = vperm.xlu1 %4222, %v5429_v42   ;;  %2178 = vperm.xlu0 %4220, %v5431_v43  }
 0x84a   : > { %v5435_v36 = vpop.f32.mrf.mxu3 }
 0x84e   : > { %v5437_v44 = vpop.f32.mrf.mxu1 }
 0x850   : > { %v5439_v39 = vpop.f32.mrf.mxu2  ;;  %v5441_v61 = vpop.f32.mrf.mxu0 }
 0x851   : > { %2226 = vperm.xlu2 %4221, %v5439_v39   ;;  %2247 = vperm.xlu0 %4220, %v5435_v36  }
 0x852   : > { %v5445_v45 = vpop.f32.mrf.mxu3  ;;  %2181 = vperm.xlu1 %4222, %v5441_v61  }
 0x853   : > { %6184 = vst [vmem:[#allocation58_spill] sm:$0xff] %v5445_v45 }
 0x856   : > { %v5448_v46 = vpop.f32.mrf.mxu1 }
 0x858   : > { %v5450_v47 = vpop.f32.mrf.mxu2  ;;  %v5457_v49 = vpop.f32.mrf.mxu0 }
 0x859   : > { %2202 = vperm.xlu0 %4220, %v5437_v44  }
 0x85a   : > { %v5453_v48 = vpop.f32.mrf.mxu3  ;;  %2250 = vperm.xlu1 %4222, %v5445_v45  }
 0x85b   : > { %2253 = vperm.xlu2 %4221, %v5453_v48  }
 0x85e   : > { %v5459_v50 = vpop.f32.mrf.mxu1 }
 0x860   : > { %v5461_v51 = vpop.f32.mrf.mxu2  ;;  %v5468_v53 = vpop.f32.mrf.mxu0 }
 0x861   : > { %6185 = vst [vmem:[#allocation59_spill] sm:$0xff] %v5461_v51  ;;  %2229 = vperm.xlu0 %4220, %v5450_v47  }
 0x862   : > { %2205 = vperm.xlu1 %4222, %v5448_v46   ;;  %v5466_v52 = vpop.f32.mrf.mxu3 }
 0x863   : > { %2208 = vperm.xlu2 %4221, %v5459_v50  }
 0x866   : > { %v5470_v54 = vpop.f32.mrf.mxu1 }
 0x868   : > { %v5474_v55 = vpop.f32.mrf.mxu2  ;;  %v5482_v57 = vpop.f32.mrf.mxu0 }
 0x869   : > { %2256 = vperm.xlu0 %4220, %v5466_v52  }
 0x86a   : > { %2184 = vperm.xlu1 %4222, %v5457_v49   ;;  %v5486_v59 = vpop.f32.mrf.mxu3 }
 0x86b   : > { %2187 = vperm.xlu2 %4221, %v5468_v53   ;;  %6186 = vst [vmem:[#allocation60_spill] sm:$0xff] %v5486_v59 }
 0x86e   : > { %v5479_v56 = vpop.f32.mrf.mxu1 }
 0x870   : > { %v5484_v58 = vpop.f32.mrf.mxu2  ;;  %v5493_v62 = vpop.f32.mrf.mxu0 }
 0x871   : > { %2211 = vperm.xlu0 %4220, %v5470_v54  }
 0x872   : > { %2232 = vperm.xlu1 %4222, %v5461_v51   ;;  %v5500_v0 = vpop.f32.mrf.mxu3 }
 0x873   : > { %2235 = vperm.xlu2 %4221, %v5474_v55   ;;  %6188 = vst [vmem:[#allocation62_spill] sm:$0xff] %v5500_v0 }
 0x876   : > { %v5491_v60 = vpop.f32.mrf.mxu1 }
 0x878   : > { %v5495_v63 = vpop.f32.mrf.mxu2  ;;  %v5511_v7 = vpop.f32.mrf.mxu0 }
 0x879   : > { %2238 = vperm.xlu0 %4220, %v5484_v58   ;;  %6187 = vst [vmem:[#allocation61_spill] sm:$0xff] %v5495_v63 }
 0x87a   : > { %2259 = vperm.xlu1 %4222, %v5486_v59   ;;  %v5509_v5 = vpop.f32.mrf.mxu3 }
 0x87b   : > { %2190 = vperm.xlu2 %4221, %v5482_v57  }
 0x87e   : > { %v5502_v1 = vpop.f32.mrf.mxu1 }
 0x880   : > { %v5504_v4 = vpop.f32.mrf.mxu2 }
 0x881   : > { %2193 = vperm.xlu0 %4220, %v5493_v62  }
 0x882   : > { %2214 = vperm.xlu1 %4222, %v5479_v56   ;;  %v5516_v8 = vpop.f32.mrf.mxu3 }
 0x883   : > { %2217 = vperm.xlu2 %4221, %v5491_v60   ;;  %6189 = vst [vmem:[#allocation63_spill] sm:$0xff] %v5516_v8 }
 0x889   : > { %2220 = vperm.xlu0 %4220, %v5502_v1  }
 0x88a   : > { %2241 = vperm.xlu1 %4222, %v5495_v63  }
 0x88b   : > { %2244 = vperm.xlu2 %4221, %v5504_v4  }
 0x891   : > { %2265 = vperm.xlu0 %4220, %v5509_v5  }
 0x892   : > { %2196 = vperm.xlu1 %4222, %v5511_v7  }
 0x893   : > { %2262 = vperm.xlu2 %4221, %v5500_v0  }
 0x89a   : > { %2268 = vperm.xlu1 %4222, %v5516_v8  }
 0x8a1   : > { %v2200_v9 = vpop.permute.xlu2 %2199 }
 0x8a2   : > { %v2286_v59 = vperm.slane %v2200_v9, %v5529_v30 }
 0x8ab   : > { %v2227_v11 = vpop.permute.xlu2 %2226 }
 0x8ac   : > { %v2299_v37 = vperm.slane %v2227_v11, %v5534_v33 }
 0x8b3   : > { %v2176_v10 = vpop.permute.xlu0 %2175 }
 0x8b4   : > { %v2272_v38 = vperm.slane %v2176_v10, %v5529_v30 }
 0x8b5   : > { %v5519_v14 = vpop.permute.xlu2 %2253 }
 0x8b6   : > { %v2313_v51 = vperm.slane %v5519_v14, %v5529_v30 }
 0x8bb   : > { %v2179_v12 = vpop.permute.xlu0 %2178  ;;  %v2224_v13 = vpop.permute.xlu1 %2223 }
 0x8bc   : > { %v2298_v34 = vperm.slane %v2224_v13, %v5529_v30  ;;  %v2274_v35 = vperm.slane %v2179_v12, %v5534_v33 }
 0x8bd   : > { %v2209_v16 = vpop.permute.xlu2 %2208 }
 0x8be   : > { %v2300_v13 = vsel %vm2275_vm13, %v2299_v37, %v2298_v34  ;;  %v2276_v12 = vsel %vm2275_vm13, %v2274_v35, %v2272_v38 }
 0x8c3   : > { %v2248_v15 = vpop.permute.xlu0 %2247 }
 0x8c4   : > { %v2182_v6 = vpop.permute.xlu1 %2181 }
 0x8c5   : > { %v2188_v21 = vpop.permute.xlu2 %2187  ;;  %v2277_v11 = vperm.slane %v2182_v6, %v5529_v30 }
 0x8cb   : > { %v2203_v17 = vpop.permute.xlu0 %2202 }
 0x8cc   : > { %v2251_v18 = vpop.permute.xlu1 %2250  ;;  %v2287_v10 = vperm.slane %v2203_v17, %v5534_v33 }
 0x8cd   : > { %v2236_v22 = vpop.permute.xlu2 %2235 }
 0x8ce   : > { %v2304_v0 = vperm.slane %v2236_v22, %v5529_v30  ;;  %v2280_v22 = vperm.slane %v2188_v21, %v5529_v30 }
 0x8d3   : > { %v2230_v19 = vpop.permute.xlu0 %2229 }
 0x8d4   : > { %v2206_v20 = vpop.permute.xlu1 %2205  ;;  %v2301_v9 = vperm.slane %v2230_v19, %v5529_v30  ;;  %v2290_v19 = vperm.slane %v2209_v16, %v5534_v33 }
 0x8d5   : > { %v2191_v25 = vpop.permute.xlu2 %2190  ;;  %v2289_v14 = vperm.slane %v2206_v20, %v5529_v30  ;;  %v2288_v20 = vsel %vm2275_vm13, %v2287_v10, %v2286_v59 }
 0x8d6   : > { %v2281_v35 = vperm.slane %v2191_v25, %v5534_v33 }
 0x8db   : > { %v5521_v2 = vpop.permute.xlu0 %2256 }
 0x8dc   : > { %v2185_v3 = vpop.permute.xlu1 %2184  ;;  %v2314_v21 = vperm.slane %v5521_v2, %v5534_v33 }
 0x8dd   : > { %v5527_v29 = vpop.permute.xlu2 %2217  ;;  %v2278_v28 = vperm.slane %v2185_v3, %v5534_v33 }
 0x8e3   : > { %v5523_v23 = vpop.permute.xlu0 %2211 }
 0x8e4   : > { %v2233_v24 = vpop.permute.xlu1 %2232 }
 0x8e5   : > { %v2302_v45 = vperm.slane %v2233_v24, %v5534_v33  ;;  %v2245_v63 = vpop.permute.xlu2 %2244  ;;  %v2311_v24 = vperm.slane %v2251_v18, %v5534_v33 }
 0x8e6   : > { %v2308_v17 = vperm.slane %v2245_v63, %v5534_v33 }
 0x8e7   : > { %v2303_v6 = vsel %vm2275_vm13, %v2302_v45, %v2301_v9  ;;  %v2291_v45 = vsel %vm2275_vm13, %v2290_v19, %v2289_v14 }
 0x8e8   : > { %v2336_v16 = vsel %vm2322_vm14, %v2303_v6, %v2300_v13  ;;  %v2295_v13 = vperm.slane %v5527_v29, %v5529_v30 }
 0x8eb   : > { %v2239_v26 = vpop.permute.xlu0 %2238 }
 0x8ec   : > { %v5525_v27 = vpop.permute.xlu1 %2259  ;;  %v2305_v42 = vperm.slane %v2239_v26, %v5534_v33  ;;  %v2279_v26 = vsel %vm2275_vm13, %v2278_v28, %v2277_v11 }
 0x8ed   : > { %v2323_v63 = vsel %vm2322_vm14, %v2279_v26, %v2276_v12  ;;  %v2263_v12 = vpop.permute.xlu2 %2262 }
 0x8ee   : > { %v2306_v18 = vsel %vm2275_vm13, %v2305_v42, %v2304_v0  ;;  %v2317_v14 = vperm.slane %v2263_v12, %v5534_v33 }
 0x8ef   : > { %v2337_v42 = vsel %vm2324_vm15, %v2306_v18, %v2336_v16  ;;  %v5606_v16 = vld [vmem:[#allocation4] sm:$0xff] }
 0x8f3   : > { %v2194_v32 = vpop.permute.xlu0 %2193 }
 0x8f4   : > { %v5531_v31 = vpop.permute.xlu1 %2214  ;;  %v2283_v0 = vperm.slane %v2194_v32, %v5529_v30 }
 0x8f5   : > { %v2293_v28 = vperm.slane %v5531_v31, %v5534_v33  ;;  %v2316_v31 = vperm.slane %v5525_v27, %v5529_v30 }
 0x8fb   : > { %v2221_v34 = vpop.permute.xlu0 %2220 }
 0x8fc   : > { %v2242_v8 = vpop.permute.xlu1 %2241  ;;  %v2296_v10 = vperm.slane %v2221_v34, %v5534_v33 }
 0x8fd   : > { %v2307_v3 = vperm.slane %v2242_v8, %v5529_v30  ;;  %v2310_v8 = vperm.slane %v2248_v15, %v5529_v30  ;;  %v2282_v15 = vsel %vm2275_vm13, %v2281_v35, %v2280_v22 }
 0x8fe   : > { %v2325_v9 = vsel %vm2324_vm15, %v2282_v15, %v2323_v63  ;;  %v2297_v6 = vsel %vm2275_vm13, %v2296_v10, %v2295_v13 }
 0x8ff   : > { %v2309_v25 = vsel %vm2275_vm13, %v2308_v17, %v2307_v3  ;;  %v2312_v37 = vsel %vm2275_vm13, %v2311_v24, %v2310_v8  ;;  %v2292_v3 = vperm.slane %v5523_v23, %v5529_v30  ;;  %v2315_v23 = vsel %vm2275_vm13, %v2314_v21, %v2313_v51 }
 0x900   : > { %v2338_v11 = vsel %vm2326_vm1, %v2309_v25, %v2337_v42  ;;  %v2318_v25 = vsel %vm2275_vm13, %v2317_v14, %v2316_v31  ;;  %v5611_v42 = vld [vmem:[#allocation4 + $0x8] sm:$0xff] }
 0x901   : > { %v2339_v29 = vsel %vm2328_vm2, %v2312_v37, %v2338_v11  ;;  %v2294_v34 = vsel %vm2275_vm13, %v2293_v28, %v2292_v3 }
 0x902   : > { %v2340_v8 = vsel %vm2330_vm3, %v2315_v23, %v2339_v29 }
 0x903   : > { %v2266_v35 = vpop.permute.xlu0 %2265  ;;  %v2341_v37 = vsel %vm2332_vm4, %v2318_v25, %v2340_v8 }
 0x904   : > { %v2197_v38 = vpop.permute.xlu1 %2196  ;;  %v2319_v18 = vperm.slane %v2266_v35, %v5529_v30 }
 0x905   : > { %v2284_v59 = vperm.slane %v2197_v38, %v5534_v33 }
 0x907   : > { %v2285_v32 = vsel %vm2275_vm13, %v2284_v59, %v2283_v0 }
 0x908   : > { %v2327_v2 = vsel %vm2326_vm1, %v2285_v32, %v2325_v9 }
 0x909   : > { %v2329_v24 = vsel %vm2328_vm2, %v2288_v20, %v2327_v2 }
 0x90a   : > { %v2331_v26 = vsel %vm2330_vm3, %v2291_v45, %v2329_v24 }
 0x90b   : > { %v2333_v17 = vsel %vm2332_vm4, %v2294_v34, %v2331_v26 }
 0x90c   : > { %v2269_v27 = vpop.permute.xlu1 %2268  ;;  %v2335_v19 = vsel %vm2334_vm5, %v2297_v6, %v2333_v17 }
 0x90d   : > { %v2320_v22 = vperm.slane %v2269_v27, %v5534_v33  ;;  %v2346_v20 = vsel %vm2345_vm6, %v2335_v19, -inf }
 0x90e   : > { %2347 = vmax.xlane.f32.xlu2 %v2346_v20 }
 0x90f   : > { %v2321_v51 = vsel %vm2275_vm13, %v2320_v22, %v2319_v18 }
 0x910   : > { %v2342_v45 = vsel %vm2334_vm5, %v2321_v51, %v2341_v37 }
 0x911   : > { %v2349_v63 = vsel %vm2345_vm6, %v2342_v45, -inf }
 0x912   : > { %2350 = vmax.xlane.f32.xlu0 %v2349_v63 }
 0x981   : > { %v2348_v38 = vpop.xlane.xlu2 %2347 }
 0x982   : > { %v5609_v15 = vmax.f32 %v5606_v16, %v2348_v38 }
 0x984   : > { %v2354_v0 = vsub.f32 %v5606_v16, %v5609_v15  ;;  %3021 = vst.msk [vmem:[#allocation4] sm:$0xff] %vm2698_vm7, %v5609_v15  ;;  %2362 = vperm.xlu1 %4222, %v5609_v15   ;;  %v6194_v15 = vld [vmem:[#allocation58_spill] sm:$0xff] }
 0x985   : > { %v2351_v59 = vpop.xlane.xlu0 %2350 }
 0x986   : > { %v5619_v21 = vmax.f32 %v5611_v42, %v2351_v59 }
 0x988   : > { %v2355_v28 = vsub.f32 %v5611_v42, %v5619_v21  ;;  %3022 = vst.msk [vmem:[#allocation4 + $0x8] sm:$0xff] %vm2698_vm7, %v5619_v21 }
 0x98c   : > { %2366 = vperm.xlu1 %4222, %v5619_v21  }
 0x9f6   : > { %v5626_v11 = vpop.permute.xlu1 %2362 }
 0x9f7   : > { %v2370_v13 = vperm.slane %v5626_v11, 2  ;;  %v2369_v12 = vperm.slane %v5626_v11, 1  ;;  %v2368_v10 = vperm.slane %v5626_v11, 0  ;;  %v2372_v2 = vperm.slane %v5626_v11, 4 }
 0x9f8   : > { %v2375_v8 = vperm.slane %v5626_v11, 7 }
 0x9f9   : > { %v2405_v9 = vsub.f32 %v5482_v57, %v2370_v13  ;;  %v2403_v32 = vsub.f32 %v5457_v49, %v2369_v12  ;;  %v2400_v3 = vsub.f32 %v5423_v40, %v2368_v10  ;;  %v2409_v14 = vsub.f32 %v5437_v44, %v2372_v2 }
 0x9fa   : > { %v2408_v34 = vsub.f32 %v5426_v41, %v2372_v2  ;;  %v2401_v35 = vsub.f32 %v5431_v43, %v2368_v10  ;;  %v2374_v57 = vperm.slane %v5626_v11, 6  ;;  %v2373_v40 = vperm.slane %v5626_v11, 5 }
 0x9fb   : > { %v2442_v31 = vmul.f32 1.442695, %v2405_v9  ;;  %v2438_v24 = vmul.f32 1.442695, %v2403_v32  ;;  %v2432_v29 = vmul.f32 1.442695, %v2400_v3  ;;  %v2402_v44 = vsub.f32 %v5441_v61, %v2369_v12 }
 0x9fc   : > { %v2450_v26 = vmul.f32 1.442695, %v2409_v14  ;;  %v2448_v49 = vmul.f32 1.442695, %v2408_v34  ;;  %v2434_v6 = vmul.f32 1.442695, %v2401_v35  ;;  %v2412_v41 = vsub.f32 %v5470_v54, %v2374_v57 }
 0x9fd   : > { %4287 = vpow2.f32 %v2442_v31  ;;  %v2411_v43 = vsub.f32 %v5459_v50, %v2373_v40  ;;  %v2436_v20 = vmul.f32 1.442695, %v2402_v44  ;;  %v2415_v54 = vsub.f32 %v5502_v1, %v2375_v8 }
 0x9fe   : > { %4289 = vpow2.f32 %v2438_v24  ;;  %v2456_v19 = vmul.f32 1.442695, %v2412_v41  ;;  %v5649_v37 = vpop.permute.xlu1 %2366  ;;  %v2414_v50 = vsub.f32 %v5491_v60, %v2375_v8  ;;  %v2404_v61 = vsub.f32 %v5468_v53, %v2370_v13 }
 0x9ff   : > { %4291 = vpow2.f32 %v2432_v29  ;;  %v2454_v18 = vmul.f32 1.442695, %v2411_v43  ;;  %v2462_v45 = vmul.f32 1.442695, %v2415_v54  ;;  %v2377_v63 = vperm.slane %v5649_v37, 1 }
 0xa00   : > { %4293 = vpow2.f32 %v2450_v26  ;;  %v2460_v38 = vmul.f32 1.442695, %v2414_v50  ;;  %v2376_v59 = vperm.slane %v5649_v37, 0  ;;  %v2440_v10 = vmul.f32 1.442695, %v2404_v61 }
 0xa01   : > { %4295 = vpow2.f32 %v2448_v49  ;;  %v2371_v9 = vperm.slane %v5626_v11, 3  ;;  %v2418_v60 = vsub.f32 %v5450_v47, %v2377_v63  ;;  %v2378_v2 = vperm.slane %v5649_v37, 2  ;;  %v6190_v11 = vld [vmem:[#allocation62_spill] sm:$0xff] }
 0xa02   : > { %4297 = vpow2.f32 %v2434_v6  ;;  %v2417_v53 = vsub.f32 %v5439_v39, %v2376_v59  ;;  %v2380_v26 = vperm.slane %v5649_v37, 4  ;;  %v2381_v44 = vperm.slane %v5649_v37, 5 }
 0xa03   : > { %v4288_v23 = vpop.eup %4287  ;;  %4299 = vpow2.f32 %v2456_v19  ;;  %v2406_v13 = vsub.f32 %v5493_v62, %v2371_v9  ;;  %v2468_v3 = vmul.f32 1.442695, %v2418_v60  ;;  %v2421_v47 = vsub.f32 %v5484_v58, %v2378_v2 }
 0xa04   : > { %v4290_v17 = vpop.eup %4289  ;;  %2546 = vperm.xlu0 %4220, %v4288_v23   ;;  %4301 = vpow2.f32 %v2454_v18  ;;  %v2466_v31 = vmul.f32 1.442695, %v2417_v53  ;;  %v2420_v39 = vsub.f32 %v5474_v55, %v2378_v2  ;;  %v2407_v62 = vsub.f32 %v5511_v7, %v2371_v9 }
 0xa05   : > { %v4292_v27 = vpop.eup %4291  ;;  %2540 = vperm.xlu2 %4221, %v4290_v17   ;;  %4303 = vpow2.f32 %v2436_v20  ;;  %v2444_v29 = vmul.f32 1.442695, %v2406_v13  ;;  %v2474_v35 = vmul.f32 1.442695, %v2421_v47  ;;  %v2379_v23 = vperm.slane %v5649_v37, 3  ;;  %v6195_v47 = vld [vmem:[#allocation60_spill] sm:$0xff] }
 0xa06   : > { %2531 = vperm.xlu1 %4222, %v4292_v27   ;;  %v4294_v22 = vpop.eup %4293  ;;  %4305 = vpow2.f32 %v2462_v45  ;;  %v2472_v49 = vmul.f32 1.442695, %v2420_v39  ;;  %v2446_v17 = vmul.f32 1.442695, %v2407_v62  ;;  %v2424_v55 = vsub.f32 %v5435_v36, %v2380_v26 }
 0xa07   : > { %v4296_v25 = vpop.eup %4295  ;;  %4307 = vpow2.f32 %v2460_v38  ;;  %v2423_v58 = vsub.f32 %v5504_v4, %v2379_v23  ;;  %v2410_v7 = vsub.f32 %v5448_v46, %v2373_v40  ;;  %v2427_v20 = vsub.f32 %v5466_v52, %v2381_v44 }
 0xa08   : > { %v4298_v51 = vpop.eup %4297  ;;  %4309 = vpow2.f32 %v2440_v10  ;;  %v2480_v43 = vmul.f32 1.442695, %v2424_v55  ;;  %v2426_v4 = vsub.f32 %v5453_v48, %v2381_v44  ;;  %v2413_v46 = vsub.f32 %v5479_v56, %v2374_v57  ;;  %v6191_v56 = vld [vmem:[#allocation57_spill] sm:$0xff] }
 0xa09   : > { %v4300_v12 = vpop.eup %4299  ;;  %4311 = vpow2.f32 %v2468_v3  ;;  %v2478_v19 = vmul.f32 1.442695, %v2423_v58  ;;  %v2452_v18 = vmul.f32 1.442695, %v2410_v7  ;;  %v2486_v40 = vmul.f32 1.442695, %v2427_v20 }
 0xa0a   : > { %v4302_v1 = vpop.eup %4301  ;;  %4313 = vpow2.f32 %v2466_v31  ;;  %v2382_v54 = vperm.slane %v5649_v37, 6  ;;  %v2458_v61 = vmul.f32 1.442695, %v2413_v46  ;;  %v2416_v57 = vsub.f32 %v6191_v56, %v2376_v59 }
 0xa0b   : > { %v4304_v32 = vpop.eup %4303  ;;  %4315 = vpow2.f32 %v2444_v29  ;;  %v2358_v59 = vmul.f32 1.442695, %v2355_v28  ;;  %v2356_v13 = vmul.f32 1.442695, %v2354_v0  ;;  %v2425_v0 = vsub.f32 %v6194_v15, %v2380_v26 }
 0xa0c   : > { %2558 = vperm.xlu0 %4220, %v4294_v22   ;;  %v4306_v24 = vpop.eup %4305  ;;  %4317 = vpow2.f32 %v2474_v35  ;;  %v2429_v38 = vsub.f32 %v6190_v11, %v2382_v54  ;;  %v2428_v39 = vsub.f32 %v6195_v47, %v2382_v54 }
 0xa0d   : > { %2555 = vperm.xlu2 %4221, %v4296_v25   ;;  %v4308_v14 = vpop.eup %4307  ;;  %4319 = vpow2.f32 %v2472_v49  ;;  %v2383_v25 = vperm.slane %v5649_v37, 7  ;;  %v6196_v49 = vld [vmem:[#allocation63_spill] sm:$0xff] }
 0xa0e   : > { %2534 = vperm.xlu1 %4222, %v4298_v51   ;;  %v4310_v34 = vpop.eup %4309  ;;  %4321 = vpow2.f32 %v2446_v17  ;;  %v2484_v51 = vmul.f32 1.442695, %v2426_v4  ;;  %v2490_v10 = vmul.f32 1.442695, %v2429_v38  ;;  %v2488_v62 = vmul.f32 1.442695, %v2428_v39 }
 0xa0f   : > { %v4312_v6 = vpop.eup %4311  ;;  %4323 = vpow2.f32 %v2480_v43  ;;  %v2430_v48 = vsub.f32 %v5509_v5, %v2383_v25  ;;  %v6192_v5 = vld [vmem:[#allocation59_spill] sm:$0xff]  ;;  %v3905_v4 = vld [vmem:[%s5109_s23 + $0x10] sm:$0xff]   ;;  %v3906_v38 = vld [vmem:[%s5109_s23 + $0x18] sm:$0xff]  }
 0xa10   : > { %v4314_v27 = vpop.eup %4313  ;;  %4325 = vpow2.f32 %v2478_v19  ;;  %v2419_v53 = vsub.f32 %v6192_v5, %v2377_v63  ;;  %v6193_v63 = vld [vmem:[#allocation61_spill] sm:$0xff]  ;;  %v3839_v5 = vunpack.c.l.bf16 %v3906_v38 }
 0xa11   : > { %v4316_v41 = vpop.eup %4315  ;;  %4327 = vpow2.f32 %v2452_v18  ;;  %v2422_v29 = vsub.f32 %v6193_v63, %v2379_v23  ;;  %v2431_v23 = vsub.f32 %v6196_v49, %v2383_v25  ;;  %v3840_v63 = vunpack.c.h.bf16 %v3906_v38 }
 0xa12   : > { %v4318_v8 = vpop.eup %4317  ;;  %4329 = vpow2.f32 %v2486_v40  ;;  %v2470_v2 = vmul.f32 1.442695, %v2419_v53 }
 0xa13   : > { %v4320_v22 = vpop.eup %4319  ;;  %4331 = vpow2.f32 %v2484_v51  ;;  %v2476_v21 = vmul.f32 1.442695, %v2422_v29  ;;  %v3835_v51 = vunpack.c.l.bf16 %v3905_v4 }
 0xa14   : > { %2567 = vperm.xlu0 %4220, %v4300_v12   ;;  %v4322_v36 = vpop.eup %4321  ;;  %4333 = vpow2.f32 %v2458_v61  ;;  %v2492_v12 = vmul.f32 1.442695, %v2430_v48  ;;  %v3836_v61 = vunpack.c.h.bf16 %v3905_v4 }
 0xa15   : > { %2564 = vperm.xlu2 %4221, %v4302_v1   ;;  %v4324_v50 = vpop.eup %4323  ;;  %v2464_v1 = vmul.f32 1.442695, %v2416_v57 }
 0xa16   : > { %2537 = vperm.xlu1 %4222, %v4304_v32   ;;  %v4326_v45 = vpop.eup %4325  ;;  %4335 = vpow2.f32 %v2492_v12  ;;  %v5750_v12 = vld [vmem:[%s5109_s23 + $0x28] sm:$0xff]  }
 0xa17   : > { %v4328_v52 = vpop.eup %4327  ;;  %4337 = vpow2.f32 %v2490_v10  ;;  %v3848_v53 = vunpack.c.h.bf16 %v5750_v12 }
 0xa18   : > { %v4330_v9 = vpop.eup %4329  ;;  %4339 = vpow2.f32 %v2464_v1 }
 0xa19   : > { %v4332_v32 = vpop.eup %4331  ;;  %4341 = vpow2.f32 %v2358_v59 }
 0xa1a   : > { %v4334_v60 = vpop.eup %4333  ;;  %4343 = vpow2.f32 %v2356_v13 }
 0xa1b   : > { %4345 = vpow2.f32 %v2470_v2  ;;  %v3910_v2 = vld [vmem:[%s5109_s23 + $0x38] sm:$0xff]  }
 0xa1c   : > { %2576 = vperm.xlu0 %4220, %v4306_v24   ;;  %v4336_v3 = vpop.eup %4335  ;;  %4347 = vpow2.f32 %v2476_v21 }
 0xa1d   : > { %2573 = vperm.xlu2 %4221, %v4308_v14   ;;  %v4338_v31 = vpop.eup %4337  ;;  %v2482_v14 = vmul.f32 1.442695, %v2425_v0  ;;  %v5767_v0 = vld [vmem:[%s5109_s23 + $0x30] sm:$0xff]  }
 0xa1e   : > { %2543 = vperm.xlu1 %4222, %v4310_v34   ;;  %v4340_v24 = vpop.eup %4339 }
 0xa1f   : > { %v5703_v42 = vpop.eup %4341  ;;  %4349 = vpow2.f32 %v2482_v14 }
 0xa20   : > { %v5705_v28 = vpop.eup %4343  ;;  %4351 = vpow2.f32 %v2488_v62  ;;  %v3855_v62 = vunpack.c.l.bf16 %v3910_v2 }
 0xa21   : > { %v4346_v16 = vpop.eup %4345 }
 0xa22   : > { %v4348_v34 = vpop.eup %4347 }
 0xa24   : > { %2585 = vperm.xlu0 %4220, %v4312_v6   ;;  %v2494_v6 = vmul.f32 1.442695, %v2431_v23 }
 0xa25   : > { %2582 = vperm.xlu2 %4221, %v4314_v27   ;;  %v4350_v35 = vpop.eup %4349 }
 0xa26   : > { %2549 = vperm.xlu1 %4222, %v4316_v41   ;;  %v4352_v17 = vpop.eup %4351  ;;  %4353 = vpow2.f32 %v2494_v6 }
 0xa2c   : > { %2594 = vperm.xlu0 %4220, %v4318_v8   ;;  %v4354_v37 = vpop.eup %4353 }
 0xa2d   : > { %2591 = vperm.xlu2 %4221, %v4320_v22   ;;  %v3826_v22 = vld [vmem:[%s5109_s23] sm:$0xff]  }
 0xa2e   : > { %2552 = vperm.xlu1 %4222, %v4322_v36   ;;  %v3904_v36 = vld [vmem:[%s5109_s23 + $0x8] sm:$0xff]   ;;  %v3828_v20 = vunpack.c.h.bf16 %v3826_v22  ;;  %v3827_v40 = vunpack.c.l.bf16 %v3826_v22 }
 0xa2f   : > { %v3831_v46 = vunpack.c.l.bf16 %v3904_v36  ;;  %v3832_v54 = vunpack.c.h.bf16 %v3904_v36 }
 0xa34   : > { %2603 = vperm.xlu0 %4220, %v4324_v50   ;;  %v3907_v50 = vld [vmem:[%s5109_s23 + $0x20] sm:$0xff]  }
 0xa35   : > { %2600 = vperm.xlu2 %4221, %v4326_v45   ;;  %v3844_v48 = vunpack.c.h.bf16 %v3907_v50  ;;  %v3843_v57 = vunpack.c.l.bf16 %v3907_v50 }
 0xa36   : > { %2561 = vperm.xlu1 %4222, %v4328_v52  }
 0xa3c   : > { %2612 = vperm.xlu0 %4220, %v4330_v9  }
 0xa3d   : > { %2609 = vperm.xlu2 %4221, %v4332_v32  }
 0xa3e   : > { %2570 = vperm.xlu1 %4222, %v4334_v60  }
 0xa44   : > { %2621 = vperm.xlu0 %4220, %v4336_v3  }
 0xa45   : > { %2618 = vperm.xlu2 %4221, %v4338_v31  }
 0xa46   : > { %2579 = vperm.xlu1 %4222, %v4340_v24  }
 0xa4c   : > { %2980 = vperm.xlu0 %4220, %v5703_v42  }
 0xa4d   : > { %2975 = vperm.xlu2 %4221, %v5705_v28  }
 0xa4e   : > { %2588 = vperm.xlu1 %4222, %v4346_v16   ;;  %v3856_v16 = vunpack.c.h.bf16 %v3910_v2 }
 0xa56   : > { %2597 = vperm.xlu1 %4222, %v4348_v34  }
 0xa5e   : > { %2606 = vperm.xlu1 %4222, %v4350_v35  }
 0xa5f   : > { %v5714_v27 = vpop.permute.xlu2 %2540 }
 0xa60   : > { %v2800_v1 = vmul.f32 %v3832_v54, %v5714_v27  ;;  %v2630_v6 = vperm.slane %v5714_v27, %v5534_v33 }
 0xa62   : > { %v2839_v29 = vsel %vm1998_vm0, %v2800_v1, 0.0 }
 0xa66   : > { %2615 = vperm.xlu1 %4222, %v4352_v17  }
 0xa67   : > { %v5716_v26 = vpop.permute.xlu2 %2555 }
 0xa68   : > { %v2805_v3 = vmul.f32 %v3843_v57, %v5716_v26  ;;  %v2638_v17 = vperm.slane %v5716_v26, %v5529_v30  ;;  %v3847_v57 = vunpack.c.l.bf16 %v5750_v12 }
 0xa6e   : > { %2624 = vperm.xlu1 %4222, %v4354_v37   ;;  %v2865_v37 = vsel %vm1998_vm0, %v2805_v3, 0.0 }
 0xa6f   : > { %v5720_v55 = vpop.permute.xlu2 %2564 }
 0xa70   : > { %v2808_v39 = vmul.f32 %v3848_v53, %v5720_v55 }
 0xa72   : > { %v2875_v26 = vsel %vm1998_vm0, %v2808_v39, 0.0 }
 0xa76   : > { %v5724_v7 = vpop.permute.xlu0 %2546 }
 0xa77   : > { %v5726_v43 = vpop.permute.xlu2 %2573  ;;  %v2802_v32 = vmul.f32 %v3836_v61, %v5724_v7 }
 0xa78   : > { %v5718_v41 = vpop.permute.xlu1 %2531  ;;  %v2811_v61 = vmul.f32 %v3855_v62, %v5726_v43 }
 0xa79   : > { %v2797_v10 = vmul.f32 %v3827_v40, %v5718_v41  ;;  %v2848_v15 = vsel %vm1998_vm0, %v2802_v32, 0.0 }
 0xa7a   : > { %v2892_v53 = vsel %vm1998_vm0, %v2811_v61, 0.0 }
 0xa7b   : > { %v2829_v31 = vsel %vm1998_vm0, %v2797_v10, 0.0 }
 0xa7e   : > { %v5730_v19 = vpop.permute.xlu0 %2558 }
 0xa7f   : > { %v5732_v8 = vpop.permute.xlu2 %2582  ;;  %v2806_v59 = vmul.f32 %v3844_v48, %v5730_v19 }
 0xa80   : > { %v5722_v58 = vpop.permute.xlu1 %2534 }
 0xa81   : > { %v2798_v45 = vmul.f32 %v3828_v20, %v5722_v58  ;;  %v2866_v35 = vsel %vm1998_vm0, %v2806_v59, 0.0  ;;  %v2642_v20 = vperm.slane %v5720_v55, %v5534_v33  ;;  %v2633_v55 = vperm.slane %v5724_v7, %v5534_v33 }
 0xa82   : > { %v2627_v38 = vperm.slane %v5722_v58, %v5534_v33  ;;  %v2626_v58 = vperm.slane %v5718_v41, %v5529_v30 }
 0xa83   : > { %v2830_v60 = vsel %vm1998_vm0, %v2798_v45, 0.0 }
 0xa84   : > { %v2831_v21 = vadd.f32 %v2830_v60, %v2829_v31  ;;  %v2647_v60 = vperm.slane %v5726_v43, %v5529_v30  ;;  %v2628_v43 = vsel %vm2275_vm13, %v2627_v38, %v2626_v58 }
 0xa86   : > { %v5739_v25 = vpop.permute.xlu0 %2567  ;;  %v2832_v4 = vrot.slane %v2831_v21, 4 }
 0xa87   : > { %v5743_v52 = vpop.permute.xlu2 %2591 }
 0xa88   : > { %v5728_v44 = vpop.permute.xlu1 %2537  ;;  %v2833_v10 = vadd.f32 %v2832_v4, %v2831_v21 }
 0xa89   : > { %v2799_v11 = vmul.f32 %v3831_v46, %v5728_v44  ;;  %v3851_v46 = vunpack.c.l.bf16 %v5767_v0 }
 0xa8b   : > { %v2838_v13 = vsel %vm1998_vm0, %v2799_v11, 0.0  ;;  %v2639_v11 = vperm.slane %v5730_v19, %v5534_v33 }
 0xa8c   : > { %v2840_v14 = vadd.f32 %v2839_v29, %v2838_v13 }
 0xa8d   : > { %v2640_v13 = vsel %vm2275_vm13, %v2639_v11, %v2638_v17  ;;  %v2809_v17 = vmul.f32 %v3851_v46, %v5739_v25 }
 0xa8e   : > { %v5769_v34 = vpop.permute.xlu0 %2576  ;;  %v2841_v54 = vrot.slane %v2840_v14, 4 }
 0xa8f   : > { %v5779_v22 = vpop.permute.xlu2 %2600  ;;  %v2812_v40 = vmul.f32 %v3856_v16, %v5769_v34 }
 0xa90   : > { %v5734_v18 = vpop.permute.xlu1 %2543  ;;  %v2842_v7 = vadd.f32 %v2841_v54, %v2840_v14 }
 0xa91   : > { %v2801_v9 = vmul.f32 %v3835_v51, %v5734_v18  ;;  %v2867_v51 = vadd.f32 %v2866_v35, %v2865_v37  ;;  %v2893_v1 = vsel %vm1998_vm0, %v2812_v40, 0.0  ;;  %v2632_v19 = vperm.slane %v5734_v18, %v5529_v30 }
 0xa92   : > { %v2894_v3 = vadd.f32 %v2893_v1, %v2892_v53  ;;  %v2843_v21 = vrot.slane %v2842_v7, 2 }
 0xa93   : > { %v2847_v24 = vsel %vm1998_vm0, %v2801_v9, 0.0  ;;  %v2629_v9 = vperm.slane %v5728_v44, %v5529_v30  ;;  %v2634_v41 = vsel %vm2275_vm13, %v2633_v55, %v2632_v19 }
 0xa94   : > { %v2849_v49 = vadd.f32 %v2848_v15, %v2847_v24  ;;  %v2834_v24 = vrot.slane %v2833_v10, 2  ;;  %v2844_v54 = vadd.f32 %v2843_v21, %v2842_v7 }
 0xa96   : > { %v2850_v45 = vrot.slane %v2849_v49, 4 }
 0xa97   : > { %v5813_v16 = vpop.permute.xlu2 %2609 }
 0xa98   : > { %v5747_v56 = vpop.permute.xlu1 %2549  ;;  %v2851_v12 = vadd.f32 %v2850_v45, %v2849_v49  ;;  %v2895_v49 = vrot.slane %v2894_v3, 4 }
 0xa99   : > { %v2803_v47 = vmul.f32 %v3839_v5, %v5747_v56  ;;  %v2868_v5 = vrot.slane %v2867_v51, 4  ;;  %v2635_v18 = vperm.slane %v5747_v56, %v5529_v30  ;;  %v3852_v56 = vunpack.c.h.bf16 %v5767_v0 }
 0xa9a   : > { %v2852_v14 = vrot.slane %v2851_v12, 2  ;;  %v2896_v45 = vadd.f32 %v2895_v49, %v2894_v3 }
 0xa9b   : > { %v2856_v27 = vsel %vm1998_vm0, %v2803_v47, 0.0  ;;  %v2869_v29 = vadd.f32 %v2868_v5, %v2867_v51  ;;  %v2644_v51 = vperm.slane %v5739_v25, %v5529_v30 }
 0xa9c   : > { %v2897_v53 = vrot.slane %v2896_v45, 2 }
 0xa9d   : > { %v2870_v40 = vrot.slane %v2869_v29, 2 }
 0xa9e   : > { %v2898_v21 = vadd.f32 %v2897_v53, %v2896_v45 }
 0xa9f   : > { %v5838_v58 = vpop.permute.xlu2 %2618 }
 0xaa0   : > { %v2553_v23 = vpop.permute.xlu1 %2552 }
 0xaa1   : > { %v2804_v36 = vmul.f32 %v3840_v63, %v2553_v23  ;;  %v2636_v59 = vperm.slane %v2553_v23, %v5534_v33  ;;  %v2631_v63 = vsel %vm2275_vm13, %v2630_v6, %v2629_v9  ;;  %v2835_v6 = vadd.f32 %v2834_v24, %v2833_v10 }
 0xaa2   : > { %v2674_v35 = vsel %vm2322_vm14, %v2631_v63, %v2628_v43  ;;  %v2845_v9 = vrot.slane %v2844_v54, 1 }
 0xaa3   : > { %v2857_v50 = vsel %vm1998_vm0, %v2804_v36, 0.0  ;;  %v2637_v47 = vsel %vm2275_vm13, %v2636_v59, %v2635_v18  ;;  %v2675_v37 = vsel %vm2324_vm15, %v2634_v41, %v2674_v35  ;;  %v5822_v36 = vpop.permute.xlu0 %2585  ;;  %v2836_v38 = vrot.slane %v2835_v6, 1 }
 0xaa4   : > { %v2858_v48 = vadd.f32 %v2857_v50, %v2856_v27  ;;  %v2676_v27 = vsel %vm2326_vm1, %v2637_v47, %v2675_v37  ;;  %v2648_v50 = vperm.slane %v5769_v34, %v5534_v33  ;;  %v2899_v35 = vrot.slane %v2898_v21, 1  ;;  %v2140_v37 = vld [vmem:[#allocation6] sm:$0xff] }
 0xaa5   : > { %v2677_v10 = vsel %vm2328_vm2, %v2640_v13, %v2676_v27  ;;  %v2871_v13 = vadd.f32 %v2870_v40, %v2869_v29  ;;  %v2837_v18 = vadd.f32 %v2836_v38, %v2835_v6  ;;  %v3912_v6 = vld [vmem:[%s5109_s23 + $0x48] sm:$0xff]  }
 0xaa6   : > { %v2859_v32 = vrot.slane %v2858_v48, 4  ;;  %v2649_v7 = vsel %vm2275_vm13, %v2648_v50, %v2647_v60  ;;  %v3911_v50 = vld [vmem:[%s5109_s23 + $0x40] sm:$0xff]  }
 0xaa8   : > { %v2562_v44 = vpop.permute.xlu1 %2561  ;;  %v2860_v2 = vadd.f32 %v2859_v32, %v2858_v48 }
 0xaa9   : > { %v2807_v31 = vmul.f32 %v3847_v57, %v2562_v44  ;;  %v2641_v39 = vperm.slane %v2562_v44, %v5529_v30  ;;  %v2883_v57 = vsel %vm1998_vm0, %v2809_v17, 0.0 }
 0xaaa   : > { %v2861_v23 = vrot.slane %v2860_v2, 2 }
 0xaab   : > { %v2874_v15 = vsel %vm1998_vm0, %v2807_v31, 0.0  ;;  %v2643_v0 = vsel %vm2275_vm13, %v2642_v20, %v2641_v39  ;;  %v2846_v31 = vadd.f32 %v2845_v9, %v2844_v54  ;;  %v5842_v24 = vpop.permute.xlu0 %2594  ;;  %v3864_v54 = vunpack.c.h.bf16 %v3912_v6 }
 0xaac   : > { %v2876_v62 = vadd.f32 %v2875_v26, %v2874_v15  ;;  %v2853_v26 = vadd.f32 %v2852_v14, %v2851_v12  ;;  %v2862_v48 = vadd.f32 %v2861_v23, %v2860_v2  ;;  %v2678_v20 = vsel %vm2330_vm3, %v2643_v0, %v2677_v10 }
 0xaad   : > { %v2872_v14 = vrot.slane %v2871_v13, 1  ;;  %v3001_v29 = vsel %vm2322_vm14, %v2846_v31, %v2837_v18  ;;  %v3860_v10 = vunpack.c.h.bf16 %v3911_v50 }
 0xaae   : > { %v2877_v4 = vrot.slane %v2876_v62, 4  ;;  %v2854_v32 = vrot.slane %v2853_v26, 1  ;;  %v2863_v12 = vrot.slane %v2862_v48, 1 }
 0xab0   : > { %v2878_v61 = vadd.f32 %v2877_v4, %v2876_v62  ;;  %v2571_v46 = vpop.permute.xlu1 %2570  ;;  %v2855_v43 = vadd.f32 %v2854_v32, %v2853_v26  ;;  %v2864_v41 = vadd.f32 %v2863_v12, %v2862_v48  ;;  %v2976_v4 = vpop.permute.xlu2 %2975  ;;  %v2900_v26 = vadd.f32 %v2899_v35, %v2898_v21 }
 0xab1   : > { %v2645_v55 = vperm.slane %v2571_v46, %v5534_v33  ;;  %v2810_v11 = vmul.f32 %v3852_v56, %v2571_v46  ;;  %v2873_v56 = vadd.f32 %v2872_v14, %v2871_v13  ;;  %v3863_v46 = vunpack.c.l.bf16 %v3912_v6 }
 0xab2   : > { %v2879_v25 = vrot.slane %v2878_v61, 2  ;;  %v3002_v39 = vsel %vm2324_vm15, %v2855_v43, %v3001_v29  ;;  %v2983_v48 = vmul.f32 %v2976_v4, %v2140_v37  ;;  %v2814_v12 = vmul.f32 %v3860_v10, %v5732_v8  ;;  %v3916_v43 = vld [vmem:[%s5109_s23 + $0x68] sm:$0xff]  }
 0xab3   : > { %v2884_v1 = vsel %vm1998_vm0, %v2810_v11, 0.0  ;;  %v2646_v34 = vsel %vm2275_vm13, %v2645_v55, %v2644_v51  ;;  %v3003_v49 = vsel %vm2326_vm1, %v2864_v41, %v3002_v39  ;;  %v5856_v45 = vpop.permute.xlu0 %2603  ;;  %v3914_v11 = vld [vmem:[%s5109_s23 + $0x58] sm:$0xff]   ;;  %v3880_v21 = vunpack.c.h.bf16 %v3916_v43 }
 0xab4   : > { %v2885_v5 = vadd.f32 %v2884_v1, %v2883_v57  ;;  %v2679_v19 = vsel %vm2332_vm4, %v2646_v34, %v2678_v20  ;;  %v2880_v59 = vadd.f32 %v2879_v25, %v2878_v61  ;;  %v3004_v40 = vsel %vm2328_vm2, %v2873_v56, %v3003_v49  ;;  %v3913_v61 = vld [vmem:[%s5109_s23 + $0x50] sm:$0xff]  }
 0xab5   : > { %v2680_v44 = vsel %vm2334_vm5, %v2649_v7, %v2679_v19  ;;  %v3868_v38 = vunpack.c.h.bf16 %v3913_v61  ;;  %v3859_v25 = vunpack.c.l.bf16 %v3911_v50  ;;  %v3867_v34 = vunpack.c.l.bf16 %v3913_v61  ;;  %v3915_v19 = vld [vmem:[%s5109_s23 + $0x60] sm:$0xff]  }
 0xab6   : > { %v2886_v3 = vrot.slane %v2885_v5, 4  ;;  %v2690_v2 = vsel %vm2345_vm6, %v2680_v44, 0.0  ;;  %v2881_v15 = vrot.slane %v2880_v59, 1  ;;  %v3871_v20 = vunpack.c.l.bf16 %v3914_v11 }
 0xab7   : > { %2691 = vadd.xlane.f32.xlu1 %v2690_v2  ;;  %v3872_v32 = vunpack.c.h.bf16 %v3914_v11  ;;  %v2818_v7 = vmul.f32 %v3868_v38, %v5842_v24  ;;  %v2817_v13 = vmul.f32 %v3867_v34, %v5743_v52  ;;  %v2902_v14 = vsel %vm1998_vm0, %v2814_v12, 0.0 }
 0xab8   : > { %v2887_v63 = vadd.f32 %v2886_v3, %v2885_v5  ;;  %v5844_v60 = vpop.permute.xlu1 %2579  ;;  %v2882_v23 = vadd.f32 %v2881_v15, %v2880_v59  ;;  %v2815_v5 = vmul.f32 %v3863_v46, %v5822_v36  ;;  %v3879_v39 = vunpack.c.l.bf16 %v3916_v43 }
 0xab9   : > { %v2813_v53 = vmul.f32 %v3859_v25, %v5844_v60  ;;  %v2820_v2 = vmul.f32 %v3872_v32, %v5779_v22  ;;  %v2920_v18 = vsel %vm1998_vm0, %v2818_v7, 0.0  ;;  %v2919_v29 = vsel %vm1998_vm0, %v2817_v13, 0.0  ;;  %v3918_v7 = vld [vmem:[%s5109_s23 + $0x78] sm:$0xff]  }
 0xaba   : > { %v2888_v47 = vrot.slane %v2887_v63, 2  ;;  %v3005_v0 = vsel %vm2330_vm3, %v2882_v23, %v3004_v40  ;;  %v2910_v31 = vsel %vm1998_vm0, %v2815_v5, 0.0  ;;  %v3876_v49 = vunpack.c.h.bf16 %v3915_v19 }
 0xabb   : > { %v2901_v41 = vsel %vm1998_vm0, %v2813_v53, 0.0  ;;  %v2921_v23 = vadd.f32 %v2920_v18, %v2919_v29  ;;  %v2929_v6 = vsel %vm1998_vm0, %v2820_v2, 0.0  ;;  %v2651_v40 = vperm.slane %v5732_v8, %v5534_v33 }
 0xabc   : > { %v2889_v62 = vadd.f32 %v2888_v47, %v2887_v63  ;;  %v3875_v63 = vunpack.c.l.bf16 %v3915_v19  ;;  %v5879_v47 = vpop.permute.xlu0 %2612  ;;  %v2823_v61 = vmul.f32 %v3879_v39, %v5813_v16  ;;  %v3887_v43 = vunpack.c.l.bf16 %v3918_v7 }
 0xabd   : > { %v2824_v37 = vmul.f32 %v3880_v21, %v5879_v47 }
 0xabe   : > { %v2890_v17 = vrot.slane %v2889_v62, 1  ;;  %v2821_v56 = vmul.f32 %v3875_v63, %v5856_v45  ;;  %v2946_v34 = vsel %vm1998_vm0, %v2823_v61, 0.0 }
 0xabf   : > { %v2947_v38 = vsel %vm1998_vm0, %v2824_v37, 0.0 }
 0xac0   : > { %v2891_v51 = vadd.f32 %v2890_v17, %v2889_v62  ;;  %v5851_v27 = vpop.permute.xlu1 %2588  ;;  %v3917_v62 = vld [vmem:[%s5109_s23 + $0x70] sm:$0xff]   ;;  %v2903_v17 = vadd.f32 %v2902_v14, %v2901_v41  ;;  %v2937_v11 = vsel %vm1998_vm0, %v2821_v56, 0.0  ;;  %v2948_v5 = vadd.f32 %v2947_v38, %v2946_v34 }
 0xac1   : > { %v2816_v1 = vmul.f32 %v3864_v54, %v5851_v27  ;;  %v3883_v32 = vunpack.c.l.bf16 %v3917_v62 }
 0xac2   : > { %v3006_v55 = vsel %vm2332_vm4, %v2891_v51, %v3005_v0  ;;  %v3884_v51 = vunpack.c.h.bf16 %v3917_v62  ;;  %v2660_v0 = vperm.slane %v5779_v22, %v5534_v33  ;;  %v2904_v8 = vrot.slane %v2903_v17, 4 }
 0xac3   : > { %v3007_v57 = vsel %vm2334_vm5, %v2900_v26, %v3006_v55  ;;  %v2911_v59 = vsel %vm1998_vm0, %v2816_v1, 0.0  ;;  %v2656_v26 = vperm.slane %v5743_v52, %v5529_v30  ;;  %v2922_v55 = vrot.slane %v2921_v23, 4 }
 0xac4   : > { %v3017_v9 = vadd.f32 %v3007_v57, %v2983_v48  ;;  %v2912_v15 = vadd.f32 %v2911_v59, %v2910_v31  ;;  %v2657_v48 = vperm.slane %v5842_v24, %v5534_v33  ;;  %v2654_v57 = vperm.slane %v5851_v27, %v5534_v33 }
 0xac5   : > { %v2653_v22 = vperm.slane %v5822_v36, %v5529_v30  ;;  %v2826_v10 = vmul.f32 %v3884_v51, %v5838_v58  ;;  %v2665_v1 = vperm.slane %v5813_v16, %v5529_v30  ;;  %v2923_v27 = vadd.f32 %v2922_v55, %v2921_v23 }
 0xac6   : > { %3019 = vst.msk [vmem:[#allocation6] sm:$0xff] %vm1998_vm0, %v3017_v9  ;;  %v2913_v4 = vrot.slane %v2912_v15, 4  ;;  %v2905_v19 = vadd.f32 %v2904_v8, %v2903_v17  ;;  %v2658_v36 = vsel %vm2275_vm13, %v2657_v48, %v2656_v26 }
 0xac7   : > { %v2655_v12 = vsel %vm2275_vm13, %v2654_v57, %v2653_v22  ;;  %v2956_v16 = vsel %vm1998_vm0, %v2826_v10, 0.0  ;;  %v2924_v41 = vrot.slane %v2923_v27, 2 }
 0xac8   : > { %v5869_v44 = vpop.permute.xlu1 %2597  ;;  %v2914_v52 = vadd.f32 %v2913_v4, %v2912_v15  ;;  %v2949_v15 = vrot.slane %v2948_v5, 4  ;;  %v2906_v14 = vrot.slane %v2905_v19, 2 }
 0xac9   : > { %v2819_v3 = vmul.f32 %v3871_v20, %v5869_v44  ;;  %v2650_v20 = vperm.slane %v5844_v60, %v5529_v30  ;;  %v2659_v13 = vperm.slane %v5869_v44, %v5529_v30  ;;  %v2666_v44 = vperm.slane %v5879_v47, %v5534_v33 }
 0xaca   : > { %v2915_v59 = vrot.slane %v2914_v52, 2  ;;  %v2950_v47 = vadd.f32 %v2949_v15, %v2948_v5  ;;  %v2907_v51 = vadd.f32 %v2906_v14, %v2905_v19  ;;  %v2925_v26 = vadd.f32 %v2924_v41, %v2923_v27 }
 0xacb   : > { %v2928_v35 = vsel %vm1998_vm0, %v2819_v3, 0.0  ;;  %v2662_v3 = vperm.slane %v5856_v45, %v5529_v30  ;;  %v2652_v63 = vsel %vm2275_vm13, %v2651_v40, %v2650_v20  ;;  %v2661_v45 = vsel %vm2275_vm13, %v2660_v0, %v2659_v13 }
 0xacc   : > { %v2930_v54 = vadd.f32 %v2929_v6, %v2928_v35  ;;  %v2681_v29 = vsel %vm2322_vm14, %v2655_v12, %v2652_v63  ;;  %v2916_v39 = vadd.f32 %v2915_v59, %v2914_v52  ;;  %v2622_v35 = vpop.permute.xlu0 %2621  ;;  %v2669_v6 = vperm.slane %v5838_v58, %v5534_v33 }
 0xacd   : > { %v2682_v37 = vsel %vm2324_vm15, %v2658_v36, %v2681_v29  ;;  %v3888_v40 = vunpack.c.h.bf16 %v3918_v7  ;;  %v2667_v0 = vsel %vm2275_vm13, %v2666_v44, %v2665_v1  ;;  %v2827_v61 = vmul.f32 %v3887_v43, %v2622_v35 }
 0xace   : > { %v2931_v9 = vrot.slane %v2930_v54, 4  ;;  %v2917_v48 = vrot.slane %v2916_v39, 1  ;;  %v2671_v38 = vperm.slane %v2622_v35, %v5529_v30  ;;  %v2951_v22 = vrot.slane %v2950_v47, 2 }
 0xacf   : > { %v2908_v10 = vrot.slane %v2907_v51, 1  ;;  %v2964_v1 = vsel %vm1998_vm0, %v2827_v61, 0.0 }
 0xad0   : > { %v2607_v50 = vpop.permute.xlu1 %2606  ;;  %v2932_v60 = vadd.f32 %v2931_v9, %v2930_v54  ;;  %v2683_v54 = vsel %vm2326_vm1, %v2661_v45, %v2682_v37  ;;  %v2918_v27 = vadd.f32 %v2917_v48, %v2916_v39  ;;  %v2952_v12 = vadd.f32 %v2951_v22, %v2950_v47  ;;  %v2141_v39 = vld [vmem:[#allocation6 + $0x8] sm:$0xff]  ;;  %v2138_v37 = vld [vmem:[#allocation5] sm:$0xff] }
 0xad1   : > { %v2822_v46 = vmul.f32 %v3876_v49, %v2607_v50  ;;  %v2663_v2 = vperm.slane %v2607_v50, %v5534_v33  ;;  %v2909_v59 = vadd.f32 %v2908_v10, %v2907_v51  ;;  %v2139_v51 = vld [vmem:[#allocation5 + $0x8] sm:$0xff] }
 0xad2   : > { %v2933_v49 = vrot.slane %v2932_v60, 2  ;;  %v2953_v63 = vrot.slane %v2952_v12, 1 }
 0xad3   : > { %v2938_v25 = vsel %vm1998_vm0, %v2822_v46, 0.0  ;;  %v2664_v23 = vsel %vm2275_vm13, %v2663_v2, %v2662_v3 }
 0xad4   : > { %v2939_v24 = vadd.f32 %v2938_v25, %v2937_v11  ;;  %v2684_v46 = vsel %vm2328_vm2, %v2664_v23, %v2683_v54  ;;  %v2934_v55 = vadd.f32 %v2933_v49, %v2932_v60  ;;  %v2954_v44 = vadd.f32 %v2953_v63, %v2952_v12  ;;  %v2981_v45 = vpop.permute.xlu0 %2980 }
 0xad5   : > { %v2984_v23 = vmul.f32 %v2981_v45, %v2141_v39  ;;  %v2497_v54 = vmul.f32 %v5703_v42, %v2139_v51 }
 0xad6   : > { %v2940_v53 = vrot.slane %v2939_v24, 4  ;;  %v2935_v5 = vrot.slane %v2934_v55, 1 }
 0xad8   : > { %v2616_v31 = vpop.permute.xlu1 %2615  ;;  %v2941_v18 = vadd.f32 %v2940_v53, %v2939_v24  ;;  %v2685_v24 = vsel %vm2330_vm3, %v2667_v0, %v2684_v46  ;;  %v2936_v3 = vadd.f32 %v2935_v5, %v2934_v55 }
 0xad9   : > { %v2825_v21 = vmul.f32 %v3883_v32, %v2616_v31  ;;  %v2668_v56 = vperm.slane %v2616_v31, %v5529_v30 }
 0xada   : > { %v2942_v4 = vrot.slane %v2941_v18, 2 }
 0xadb   : > { %v2955_v62 = vsel %vm1998_vm0, %v2825_v21, 0.0  ;;  %v2670_v58 = vsel %vm2275_vm13, %v2669_v6, %v2668_v56 }
 0xadc   : > { %v2957_v17 = vadd.f32 %v2956_v16, %v2955_v62  ;;  %v2943_v57 = vadd.f32 %v2942_v4, %v2941_v18  ;;  %v2686_v32 = vsel %vm2332_vm4, %v2670_v58, %v2685_v24  ;;  %v3008_v16 = vsel %vm2322_vm14, %v2918_v27, %v2909_v59 }
 0xadd   : > { %v2496_v4 = vmul.f32 %v5705_v28, %v2138_v37 }
 0xade   : > { %v2958_v50 = vrot.slane %v2957_v17, 4  ;;  %v2944_v19 = vrot.slane %v2943_v57, 1 }
 0xae0   : > { %v2959_v11 = vadd.f32 %v2958_v50, %v2957_v17  ;;  %v2625_v8 = vpop.permute.xlu1 %2624  ;;  %v2945_v31 = vadd.f32 %v2944_v19, %v2943_v57 }
 0xae1   : > { %v2672_v52 = vperm.slane %v2625_v8, %v5534_v33  ;;  %v2828_v25 = vmul.f32 %v3888_v40, %v2625_v8  ;;  %v2926_v33 = vrot.slane %v2925_v26, 1 }
 0xae2   : > { %v2960_v9 = vrot.slane %v2959_v11, 2 }
 0xae3   : > { %v2965_v34 = vsel %vm1998_vm0, %v2828_v25, 0.0  ;;  %v2673_v20 = vsel %vm2275_vm13, %v2672_v52, %v2671_v38  ;;  %v2927_v2 = vadd.f32 %v2926_v33, %v2925_v26 }
 0xae4   : > { %v2966_v30 = vadd.f32 %v2965_v34, %v2964_v1  ;;  %v2687_v7 = vsel %vm2334_vm5, %v2673_v20, %v2686_v32  ;;  %v2961_v53 = vadd.f32 %v2960_v9, %v2959_v11 }
 0xae5   : > { %v2693_v36 = vsel %vm2345_vm6, %v2687_v7, 0.0  ;;  %v3009_v21 = vsel %vm2324_vm15, %v2927_v2, %v3008_v16 }
 0xae6   : > { %v2967_v13 = vrot.slane %v2966_v30, 4  ;;  %2694 = vadd.xlane.f32.xlu2 %v2693_v36  ;;  %v2962_v43 = vrot.slane %v2961_v53, 1  ;;  %v3010_v41 = vsel %vm2326_vm1, %v2936_v3, %v3009_v21 }
 0xae7   : > { %v3011_v14 = vsel %vm2328_vm2, %v2945_v31, %v3010_v41 }
 0xae8   : > { %v2968_v60 = vadd.f32 %v2967_v13, %v2966_v30  ;;  %v2963_v29 = vadd.f32 %v2962_v43, %v2961_v53  ;;  %v3012_v35 = vsel %vm2330_vm3, %v2954_v44, %v3011_v14 }
 0xaea   : > { %v2969_v18 = vrot.slane %v2968_v60, 2  ;;  %v3013_v56 = vsel %vm2332_vm4, %v2963_v29, %v3012_v35 }
 0xaec   : > { %v2970_v15 = vadd.f32 %v2969_v18, %v2968_v60 }
 0xaee   : > { %v2971_v62 = vrot.slane %v2970_v15, 1 }
 0xaf0   : > { %v2972_v49 = vadd.f32 %v2971_v62, %v2970_v15 }
 0xaf2   : > { %v3014_v17 = vsel %vm2334_vm5, %v2972_v49, %v3013_v56 }
 0xaf3   : > { %v3018_v6 = vadd.f32 %v3014_v17, %v2984_v23 }
 0xaf5   : > { %3020 = vst.msk [vmem:[#allocation6 + $0x8] sm:$0xff] %vm1998_vm0, %v3018_v6 }
 0xb2a   : > { %v2692_v40 = vpop.xlane.xlu1 %2691 }
 0xb2b   : > { %v2696_v47 = vadd.f32 %v2692_v40, %v2496_v4 }
 0xb2d   : > { %2699 = vst.msk [vmem:[#allocation5] sm:$0xff] %vm2698_vm7, %v2696_v47 }
 0xb58   : > { %3026 = sbr.rel (%p3703_p13) target bundleno = 3201 (0xc81), region = 144 }
 0xb59   : > { %v2695_v50 = vpop.xlane.xlu2 %2694 }
 0xb5a   : > { %v2697_v26 = vadd.f32 %v2695_v50, %v2497_v54 }
 0xb5c   : > { %2700 = vst.msk [vmem:[#allocation5 + $0x8] sm:$0xff] %vm2698_vm7, %v2697_v26 }
 0xb5d   : > { %v3029_v0 = vld [vmem:[#allocation5] sm:$0xff]  ;;  %v4672_v61 = vmov 0   ;;  %v3757_v28 = vld [vmem:[#allocation18 + $0x8] sm:$0xff]  ;;  %v3028_v33 = vld [vmem:[#allocation6 + $0x8] sm:$0xff] }
 0xb5e   : > { %4355 = vset.pattern.permute.xlu0 %v4672_v61  ;;  %3105 = vmatpush.bf16.msra.mxu0 %v3757_v28  ;;  %v3756_v48 = vld [vmem:[#allocation18] sm:$0xff]  ;;  %v3027_v27 = vld [vmem:[#allocation6] sm:$0xff]  ;;  %v3072_v59 = vld [vmem:[#allocation2 + $0x8] sm:$0xff] }
 0xb5f   : > { %3033 = vperm.xlu0 %4355, %v3029_v0   ;;  %v3071_v12 = vld [vmem:[#allocation2] sm:$0xff] }
 0xb60   : > { %v4356_v2 = vld [vmem:[#allocation19] ss:$0 sm:$0xff] }
 0xb62   : > { %3106 = vmatpush.bf16.msra.mxu0 %v3756_v48 }
 0xb63   : > { %v3030_v46 = vld [vmem:[#allocation5 + $0x8] sm:$0xff] }
 0xb67   : > { %3038 = vperm.xlu0 %4355, %v3030_v46  }
 0xbd1   : > { %v3034_v55 = vpop.permute.xlu0 %3033 }
 0xbd2   : > { %4357 = vrcp.f32 %v3034_v55  ;;  %v3052_v25 = vand.u32 2147483648, %v3034_v55  ;;  %vm3046_vm9 = vweird.f32 %v3034_v55  ;;  %v3050_v22 = vand.u32 2147483647, %v3034_v55 }
 0xbd4   : > { %v3053_v1 = vor.u32 1.1754944e-38, %v3052_v25  ;;  %vm3051_vm12 = vcmp.eq.f32.partialorder %v3050_v22, 8.507059e+37 }
 0xbd8   : > { %v4358_v42 = vpop.eup %4357 }
 0xbd9   : > { %v3042_v11 = vmul.f32 %v4358_v42, %v3034_v55  ;;  %v3039_v8 = vpop.permute.xlu0 %3038  ;;  %vm3047_vm8 = vweird.f32 %v4358_v42 }
 0xbda   : > { %4359 = vrcp.f32 %v3039_v8  ;;  %vm3048_vm10 = vmor %vm3046_vm9, %vm3047_vm8  ;;  %v3067_v34 = vand.u32 2147483648, %v3039_v8  ;;  %v3065_v32 = vand.u32 2147483647, %v3039_v8  ;;  %vm3061_vm13 = vweird.f32 %v3039_v8 }
 0xbdb   : > { %v3043_v58 = vsub.f32 1.0, %v3042_v11 }
 0xbdc   : > { %v3068_v7 = vor.u32 1.1754944e-38, %v3067_v34  ;;  %vm3066_vm15 = vcmp.eq.f32.partialorder %v3065_v32, 8.507059e+37 }
 0xbdd   : > { %v3044_v38 = vmul.f32 %v4358_v42, %v3043_v58 }
 0xbdf   : > { %v3045_v57 = vadd.f32 %v4358_v42, %v3044_v38 }
 0xbe0   : > { %v4360_v52 = vpop.eup %4359 }
 0xbe1   : > { %v3057_v10 = vmul.f32 %v4360_v52, %v3039_v8  ;;  %v3049_v24 = vsel %vm3048_vm10, %v4358_v42, %v3045_v57  ;;  %vm3062_vm11 = vweird.f32 %v4360_v52 }
 0xbe2   : > { %v3054_v5 = vsel %vm3051_vm12, %v3053_v1, %v3049_v24  ;;  %vm3063_vm14 = vmor %vm3061_vm13, %vm3062_vm11 }
 0xbe3   : > { %v3058_v9 = vsub.f32 1.0, %v3057_v10  ;;  %v3055_v19 = vmul.f32 %v3054_v5, %v3027_v27 }
 0xbe5   : > { %v3059_v20 = vmul.f32 %v4360_v52, %v3058_v9  ;;  %v3073_v16 = vadd.f32 %v3071_v12, %v3055_v19 }
 0xbe7   : > { %v3060_v30 = vadd.f32 %v4360_v52, %v3059_v20 }
 0xbe9   : > { %v3064_v53 = vsel %vm3063_vm14, %v4360_v52, %v3060_v30 }
 0xbea   : > { %v3069_v36 = vsel %vm3066_vm15, %v3068_v7, %v3064_v53 }
 0xbeb   : > { %v3070_v13 = vmul.f32 %v3069_v36, %v3028_v33 }
 0xbed   : > { %v3074_v3 = vadd.f32 %v3072_v59, %v3070_v13 }
 0xbef   : > { %v3075_v60 = vpack.c.bf16 %v3074_v3, %v3073_v16 }
 0xbf1   : > { %3712 = vmatmul.msk.bf16.vlgmr.msra.gmra.mxu0 %vm1998_vm0, %v3075_v60 }
 0xc6e   : > { %v3108_v31 = vpop.f32.mrf.mxu0 }
 0xc6f   : > { %v3109_v43 = vadd.f32 %v4356_v2, %v3108_v31 }
 0xc71   : > { %4361 = vtanh.f32 %v3109_v43 }
 0xc76   : > { %v3110_v63 = vpop.f32.mrf.mxu0 }
 0xc77   : > { %v4362_v18 = vpop.eup %4361  ;;  %v3111_v21 = vadd.f32 %v4356_v2, %v3110_v63 }
 0xc78   : > { %3115 = vst.msk [vmem:[%s5144_s28] sm:$0xff] %vm1998_vm0, %v4362_v18 }
 0xc79   : > { %4363 = vtanh.f32 %v3111_v21 }
 0xc7f   : > { %v4364_v41 = vpop.eup %4363 }
 0xc80   : > { %3116 = vst.msk [vmem:[%s5144_s28 + $0x8] sm:$0xff] %vm1998_vm0, %v4364_v41 }
 0xc81 PF: > { %s5961_s23 = sshll.u32 %s4623_s2, 4  ;;  %s3140_s25 = sshll.u32 %s5144_s28, 4  ;;  %s3141_s25 = int_to_ptr.vmem [resolvable:$true] %s3140_s25 }
 0xc82   : > { %s6198_s4 = sld [smem:[#allocation84_spill]]  ;;  %s3118_s22 = scalar_lea.sflag [#allocation9], %s5084_s15 }
 0xc88   : > { %s6199_s10 = smov %s6198_s4  ;;  %s3139_s19 = scalar_lea.hbm %s6198_s4, %s5961_s23 }
 0xc89   : > { %s3142_s8 = sshll.u32 %s3139_s19, 4  ;;  %s4505_s12 = scalar_lea.hbm %s6199_s10, 32  ;;  %s3143_s8 = int_to_ptr.hbm [resolvable:$true] %s3142_s8 }
 0xc8a   : > { %s4499_s9 = sshra.s32 %s3143_s8, 4  ;;  %s4500_s9 = int_to_ptr.hbm [resolvable:$true] %s4499_s9 }
 0xc8b   : > { %s4501_s0 = scalar_lea.hbm %s4500_s9, 16  ;;  %p4506_p8 = scmp.lt.s32.totalorder %s4500_s9, %s6199_s10 }
 0xc8c   : > { %p4502_p0 = scmp.ne.s32.totalorder %s4500_s9, %s4501_s0  ;;  %p4507_p11 = scmp.lt.s32.totalorder %s4505_s12, %s4501_s0 }
 0xc8e   : > { %p4503_p5 = pnand %p4502_p0, %p4934_p7  ;;  %p4508_p1 = por %p4507_p11, %p4506_p8 }
 0xc90   : > { %p4504_p2 = pneg %p4503_p5 }
 0xc92   : > { %p4509_p9 = pnand %p4508_p1, %p4504_p2 }
 0xc94   : > { %4512 = shalt.err (!%p4509_p9)
}
 0xc95   : > { %s4673_s15 = smov 128   ;;  %s4674_s3 = smov 8  }
 0xc96   : > { %3977 = dma.vmem_to_hbm [thread:$0]  (%p4934_p7), %s3141_s25, 256, %s3143_s8, %s3118_s22, %s4673_s15, %s4673_s15, %s4674_s3  }
 0xc97   : > { %s3123_s13 = scalar_lea.sflag [#allocation23], %s5098_s16 }
 0xc98   : > { %s6200_s11 = sld [smem:[#allocation85_spill]]  ;;  %s3167_s12 = sshll.u32 %s5147_s29, 4  ;;  %s3168_s12 = int_to_ptr.vmem [resolvable:$true] %s3167_s12 }
 0xc99   : > { %s4675_s25 = smov 256   ;;  %s4676_s8 = smov 512  }
 0xc9a   : > { %3978 = sst [smem:[#allocation34]] (%p4934_p7), %s4675_s25  ;;  %s4677_s22 = smov 2  }
 0xc9b   : > { %3979 = sst [smem:[#allocation34 + $0x1]] (%p4934_p7), %s4676_s8  ;;  %s4678_s9 = smov 128  }
 0xc9c   : > { %3980 = sst [smem:[#allocation34 + $0x2]] (%p4934_p7), %s4677_s22  ;;  %s4679_s29 = smov 8  }
 0xc9d   : > { %3981 = sst [smem:[#allocation34 + $0x3]] (%p4934_p7), %s4678_s9  ;;  %s4680_s2 = smov [#allocation33]  }
 0xc9e   : > { %s3156_s14 = scalar_lea.hbm %s6200_s11, %s5961_s23  ;;  %3982 = sst [smem:[#allocation34 + $0x4]] (%p4934_p7), %s4678_s9 }
 0xc9f   : > { %s3169_s0 = sshll.u32 %s3156_s14, 4  ;;  %3983 = sst [smem:[#allocation34 + $0x5]] (%p4934_p7), %s4679_s29  ;;  %s3170_s0 = int_to_ptr.hbm [resolvable:$true] %s3169_s0 }
 0xca0   : > { %s4681_s28 = smov 0  }
 0xca1   : > { %3984 = dma.general (%p4934_p7), %s3168_s12, 512, %s3170_s0, %s3123_s13, %s4680_s2, [#allocation34], %s4681_s28, 0  }
 0xca2   : > { %s6201_s4 = sld [smem:[#allocation86_spill]]  ;;  %s3207_s11 = sshll.u32 %s5150_s18, 4  ;;  %s3208_s11 = int_to_ptr.vmem [resolvable:$true] %s3207_s11 }
 0xca3   : > { %s4682_s25 = smov 256   ;;  %s4683_s12 = smov 512  }
 0xca4   : > { %3985 = sst [smem:[#allocation36]] (%p4934_p7), %s4682_s25  ;;  %s4684_s0 = smov 2  }
 0xca5   : > { %3986 = sst [smem:[#allocation36 + $0x1]] (%p4934_p7), %s4683_s12  ;;  %s4685_s8 = smov 128  }
 0xca6   : > { %3987 = sst [smem:[#allocation36 + $0x2]] (%p4934_p7), %s4684_s0  ;;  %s4686_s18 = smov 8  }
 0xca7   : > { %3988 = sst [smem:[#allocation36 + $0x3]] (%p4934_p7), %s4685_s8  ;;  %s4688_s22 = smov 0  }
 0xca8   : > { %s3196_s19 = scalar_lea.hbm %s6201_s4, %s5961_s23  ;;  %3989 = sst [smem:[#allocation36 + $0x4]] (%p4934_p7), %s4685_s8 }
 0xca9   : > { %s3209_s14 = sshll.u32 %s3196_s19, 4  ;;  %3990 = sst [smem:[#allocation36 + $0x5]] (%p4934_p7), %s4686_s18  ;;  %s3210_s14 = int_to_ptr.hbm [resolvable:$true] %s3209_s14 }
 0xcaa   : > { %s4687_s23 = smov [#allocation35]  }
 0xcab   : > { %3991 = dma.general (%p4934_p7), %s3208_s11, 512, %s3210_s14, %s3123_s13, %s4687_s23, [#allocation36], %s4688_s22, 0  }
 0xcac PF: > { %s6202_s9 = sld [smem:[#allocation50_spill]]  ;;  %p4026_p4 = scmp.ge.s32.totalorder %s4635_s7, 2 }
 0xcae   : > { %p4009_p3 = pnand %p4026_p4, %p4942_p10 }
 0xcb0   : > { %p4010_p12 = pneg %p4009_p3 }
 0xcb2   : > { %s3237_s2 = sand.u32 1, %s6202_s9  }
 0xcb3   : > { %s3238_s28 = scalar_lea.sflag [#allocation9], %s3237_s2 }
 0xcb4   : > { %4586 = dma.done.wait (%p4010_p12), %s3238_s28, 256  }
 0xcb5   : > { %4588 = vsyncadd (%p4010_p12), %s3238_s28, 4294967040  ;;  %s6204_s15 = sadd.s32 4294967294, %s4635_s7  }
 0xcb6   : > { %s3247_s3 = sand.u32 1, %s6204_s15  }
 0xcb7   : > { %s3248_s4 = scalar_lea.sflag [#allocation23], %s3247_s3 }
 0xcb8   : > { %4590 = dma.done.wait (%p4010_p12), %s3248_s4, 1024  }
 0xcb9   : > { %4592 = vsyncadd (%p4010_p12), %s3248_s4, 4294966272  ;;  %s51_s7 = sadd.s32 1, %s4635_s7   ;;  %s6205_s16 = sld [smem:[#allocation54_spill]] }
 0xcba   : > { %p48_p7 = scmp.ge.s32.totalorder %s51_s7, 6   ;;  %s6206_s26 = sld [smem:[#allocation53_spill]] }
 0xcbb   : > { %s6207_s13 = sld [smem:[#allocation51_spill]]  ;;  %s6209_s4 = smov %s4599_s30 }
 0xcbc   : > { %s6208_s19 = sld [smem:[#allocation52_spill]]  ;;  %s6210_s30 = smov %s4603_s24 }
 0xcbd   : > { %s6212_s25 = smov %s4611_s5  ;;  %s6213_s5 = smov %s4615_s1 }
 0xcbe   : > { %s6216_s2 = smov %s4631_s27  ;;  %50 = sbr.rel (!%p48_p7) target bundleno = 41 (0x29), region = 282 }
 0xcbf   : > { %s6211_s24 = smov %s6205_s16 }
 0xcc0   : > { %s6214_s1 = smov %s6206_s26  ;;  %s6215_s26 = smov %s4627_s6 }
 0xcc1   : > { %s6217_s6 = smov %s6207_s13 }
 0xcc2   : > { %s6218_s27 = smov %s6208_s19 }
 0xcc3   :  { %3264 = vsyncpa [#allocation8], 1 }
 0xcc4   :  { %3266 = vsyncpa [#allocation8 + $0x1], 1 }
 0xcc5   :  { %3267 = vsyncpa [#allocation11], 1 }
 0xcc6   :  { %3269 = vsyncpa [#allocation11 + $0x1], 1 }
 0xcc7   :  { %3270 = vsyncpa [#allocation14], 1 }
 0xcc8   :  { %3272 = vsyncpa [#allocation14 + $0x1], 1 }
 0xcc9   :  { %3273 = vsyncpa [#allocation17], 1 }
 0xcca   :  { %3274 = vsyncpa [#allocation20], 1 }
 0xccb   :  { %3275 = vsyncpa [#allocation9], 1 }
 0xccc   :  { %3277 = vsyncpa [#allocation9 + $0x1], 1 }
 0xccd   :  { %3278 = vsyncpa [#allocation23], 1 }
 0xcce   :  { %3280 = vsyncpa [#allocation23 + $0x1], 1 }

</bundles_post_ra>
